<compile_context>
chip_gen: v7x
topology: tpu7x:2x2x1
jax: 0.10.0
libtpu: 0.0.40
codegen_flags: <defaults>
</compile_context>

<pallas_src>
import math
from functools import partial

import jax
import jax.numpy as jnp
from jax.experimental import pallas as pl
from jax.experimental.pallas import tpu as pltpu


# ------------------------------ in-kernel math ------------------------------

def _layer_norm(x, eps=1e-5):
    mu = jnp.mean(x, axis=-1, keepdims=True)
    var = jnp.mean((x - mu) ** 2, axis=-1, keepdims=True)
    return (x - mu) * jax.lax.rsqrt(var + eps)


def _gelu_tanh(x):
    # TODO(synk): PyTorch nn.GELU() defaults to the exact erf form; erf lowering in
    # Mosaic is not guaranteed, so the tanh approximation is used inside kernels.
    return 0.5 * x * (1.0 + jnp.tanh(0.7978845608028654 * (x + 0.044715 * x * x * x)))


def _bf16(x):
    return x.astype(jnp.bfloat16)


def _model_block(shape):
    """BlockSpec selecting one model's slab of a (n_models, ...) array per grid step."""
    zeros = (0,) * len(shape)
    return pl.BlockSpec((1,) + tuple(shape), lambda m: (m,) + zeros)


# --------------------------- embedding (VPU) kernel --------------------------

def _embed_kernel(vals_ref, w_ref, b_ref, o_ref):
    # scalar feature -> embedding:  out[r, :] = vals[r] * w_row[r, :] + b_row[r, :]
    # features_per_group == 1, so this is a pure VPU broadcast multiply-add:
    # no MXU, no K-padding concatenates.
    o_ref[0] = vals_ref[...] * w_ref[0] + b_ref[0]


def embed_tokens(vals, w_rows, b_rows):
    NM, N, E = w_rows.shape
    return pl.pallas_call(
        _embed_kernel,
        out_shape=jax.ShapeDtypeStruct((NM, N, E), jnp.float32),
        grid=(NM,),
        in_specs=[pl.BlockSpec((N, 1), lambda m: (0, 0)),    # shared across models
                  _model_block((N, E)),
                  _model_block((N, E))],
        out_specs=_model_block((N, E)),
        compiler_params=pltpu.CompilerParams(dimension_semantics=("parallel",)),
    )(vals, w_rows, b_rows)


# ----------------------- fused encoder-layer kernel --------------------------

def _attention_block(x, mask, wqkv_ref, bqkv_ref, wo_ref, bo_ref, *, nhead, scale):
    """Pre-norm multi-head attention over the whole token set with an additive
    block-diagonal mask encoding the (batch, item) / (batch, feature) contexts.
    Residual add is fused in.  bf16 MXU operands, f32 accumulation/softmax."""
    n_rows, emb = x.shape
    hn = _bf16(_layer_norm(x))
    acc = jnp.zeros((n_rows, emb), jnp.float32)
    for h in range(nhead):
        def proj(which, _h=h):
            idx = which * nhead + _h
            return (jnp.dot(hn, wqkv_ref[0, idx, :, :],
                            preferred_element_type=jnp.float32)
                    + bqkv_ref[0, idx, :, :])
        q, k, v = proj(0), proj(1), proj(2)
        s = jax.lax.dot_general(_bf16(q), _bf16(k), (((1,), (1,)), ((), ())),
                                preferred_element_type=jnp.float32)
        s = s * scale + mask
        s = s - jnp.max(s, axis=-1, keepdims=True)
        p = jnp.exp(s)
        p = p * pl.reciprocal(jnp.sum(p, axis=-1, keepdims=True), approx=True)
        o_h = jnp.dot(_bf16(p), _bf16(v), preferred_element_type=jnp.float32)
        acc = acc + jnp.dot(_bf16(o_h), wo_ref[0, h, :, :],
                            preferred_element_type=jnp.float32)
    return x + acc + bo_ref[0]


def _encoder_layer_kernel(x_ref, mask_f_ref, mask_i_ref,
                          wqkv_f_ref, bqkv_f_ref, wo_f_ref, bo_f_ref,
                          wqkv_i_ref, bqkv_i_ref, wo_i_ref, bo_i_ref,
                          w1_ref, b1_ref, w2_ref, b2_ref,
                          o_ref, *, nhead, scale):
    x = x_ref[0]                                                   # (N, E) f32
    # 1) attention between features: contexts are (batch, item) groups of T tokens
    x = _attention_block(x, mask_f_ref[...], wqkv_f_ref, bqkv_f_ref,
                         wo_f_ref, bo_f_ref, nhead=nhead, scale=scale)
    # 2) attention between items: contexts are (batch, feature-token) groups of S
    #    tokens, keys restricted to training items.
    x = _attention_block(x, mask_i_ref[...], wqkv_i_ref, bqkv_i_ref,
                         wo_i_ref, bo_i_ref, nhead=nhead, scale=scale)
    # 3) MLP (pre-norm residual), fused Linear -> GELU -> Linear
    hn = _bf16(_layer_norm(x))
    h1 = jnp.dot(hn, w1_ref[0], preferred_element_type=jnp.float32) + b1_ref[0]
    h1 = _bf16(_gelu_tanh(h1))
    x = x + jnp.dot(h1, w2_ref[0], preferred_element_type=jnp.float32) + b2_ref[0]
    o_ref[0] = x


def encoder_layer(tokens, mask_f, mask_i, lp, nhead):
    NM, N, E = tokens.shape
    H = lp['w1'].shape[-1]
    n_qkv = lp['wqkv_f'].shape[1]            # 3 * nhead
    dh = E // nhead
    shared = pl.BlockSpec((N, N), lambda m: (0, 0))
    kern = partial(_encoder_layer_kernel, nhead=nhead, scale=1.0 / math.sqrt(dh))
    return pl.pallas_call(
        kern,
        out_shape=jax.ShapeDtypeStruct((NM, N, E), jnp.float32),
        grid=(NM,),
        in_specs=[
            _model_block((N, E)), shared, shared,
            _model_block((n_qkv, E, dh)), _model_block((n_qkv, 1, dh)),
            _model_block((nhead, dh, E)), _model_block((1, E)),
            _model_block((n_qkv, E, dh)), _model_block((n_qkv, 1, dh)),
            _model_block((nhead, dh, E)), _model_block((1, E)),
            _model_block((E, H)), _model_block((1, H)),
            _model_block((H, E)), _model_block((1, E)),
        ],
        out_specs=_model_block((N, E)),
        compiler_params=pltpu.CompilerParams(dimension_semantics=("parallel",)),
    )(tokens, mask_f, mask_i,
      lp['wqkv_f'], lp['bqkv_f'], lp['wo_f'], lp['bo_f'],
      lp['wqkv_i'], lp['bqkv_i'], lp['wo_i'], lp['bo_i'],
      lp['w1'], lp['b1'], lp['w2'], lp['b2'])


# ------------------------------- decoder kernel ------------------------------

def _decoder_kernel(x_ref, w1_ref, b1_ref, w2_ref, b2_ref, o_ref):
    # standard decoder: Linear -> GELU -> Linear (fused).  Output lane width is the
    # module's n_out (4), so a sub-128 store is unavoidable here but tiny.
    h = jnp.dot(_bf16(x_ref[0]), w1_ref[0],
                preferred_element_type=jnp.float32) + b1_ref[0]
    h = _bf16(_gelu_tanh(h))
    o_ref[0] = jnp.dot(h, w2_ref[0], preferred_element_type=jnp.float32) + b2_ref[0]


def decoder_mlp(x, w1, b1, w2, b2):
    NM, M, E = x.shape
    H = w1.shape[-1]
    C = w2.shape[-1]
    return pl.pallas_call(
        _decoder_kernel,
        out_shape=jax.ShapeDtypeStruct((NM, M, C), jnp.float32),
        grid=(NM,),
        in_specs=[_model_block((M, E)),
                  _model_block((E, H)), _model_block((1, H)),
                  _model_block((H, C)), _model_block((1, C))],
        out_specs=_model_block((M, C)),
        compiler_params=pltpu.CompilerParams(dimension_semantics=("parallel",)),
    )(x, w1, b1, w2, b2)


# ------------------------------- model glue ---------------------------------

def build_masks(B, S, T, single_eval_pos):
    """Additive block-diagonal masks over the flat (batch, item, token) row order.

    mask_f: tokens attend within their own (batch, item) group   (feature attention)
    mask_i: tokens attend within their own (batch, token) group and only to
            training items (item attention).
    TODO(synk): verify exact test-item key masking against the reference
    PerFeatureEncoderLayer (here test items attend only to train items).
    """
    idx = jnp.arange(B * S * T)
    b = idx // (S * T)
    s = (idx // T) % S
    t = idx % T
    same_b = b[:, None] == b[None, :]
    same_bs = same_b & (s[:, None] == s[None, :])
    same_bt = same_b & (t[:, None] == t[None, :])
    neg = jnp.float32(-1e9)
    mask_f = jnp.where(same_bs, jnp.float32(0.0), neg)
    mask_i = jnp.where(same_bt & (s[None, :] < single_eval_pos),
                       jnp.float32(0.0), neg)
    return mask_f, mask_i


def per_feature_transformer_forward(params, train_x, train_y, test_x, nhead):
    """Batched-over-models PerFeatureTransformer forward
    (only_return_standard_out=True).  Returns (n_models, S_test, B, n_out)."""
    single_eval_pos = train_x.shape[0]
    x = jnp.concatenate([train_x, test_x], axis=0)                # (S, B, F)
    S, B, F = x.shape
    # features_per_group == 1: every feature is its own token group.
    # TODO(synk): features_per_group > 1 needs a real (fpg -> E) matmul encoder.
    T_feat = F
    T = T_feat + 1                                                # +1 y token
    N = B * S * T
    NM, E = params['enc_w'].shape

    # y: NaN-pad the test positions, impute 0 before the linear y-encoder.
    # TODO(synk): the real y_encoder has dedicated NaN-handling sub-encoders.
    y_full = jnp.concatenate(
        [train_y, jnp.full((S - single_eval_pos, B), jnp.nan, train_y.dtype)], axis=0)
    y_clean = jnp.nan_to_num(y_full, nan=0.0)                     # (S, B)

    # one scalar per token, rows in (batch, item, token) order; shared by all models
    vals = jnp.concatenate([x.transpose(1, 0, 2),                 # (B, S, F)
                            y_clean.T[..., None]], axis=-1)       # (B, S, T)
    vals = vals.reshape(N, 1).astype(jnp.float32)

    # per-token-row embedding weight / bias (x tokens -> enc, y token -> yenc)
    tok_w = jnp.concatenate(
        [jnp.broadcast_to(params['enc_w'][:, None, :], (NM, T_feat, E)),
         params['yenc_w'][:, None, :]], axis=1)                   # (NM, T, E)
    tok_b = jnp.concatenate(
        [jnp.broadcast_to(params['enc_b'][:, None, :], (NM, T_feat, E)),
         params['yenc_b'][:, None, :]], axis=1)
    w_rows = jnp.broadcast_to(tok_w[:, None, None], (NM, B, S, T, E)).reshape(NM, N, E)
    b_rows = jnp.broadcast_to(tok_b[:, None, None], (NM, B, S, T, E)).reshape(NM, N, E)

    tokens = embed_tokens(vals, w_rows, b_rows)                   # (NM, N, E)

    mask_f, mask_i = build_masks(B, S, T, single_eval_pos)
    for lp in params['layers']:                                   # LayerStack, no dropout
        tokens = encoder_layer(tokens, mask_f, mask_i, lp, nhead)

    # standard decoder on the target (last) token of the test items
    St = S - single_eval_pos
    test_tok = tokens.reshape(NM, B, S, T, E)[:, :, single_eval_pos:, T - 1, :]
    dec = decoder_mlp(test_tok.reshape(NM, B * St, E),
                      params['dw1'], params['db1'], params['dw2'], params['db2'])
    n_out = dec.shape[-1]
    return dec.reshape(NM, B, St, n_out).transpose(0, 2, 1, 3)    # (NM, St, B, n_out)


def ensemble_forward(params, train_x, train_y, test_x, nhead):
    """Ensemble.forward: mean over per-model outputs.  Plain jnp.mean — a dedicated
    Pallas kernel for a (n, St, B, C) reduction is pure launch overhead."""
    outs = per_feature_transformer_forward(params, train_x, train_y, test_x, nhead)
    return jnp.mean(outs, axis=0)


# ------------------------------ parameter init ------------------------------

def _init_linear(key, fan_in, fan_out):
    kw, kb = jax.random.split(key)
    bound = 1.0 / math.sqrt(fan_in)
    w = jax.random.uniform(kw, (fan_in, fan_out), jnp.float32, -bound, bound)
    b = jax.random.uniform(kb, (fan_out,), jnp.float32, -bound, bound)
    return w, b


def init_model_params(key, ninp, nhead, nhid, nlayers, n_out):
    """Synthetic deterministic init (no checkpoint), zero_init=False so the
    attention / MLP kernels contribute to the output.  Attention weights are
    stored pre-split per head so kernels never lane-slice."""
    dh = ninp // nhead
    keys = jax.random.split(key, 3 + nlayers)

    def attn_params(kq, ko):
        wqkv, bqkv = _init_linear(kq, ninp, 3 * ninp)
        wo, bo = _init_linear(ko, ninp, ninp)
        wqkv = wqkv.reshape(ninp, 3 * nhead, dh).transpose(1, 0, 2)   # (3*nhead, E, dh)
        bqkv = bqkv.reshape(3 * nhead, 1, dh)
        wo = wo.reshape(nhead, dh, ninp)                              # (nhead, dh, E)
        return wqkv, bqkv, wo, bo.reshape(1, ninp)

    enc_w, enc_b = _init_linear(keys[0], 1, ninp)      # Linear(features_per_group=1, E)
    yenc_w, yenc_b = _init_linear(keys[1], 1, ninp)    # Linear(1, E)
    params = {
        'enc_w': enc_w.reshape(ninp), 'enc_b': enc_b,
        'yenc_w': yenc_w.reshape(ninp), 'yenc_b': yenc_b,
        'layers': [],
    }
    for l in range(nlayers):
        lk = jax.random.split(keys[2 + l], 6)
        wqkv_f, bqkv_f, wo_f, bo_f = attn_params(lk[0], lk[1])
        wqkv_i, bqkv_i, wo_i, bo_i = attn_params(lk[2], lk[3])
        w1, b1 = _init_linear(lk[4], ninp, nhid)
        w2, b2 = _init_linear(lk[5], nhid, ninp)
        params['layers'].append({
            'wqkv_f': wqkv_f, 'bqkv_f': bqkv_f, 'wo_f': wo_f, 'bo_f': bo_f,
            'wqkv_i': wqkv_i, 'bqkv_i': bqkv_i, 'wo_i': wo_i, 'bo_i': bo_i,
            'w1': w1, 'b1': b1.reshape(1, nhid), 'w2': w2, 'b2': b2.reshape(1, ninp),
        })
    dk = jax.random.split(keys[2 + nlayers], 2)
    dw1, db1 = _init_linear(dk[0], ninp, nhid)
    dw2, db2 = _init_linear(dk[1], nhid, n_out)
    params.update({'dw1': dw1, 'db1': db1.reshape(1, nhid),
                   'dw2': dw2, 'db2': db2.reshape(1, n_out)})
    return params


_BF16_KEYS = frozenset({'wqkv_f', 'wo_f', 'wqkv_i', 'wo_i', 'w1', 'w2', 'dw1', 'dw2'})


def _cast_mxu_weights(tree):
    """Cast MXU matmul weights to bf16 (activations cast in-kernel; accumulate f32)."""
    if isinstance(tree, dict):
        return {k: (v.astype(jnp.bfloat16) if k in _BF16_KEYS else _cast_mxu_weights(v))
                for k, v in tree.items()}
    if isinstance(tree, list):
        return [_cast_mxu_weights(v) for v in tree]
    return tree


def stack_ensemble_params(per_model_params):
    stacked = jax.tree_util.tree_map(lambda *xs: jnp.stack(xs, axis=0),
                                     *per_model_params)
    return _cast_mxu_weights(stacked)


# ----------------------------------- main -----------------------------------

if __name__ == "__main__":
    key = jax.random.PRNGKey(0)
    S_train, S_test, B, F = 6, 2, 2, 3
    ninp, nhead, nhid, nlayers, n_out = 32, 4, 64, 2, 4
    n_models = 2

    k_data, k_models = jax.random.split(key)
    kx, ky, kt = jax.random.split(k_data, 3)
    train_x = jax.random.normal(kx, (S_train, B, F), jnp.float32)
    train_y = jax.random.normal(ky, (S_train, B), jnp.float32)
    test_x = jax.random.normal(kt, (S_test, B, F), jnp.float32)

    model_keys = jax.random.split(k_models, n_models)
    params = stack_ensemble_params(
        [init_model_params(mk, ninp, nhead, nhid, nlayers, n_out)
         for mk in model_keys])

    fwd = jax.jit(partial(ensemble_forward, nhead=nhead))
    out = fwd(params, train_x, train_y, test_x)
    jax.block_until_ready(out)
    assert out.shape == (S_test, B, n_out)
    assert not bool(jnp.any(jnp.isnan(out)))
    print("KERNEL_OK")
</pallas_src>

<mosaic_0001>
module attributes {stable_mosaic.version = 11 : i64} {
  func.func @_embed_kernel(%arg0: i32, %arg1: memref<64x1xf32, #tpu.memory_space<vmem>>, %arg2: memref<1x64x32xf32, #tpu.memory_space<vmem>>, %arg3: memref<1x64x32xf32, #tpu.memory_space<vmem>>, %arg4: memref<1x64x32xf32, #tpu.memory_space<vmem>>) attributes {dimension_semantics = [#tpu.dimension_semantics<parallel>], iteration_bounds = array<i64: 2>, scalar_prefetch = 0 : i64, scratch_operands = 0 : i64, tpu.core_type = #tpu.core_type<tc>, window_params = [{pipeline_mode = #tpu.pipeline_mode<synchronous>, transform_indices = @transform_0, window_bounds = array<i64: 64, 1>}, {transform_indices = @transform_1, window_bounds = array<i64: 1, 64, 32>}, {transform_indices = @transform_2, window_bounds = array<i64: 1, 64, 32>}, {transform_indices = @transform_3, window_bounds = array<i64: 1, 64, 32>}]} {
    %c0 = arith.constant 0 : index
    %c0_0 = arith.constant 0 : index
    %0 = vector.load %arg1[%c0, %c0_0] : memref<64x1xf32, #tpu.memory_space<vmem>>, vector<64x1xf32>
    %c0_1 = arith.constant 0 : index
    %c0_2 = arith.constant 0 : index
    %c0_3 = arith.constant 0 : index
    %1 = vector.load %arg2[%c0_1, %c0_2, %c0_3] : memref<1x64x32xf32, #tpu.memory_space<vmem>>, vector<1x64x32xf32>
    %2 = vector.shape_cast %1 : vector<1x64x32xf32> to vector<64x32xf32>
    %3 = vector.broadcast %0 : vector<64x1xf32> to vector<64x32xf32>
    %4 = arith.mulf %3, %2 : vector<64x32xf32>
    %c0_4 = arith.constant 0 : index
    %c0_5 = arith.constant 0 : index
    %c0_6 = arith.constant 0 : index
    %5 = vector.load %arg3[%c0_4, %c0_5, %c0_6] : memref<1x64x32xf32, #tpu.memory_space<vmem>>, vector<1x64x32xf32>
    %6 = vector.shape_cast %5 : vector<1x64x32xf32> to vector<64x32xf32>
    %7 = arith.addf %4, %6 : vector<64x32xf32>
    %c0_7 = arith.constant 0 : index
    %c0_8 = arith.constant 0 : index
    %c0_9 = arith.constant 0 : index
    %8 = vector.load %arg4[%c0_7, %c0_8, %c0_9] : memref<1x64x32xf32, #tpu.memory_space<vmem>>, vector<1x64x32xf32>
    %9 = vector.shape_cast %8 : vector<1x64x32xf32> to vector<64x32xf32>
    %10 = vector.shape_cast %7 : vector<64x32xf32> to vector<1x64x32xf32>
    tpu.vector_store %arg4[%c0_7, %c0_8, %c0_9], %10 {strides = array<i32>} : memref<1x64x32xf32, #tpu.memory_space<vmem>>, vector<1x64x32xf32>,
    return
  }
  func.func @transform_0(%arg0: i32) -> (i32, i32) {
    %c0_i32 = arith.constant 0 : i32
    %c0_i32_0 = arith.constant 0 : i32
    %c0_i32_1 = arith.constant 0 : i32
    return %c0_i32, %c0_i32_0 : i32, i32
  }
  func.func @transform_1(%arg0: i32) -> (i32, i32, i32) {
    %c0_i32 = arith.constant 0 : i32
    %c0_i32_0 = arith.constant 0 : i32
    %c0_i32_1 = arith.constant 0 : i32
    return %arg0, %c0_i32, %c0_i32_0 : i32, i32, i32
  }
  func.func @transform_2(%arg0: i32) -> (i32, i32, i32) {
    %c0_i32 = arith.constant 0 : i32
    %c0_i32_0 = arith.constant 0 : i32
    %c0_i32_1 = arith.constant 0 : i32
    return %arg0, %c0_i32, %c0_i32_0 : i32, i32, i32
  }
  func.func @transform_3(%arg0: i32) -> (i32, i32, i32) {
    %c0_i32 = arith.constant 0 : i32
    %c0_i32_0 = arith.constant 0 : i32
    %c0_i32_1 = arith.constant 0 : i32
    return %arg0, %c0_i32, %c0_i32_0 : i32, i32, i32
  }
}

module attributes {stable_mosaic.version = 11 : i64} {
  func.func @_decoder_kernel(%arg0: i32, %arg1: memref<1x4x32xf32, #tpu.memory_space<vmem>>, %arg2: memref<1x32x64xbf16, #tpu.memory_space<vmem>>, %arg3: memref<1x1x64xf32, #tpu.memory_space<vmem>>, %arg4: memref<1x64x4xbf16, #tpu.memory_space<vmem>>, %arg5: memref<1x1x4xf32, #tpu.memory_space<vmem>>, %arg6: memref<1x4x4xf32, #tpu.memory_space<vmem>>) attributes {dimension_semantics = [#tpu.dimension_semantics<parallel>], iteration_bounds = array<i64: 2>, scalar_prefetch = 0 : i64, scratch_operands = 0 : i64, tpu.core_type = #tpu.core_type<tc>, window_params = [{transform_indices = @transform_0, window_bounds = array<i64: 1, 4, 32>}, {transform_indices = @transform_1, window_bounds = array<i64: 1, 32, 64>}, {transform_indices = @transform_2, window_bounds = array<i64: 1, 1, 64>}, {transform_indices = @transform_3, window_bounds = array<i64: 1, 64, 4>}, {transform_indices = @transform_4, window_bounds = array<i64: 1, 1, 4>}, {transform_indices = @transform_5, window_bounds = array<i64: 1, 4, 4>}]} {
    %c0 = arith.constant 0 : index
    %c0_0 = arith.constant 0 : index
    %c0_1 = arith.constant 0 : index
    %0 = vector.load %arg1[%c0, %c0_0, %c0_1] : memref<1x4x32xf32, #tpu.memory_space<vmem>>, vector<1x4x32xf32>
    %1 = vector.shape_cast %0 : vector<1x4x32xf32> to vector<4x32xf32>
    %2 = arith.truncf %1 : vector<4x32xf32> to vector<4x32xbf16>
    %c0_2 = arith.constant 0 : index
    %c0_3 = arith.constant 0 : index
    %c0_4 = arith.constant 0 : index
    %3 = vector.load %arg2[%c0_2, %c0_3, %c0_4] : memref<1x32x64xbf16, #tpu.memory_space<vmem>>, vector<1x32x64xbf16>
    %4 = vector.shape_cast %3 : vector<1x32x64xbf16> to vector<32x64xbf16>
    %cst = arith.constant dense<0.000000e+00> : vector<4x64xf32>
    %5 = tpu.matmul %2, %4, %cst {dimension_numbers = #tpu.dot_dimension_numbers<[1], [0], [0], [1], [0, 0, 1, 1], [], []>} : vector<4x32xbf16>, vector<32x64xbf16>, vector<4x64xf32> -> vector<4x64xf32>
    %c0_5 = arith.constant 0 : index
    %c0_6 = arith.constant 0 : index
    %c0_7 = arith.constant 0 : index
    %6 = vector.load %arg3[%c0_5, %c0_6, %c0_7] : memref<1x1x64xf32, #tpu.memory_space<vmem>>, vector<1x1x64xf32>
    %7 = vector.shape_cast %6 : vector<1x1x64xf32> to vector<1x64xf32>
    %8 = vector.broadcast %7 : vector<1x64xf32> to vector<4x64xf32>
    %9 = arith.addf %5, %8 : vector<4x64xf32>
    %cst_8 = arith.constant 5.000000e-01 : f32
    %10 = vector.broadcast %cst_8 : f32 to vector<4x64xf32>
    %11 = arith.mulf %10, %9 : vector<4x64xf32>
    %cst_9 = arith.constant 4.471500e-02 : f32
    %12 = vector.broadcast %cst_9 : f32 to vector<4x64xf32>
    %13 = arith.mulf %12, %9 : vector<4x64xf32>
    %14 = arith.mulf %13, %9 : vector<4x64xf32>
    %15 = arith.mulf %14, %9 : vector<4x64xf32>
    %16 = arith.addf %9, %15 : vector<4x64xf32>
    %cst_10 = arith.constant 0.797884583 : f32
    %17 = vector.broadcast %cst_10 : f32 to vector<4x64xf32>
    %18 = arith.mulf %17, %16 : vector<4x64xf32>
    %19 = math.tanh %18 : vector<4x64xf32>
    %cst_11 = arith.constant 1.000000e+00 : f32
    %20 = vector.broadcast %cst_11 : f32 to vector<4x64xf32>
    %21 = arith.addf %20, %19 : vector<4x64xf32>
    %22 = arith.mulf %11, %21 : vector<4x64xf32>
    %23 = arith.truncf %22 : vector<4x64xf32> to vector<4x64xbf16>
    %c0_12 = arith.constant 0 : index
    %c0_13 = arith.constant 0 : index
    %c0_14 = arith.constant 0 : index
    %24 = vector.load %arg4[%c0_12, %c0_13, %c0_14] : memref<1x64x4xbf16, #tpu.memory_space<vmem>>, vector<1x64x4xbf16>
    %25 = vector.shape_cast %24 : vector<1x64x4xbf16> to vector<64x4xbf16>
    %cst_15 = arith.constant dense<0.000000e+00> : vector<4x4xf32>
    %26 = tpu.matmul %23, %25, %cst_15 {dimension_numbers = #tpu.dot_dimension_numbers<[1], [0], [0], [1], [0, 0, 1, 1], [], []>} : vector<4x64xbf16>, vector<64x4xbf16>, vector<4x4xf32> -> vector<4x4xf32>
    %c0_16 = arith.constant 0 : index
    %c0_17 = arith.constant 0 : index
    %c0_18 = arith.constant 0 : index
    %27 = vector.load %arg5[%c0_16, %c0_17, %c0_18] : memref<1x1x4xf32, #tpu.memory_space<vmem>>, vector<1x1x4xf32>
    %28 = vector.shape_cast %27 : vector<1x1x4xf32> to vector<1x4xf32>
    %29 = vector.broadcast %28 : vector<1x4xf32> to vector<4x4xf32>
    %30 = arith.addf %26, %29 : vector<4x4xf32>
    %c0_19 = arith.constant 0 : index
    %c0_20 = arith.constant 0 : index
    %c0_21 = arith.constant 0 : index
    %31 = vector.load %arg6[%c0_19, %c0_20, %c0_21] : memref<1x4x4xf32, #tpu.memory_space<vmem>>, vector<1x4x4xf32>
    %32 = vector.shape_cast %31 : vector<1x4x4xf32> to vector<4x4xf32>
    %33 = vector.shape_cast %30 : vector<4x4xf32> to vector<1x4x4xf32>
    tpu.vector_store %arg6[%c0_19, %c0_20, %c0_21], %33 {strides = array<i32>} : memref<1x4x4xf32, #tpu.memory_space<vmem>>, vector<1x4x4xf32>,
    return
  }
  func.func @transform_0(%arg0: i32) -> (i32, i32, i32) {
    %c0_i32 = arith.constant 0 : i32
    %c0_i32_0 = arith.constant 0 : i32
    %c0_i32_1 = arith.constant 0 : i32
    return %arg0, %c0_i32, %c0_i32_0 : i32, i32, i32
  }
  func.func @transform_1(%arg0: i32) -> (i32, i32, i32) {
    %c0_i32 = arith.constant 0 : i32
    %c0_i32_0 = arith.constant 0 : i32
    %c0_i32_1 = arith.constant 0 : i32
    return %arg0, %c0_i32, %c0_i32_0 : i32, i32, i32
  }
  func.func @transform_2(%arg0: i32) -> (i32, i32, i32) {
    %c0_i32 = arith.constant 0 : i32
    %c0_i32_0 = arith.constant 0 : i32
    %c0_i32_1 = arith.constant 0 : i32
    return %arg0, %c0_i32, %c0_i32_0 : i32, i32, i32
  }
  func.func @transform_3(%arg0: i32) -> (i32, i32, i32) {
    %c0_i32 = arith.constant 0 : i32
    %c0_i32_0 = arith.constant 0 : i32
    %c0_i32_1 = arith.constant 0 : i32
    return %arg0, %c0_i32, %c0_i32_0 : i32, i32, i32
  }
  func.func @transform_4(%arg0: i32) -> (i32, i32, i32) {
    %c0_i32 = arith.constant 0 : i32
    %c0_i32_0 = arith.constant 0 : i32
    %c0_i32_1 = arith.constant 0 : i32
    return %arg0, %c0_i32, %c0_i32_0 : i32, i32, i32
  }
  func.func @transform_5(%arg0: i32) -> (i32, i32, i32) {
    %c0_i32 = arith.constant 0 : i32
    %c0_i32_0 = arith.constant 0 : i32
    %c0_i32_1 = arith.constant 0 : i32
    return %arg0, %c0_i32, %c0_i32_0 : i32, i32, i32
  }
}

module attributes {stable_mosaic.version = 11 : i64} {
  func.func @_encoder_layer_kernel(%arg0: i32, %arg1: memref<1x64x32xf32, #tpu.memory_space<vmem>>, %arg2: memref<64x64xf32, #tpu.memory_space<vmem>>, %arg3: memref<64x64xf32, #tpu.memory_space<vmem>>, %arg4: memref<1x12x32x8xbf16, #tpu.memory_space<vmem>>, %arg5: memref<1x12x1x8xf32, #tpu.memory_space<vmem>>, %arg6: memref<1x4x8x32xbf16, #tpu.memory_space<vmem>>, %arg7: memref<1x1x32xf32, #tpu.memory_space<vmem>>, %arg8: memref<1x12x32x8xbf16, #tpu.memory_space<vmem>>, %arg9: memref<1x12x1x8xf32, #tpu.memory_space<vmem>>, %arg10: memref<1x4x8x32xbf16, #tpu.memory_space<vmem>>, %arg11: memref<1x1x32xf32, #tpu.memory_space<vmem>>, %arg12: memref<1x32x64xbf16, #tpu.memory_space<vmem>>, %arg13: memref<1x1x64xf32, #tpu.memory_space<vmem>>, %arg14: memref<1x64x32xbf16, #tpu.memory_space<vmem>>, %arg15: memref<1x1x32xf32, #tpu.memory_space<vmem>>, %arg16: memref<1x64x32xf32, #tpu.memory_space<vmem>>) attributes {dimension_semantics = [#tpu.dimension_semantics<parallel>], iteration_bounds = array<i64: 2>, scalar_prefetch = 0 : i64, scratch_operands = 0 : i64, tpu.core_type = #tpu.core_type<tc>, window_params = [{transform_indices = @transform_0, window_bounds = array<i64: 1, 64, 32>}, {pipeline_mode = #tpu.pipeline_mode<synchronous>, transform_indices = @transform_1, window_bounds = array<i64: 64, 64>}, {pipeline_mode = #tpu.pipeline_mode<synchronous>, transform_indices = @transform_2, window_bounds = array<i64: 64, 64>}, {transform_indices = @transform_3, window_bounds = array<i64: 1, 12, 32, 8>}, {transform_indices = @transform_4, window_bounds = array<i64: 1, 12, 1, 8>}, {transform_indices = @transform_5, window_bounds = array<i64: 1, 4, 8, 32>}, {transform_indices = @transform_6, window_bounds = array<i64: 1, 1, 32>}, {transform_indices = @transform_7, window_bounds = array<i64: 1, 12, 32, 8>}, {transform_indices = @transform_8, window_bounds = array<i64: 1, 12, 1, 8>}, {transform_indices = @transform_9, window_bounds = array<i64: 1, 4, 8, 32>}, {transform_indices = @transform_10, window_bounds = array<i64: 1, 1, 32>}, {transform_indices = @transform_11, window_bounds = array<i64: 1, 32, 64>}, {transform_indices = @transform_12, window_bounds = array<i64: 1, 1, 64>}, {transform_indices = @transform_13, window_bounds = array<i64: 1, 64, 32>}, {transform_indices = @transform_14, window_bounds = array<i64: 1, 1, 32>}, {transform_indices = @transform_15, window_bounds = array<i64: 1, 64, 32>}]} {
    %c0 = arith.constant 0 : index
    %c0_0 = arith.constant 0 : index
    %c0_1 = arith.constant 0 : index
    %0 = vector.load %arg1[%c0, %c0_0, %c0_1] : memref<1x64x32xf32, #tpu.memory_space<vmem>>, vector<1x64x32xf32>
    %1 = vector.shape_cast %0 : vector<1x64x32xf32> to vector<64x32xf32>
    %c0_2 = arith.constant 0 : index
    %c0_3 = arith.constant 0 : index
    %2 = vector.load %arg2[%c0_2, %c0_3] : memref<64x64xf32, #tpu.memory_space<vmem>>, vector<64x64xf32>
    %cst = arith.constant dense<0.000000e+00> : vector<64xf32>
    %3 = vector.multi_reduction <add>, %1, %cst [1] : vector<64x32xf32> to vector<64xf32>
    %4 = vector.shape_cast %3 : vector<64xf32> to vector<64x1xf32>
    %cst_4 = arith.constant 3.200000e+01 : f32
    %5 = vector.broadcast %cst_4 : f32 to vector<64x1xf32>
    %6 = arith.divf %4, %5 : vector<64x1xf32>
    %7 = vector.broadcast %6 : vector<64x1xf32> to vector<64x32xf32>
    %8 = arith.subf %1, %7 : vector<64x32xf32>
    %9 = arith.mulf %8, %8 : vector<64x32xf32>
    %cst_5 = arith.constant dense<0.000000e+00> : vector<64xf32>
    %10 = vector.multi_reduction <add>, %9, %cst_5 [1] : vector<64x32xf32> to vector<64xf32>
    %11 = vector.shape_cast %10 : vector<64xf32> to vector<64x1xf32>
    %cst_6 = arith.constant 3.200000e+01 : f32
    %12 = vector.broadcast %cst_6 : f32 to vector<64x1xf32>
    %13 = arith.divf %11, %12 : vector<64x1xf32>
    %14 = vector.broadcast %6 : vector<64x1xf32> to vector<64x32xf32>
    %15 = arith.subf %1, %14 : vector<64x32xf32>
    %cst_7 = arith.constant 9.99999974E-6 : f32
    %16 = vector.broadcast %cst_7 : f32 to vector<64x1xf32>
    %17 = arith.addf %13, %16 : vector<64x1xf32>
    %18 = math.rsqrt %17 : vector<64x1xf32>
    %19 = vector.broadcast %18 : vector<64x1xf32> to vector<64x32xf32>
    %20 = arith.mulf %15, %19 : vector<64x32xf32>
    %21 = arith.truncf %20 : vector<64x32xf32> to vector<64x32xbf16>
    %cst_8 = arith.constant 0.000000e+00 : f32
    %22 = vector.broadcast %cst_8 : f32 to vector<64x32xf32>
    %c0_9 = arith.constant 0 : index
    %c0_10 = arith.constant 0 : index
    %c0_11 = arith.constant 0 : index
    %c0_12 = arith.constant 0 : index
    %23 = vector.load %arg4[%c0_9, %c0_10, %c0_11, %c0_12] : memref<1x12x32x8xbf16, #tpu.memory_space<vmem>>, vector<1x1x32x8xbf16>
    %24 = vector.shape_cast %23 : vector<1x1x32x8xbf16> to vector<32x8xbf16>
    %cst_13 = arith.constant dense<0.000000e+00> : vector<64x8xf32>
    %25 = tpu.matmul %21, %24, %cst_13 {dimension_numbers = #tpu.dot_dimension_numbers<[1], [0], [0], [1], [0, 0, 1, 1], [], []>} : vector<64x32xbf16>, vector<32x8xbf16>, vector<64x8xf32> -> vector<64x8xf32>
    %c0_14 = arith.constant 0 : index
    %c0_15 = arith.constant 0 : index
    %c0_16 = arith.constant 0 : index
    %c0_17 = arith.constant 0 : index
    %26 = vector.load %arg5[%c0_14, %c0_15, %c0_16, %c0_17] : memref<1x12x1x8xf32, #tpu.memory_space<vmem>>, vector<1x1x1x8xf32>
    %27 = vector.shape_cast %26 : vector<1x1x1x8xf32> to vector<1x8xf32>
    %28 = vector.broadcast %27 : vector<1x8xf32> to vector<64x8xf32>
    %29 = arith.addf %25, %28 : vector<64x8xf32>
    %c0_18 = arith.constant 0 : index
    %c4 = arith.constant 4 : index
    %c0_19 = arith.constant 0 : index
    %c0_20 = arith.constant 0 : index
    %30 = vector.load %arg4[%c0_18, %c4, %c0_19, %c0_20] : memref<1x12x32x8xbf16, #tpu.memory_space<vmem>>, vector<1x1x32x8xbf16>
    %31 = vector.shape_cast %30 : vector<1x1x32x8xbf16> to vector<32x8xbf16>
    %cst_21 = arith.constant dense<0.000000e+00> : vector<64x8xf32>
    %32 = tpu.matmul %21, %31, %cst_21 {dimension_numbers = #tpu.dot_dimension_numbers<[1], [0], [0], [1], [0, 0, 1, 1], [], []>} : vector<64x32xbf16>, vector<32x8xbf16>, vector<64x8xf32> -> vector<64x8xf32>
    %c0_22 = arith.constant 0 : index
    %c4_23 = arith.constant 4 : index
    %c0_24 = arith.constant 0 : index
    %c0_25 = arith.constant 0 : index
    %33 = vector.load %arg5[%c0_22, %c4_23, %c0_24, %c0_25] : memref<1x12x1x8xf32, #tpu.memory_space<vmem>>, vector<1x1x1x8xf32>
    %34 = vector.shape_cast %33 : vector<1x1x1x8xf32> to vector<1x8xf32>
    %35 = vector.broadcast %34 : vector<1x8xf32> to vector<64x8xf32>
    %36 = arith.addf %32, %35 : vector<64x8xf32>
    %c0_26 = arith.constant 0 : index
    %c8 = arith.constant 8 : index
    %c0_27 = arith.constant 0 : index
    %c0_28 = arith.constant 0 : index
    %37 = vector.load %arg4[%c0_26, %c8, %c0_27, %c0_28] : memref<1x12x32x8xbf16, #tpu.memory_space<vmem>>, vector<1x1x32x8xbf16>
    %38 = vector.shape_cast %37 : vector<1x1x32x8xbf16> to vector<32x8xbf16>
    %cst_29 = arith.constant dense<0.000000e+00> : vector<64x8xf32>
    %39 = tpu.matmul %21, %38, %cst_29 {dimension_numbers = #tpu.dot_dimension_numbers<[1], [0], [0], [1], [0, 0, 1, 1], [], []>} : vector<64x32xbf16>, vector<32x8xbf16>, vector<64x8xf32> -> vector<64x8xf32>
    %c0_30 = arith.constant 0 : index
    %c8_31 = arith.constant 8 : index
    %c0_32 = arith.constant 0 : index
    %c0_33 = arith.constant 0 : index
    %40 = vector.load %arg5[%c0_30, %c8_31, %c0_32, %c0_33] : memref<1x12x1x8xf32, #tpu.memory_space<vmem>>, vector<1x1x1x8xf32>
    %41 = vector.shape_cast %40 : vector<1x1x1x8xf32> to vector<1x8xf32>
    %42 = vector.broadcast %41 : vector<1x8xf32> to vector<64x8xf32>
    %43 = arith.addf %39, %42 : vector<64x8xf32>
    %44 = arith.truncf %29 : vector<64x8xf32> to vector<64x8xbf16>
    %45 = arith.truncf %36 : vector<64x8xf32> to vector<64x8xbf16>
    %cst_34 = arith.constant dense<0.000000e+00> : vector<64x64xf32>
    %46 = tpu.matmul %44, %45, %cst_34 {dimension_numbers = #tpu.dot_dimension_numbers<[1], [1], [0], [0], [0, 0, 1, 0], [], []>} : vector<64x8xbf16>, vector<64x8xbf16>, vector<64x64xf32> -> vector<64x64xf32>
    %cst_35 = arith.constant 0.353553385 : f32
    %47 = vector.broadcast %cst_35 : f32 to vector<64x64xf32>
    %48 = arith.mulf %46, %47 : vector<64x64xf32>
    %49 = arith.addf %48, %2 : vector<64x64xf32>
    %cst_36 = arith.constant dense<0xFF800000> : vector<64xf32>
    %50 = vector.multi_reduction <maximumf>, %49, %cst_36 [1] : vector<64x64xf32> to vector<64xf32>
    %51 = vector.shape_cast %50 : vector<64xf32> to vector<64x1xf32>
    %52 = vector.broadcast %51 : vector<64x1xf32> to vector<64x64xf32>
    %53 = arith.subf %49, %52 : vector<64x64xf32>
    %54 = math.exp %53 : vector<64x64xf32>
    %cst_37 = arith.constant dense<0.000000e+00> : vector<64xf32>
    %55 = vector.multi_reduction <add>, %54, %cst_37 [1] : vector<64x64xf32> to vector<64xf32>
    %56 = vector.shape_cast %55 : vector<64xf32> to vector<64x1xf32>
    %57 = tpu.reciprocal %56 {approx = true} : vector<64x1xf32> -> vector<64x1xf32>
    %58 = vector.broadcast %57 : vector<64x1xf32> to vector<64x64xf32>
    %59 = arith.mulf %54, %58 : vector<64x64xf32>
    %60 = arith.truncf %59 : vector<64x64xf32> to vector<64x64xbf16>
    %61 = arith.truncf %43 : vector<64x8xf32> to vector<64x8xbf16>
    %cst_38 = arith.constant dense<0.000000e+00> : vector<64x8xf32>
    %62 = tpu.matmul %60, %61, %cst_38 {dimension_numbers = #tpu.dot_dimension_numbers<[1], [0], [0], [1], [0, 0, 1, 1], [], []>} : vector<64x64xbf16>, vector<64x8xbf16>, vector<64x8xf32> -> vector<64x8xf32>
    %63 = arith.truncf %62 : vector<64x8xf32> to vector<64x8xbf16>
    %c0_39 = arith.constant 0 : index
    %c0_40 = arith.constant 0 : index
    %c0_41 = arith.constant 0 : index
    %c0_42 = arith.constant 0 : index
    %64 = vector.load %arg6[%c0_39, %c0_40, %c0_41, %c0_42] : memref<1x4x8x32xbf16, #tpu.memory_space<vmem>>, vector<1x1x8x32xbf16>
    %65 = vector.shape_cast %64 : vector<1x1x8x32xbf16> to vector<8x32xbf16>
    %cst_43 = arith.constant dense<0.000000e+00> : vector<64x32xf32>
    %66 = tpu.matmul %63, %65, %cst_43 {dimension_numbers = #tpu.dot_dimension_numbers<[1], [0], [0], [1], [0, 0, 1, 1], [], []>} : vector<64x8xbf16>, vector<8x32xbf16>, vector<64x32xf32> -> vector<64x32xf32>
    %67 = arith.addf %22, %66 : vector<64x32xf32>
    %c0_44 = arith.constant 0 : index
    %c1 = arith.constant 1 : index
    %c0_45 = arith.constant 0 : index
    %c0_46 = arith.constant 0 : index
    %68 = vector.load %arg4[%c0_44, %c1, %c0_45, %c0_46] : memref<1x12x32x8xbf16, #tpu.memory_space<vmem>>, vector<1x1x32x8xbf16>
    %69 = vector.shape_cast %68 : vector<1x1x32x8xbf16> to vector<32x8xbf16>
    %cst_47 = arith.constant dense<0.000000e+00> : vector<64x8xf32>
    %70 = tpu.matmul %21, %69, %cst_47 {dimension_numbers = #tpu.dot_dimension_numbers<[1], [0], [0], [1], [0, 0, 1, 1], [], []>} : vector<64x32xbf16>, vector<32x8xbf16>, vector<64x8xf32> -> vector<64x8xf32>
    %c0_48 = arith.constant 0 : index
    %c1_49 = arith.constant 1 : index
    %c0_50 = arith.constant 0 : index
    %c0_51 = arith.constant 0 : index
    %71 = vector.load %arg5[%c0_48, %c1_49, %c0_50, %c0_51] : memref<1x12x1x8xf32, #tpu.memory_space<vmem>>, vector<1x1x1x8xf32>
    %72 = vector.shape_cast %71 : vector<1x1x1x8xf32> to vector<1x8xf32>
    %73 = vector.broadcast %72 : vector<1x8xf32> to vector<64x8xf32>
    %74 = arith.addf %70, %73 : vector<64x8xf32>
    %c0_52 = arith.constant 0 : index
    %c5 = arith.constant 5 : index
    %c0_53 = arith.constant 0 : index
    %c0_54 = arith.constant 0 : index
    %75 = vector.load %arg4[%c0_52, %c5, %c0_53, %c0_54] : memref<1x12x32x8xbf16, #tpu.memory_space<vmem>>, vector<1x1x32x8xbf16>
    %76 = vector.shape_cast %75 : vector<1x1x32x8xbf16> to vector<32x8xbf16>
    %cst_55 = arith.constant dense<0.000000e+00> : vector<64x8xf32>
    %77 = tpu.matmul %21, %76, %cst_55 {dimension_numbers = #tpu.dot_dimension_numbers<[1], [0], [0], [1], [0, 0, 1, 1], [], []>} : vector<64x32xbf16>, vector<32x8xbf16>, vector<64x8xf32> -> vector<64x8xf32>
    %c0_56 = arith.constant 0 : index
    %c5_57 = arith.constant 5 : index
    %c0_58 = arith.constant 0 : index
    %c0_59 = arith.constant 0 : index
    %78 = vector.load %arg5[%c0_56, %c5_57, %c0_58, %c0_59] : memref<1x12x1x8xf32, #tpu.memory_space<vmem>>, vector<1x1x1x8xf32>
    %79 = vector.shape_cast %78 : vector<1x1x1x8xf32> to vector<1x8xf32>
    %80 = vector.broadcast %79 : vector<1x8xf32> to vector<64x8xf32>
    %81 = arith.addf %77, %80 : vector<64x8xf32>
    %c0_60 = arith.constant 0 : index
    %c9 = arith.constant 9 : index
    %c0_61 = arith.constant 0 : index
    %c0_62 = arith.constant 0 : index
    %82 = vector.load %arg4[%c0_60, %c9, %c0_61, %c0_62] : memref<1x12x32x8xbf16, #tpu.memory_space<vmem>>, vector<1x1x32x8xbf16>
    %83 = vector.shape_cast %82 : vector<1x1x32x8xbf16> to vector<32x8xbf16>
    %cst_63 = arith.constant dense<0.000000e+00> : vector<64x8xf32>
    %84 = tpu.matmul %21, %83, %cst_63 {dimension_numbers = #tpu.dot_dimension_numbers<[1], [0], [0], [1], [0, 0, 1, 1], [], []>} : vector<64x32xbf16>, vector<32x8xbf16>, vector<64x8xf32> -> vector<64x8xf32>
    %c0_64 = arith.constant 0 : index
    %c9_65 = arith.constant 9 : index
    %c0_66 = arith.constant 0 : index
    %c0_67 = arith.constant 0 : index
    %85 = vector.load %arg5[%c0_64, %c9_65, %c0_66, %c0_67] : memref<1x12x1x8xf32, #tpu.memory_space<vmem>>, vector<1x1x1x8xf32>
    %86 = vector.shape_cast %85 : vector<1x1x1x8xf32> to vector<1x8xf32>
    %87 = vector.broadcast %86 : vector<1x8xf32> to vector<64x8xf32>
    %88 = arith.addf %84, %87 : vector<64x8xf32>
    %89 = arith.truncf %74 : vector<64x8xf32> to vector<64x8xbf16>
    %90 = arith.truncf %81 : vector<64x8xf32> to vector<64x8xbf16>
    %cst_68 = arith.constant dense<0.000000e+00> : vector<64x64xf32>
    %91 = tpu.matmul %89, %90, %cst_68 {dimension_numbers = #tpu.dot_dimension_numbers<[1], [1], [0], [0], [0, 0, 1, 0], [], []>} : vector<64x8xbf16>, vector<64x8xbf16>, vector<64x64xf32> -> vector<64x64xf32>
    %cst_69 = arith.constant 0.353553385 : f32
    %92 = vector.broadcast %cst_69 : f32 to vector<64x64xf32>
    %93 = arith.mulf %91, %92 : vector<64x64xf32>
    %94 = arith.addf %93, %2 : vector<64x64xf32>
    %cst_70 = arith.constant dense<0xFF800000> : vector<64xf32>
    %95 = vector.multi_reduction <maximumf>, %94, %cst_70 [1] : vector<64x64xf32> to vector<64xf32>
    %96 = vector.shape_cast %95 : vector<64xf32> to vector<64x1xf32>
    %97 = vector.broadcast %96 : vector<64x1xf32> to vector<64x64xf32>
    %98 = arith.subf %94, %97 : vector<64x64xf32>
    %99 = math.exp %98 : vector<64x64xf32>
    %cst_71 = arith.constant dense<0.000000e+00> : vector<64xf32>
    %100 = vector.multi_reduction <add>, %99, %cst_71 [1] : vector<64x64xf32> to vector<64xf32>
    %101 = vector.shape_cast %100 : vector<64xf32> to vector<64x1xf32>
    %102 = tpu.reciprocal %101 {approx = true} : vector<64x1xf32> -> vector<64x1xf32>
    %103 = vector.broadcast %102 : vector<64x1xf32> to vector<64x64xf32>
    %104 = arith.mulf %99, %103 : vector<64x64xf32>
    %105 = arith.truncf %104 : vector<64x64xf32> to vector<64x64xbf16>
    %106 = arith.truncf %88 : vector<64x8xf32> to vector<64x8xbf16>
    %cst_72 = arith.constant dense<0.000000e+00> : vector<64x8xf32>
    %107 = tpu.matmul %105, %106, %cst_72 {dimension_numbers = #tpu.dot_dimension_numbers<[1], [0], [0], [1], [0, 0, 1, 1], [], []>} : vector<64x64xbf16>, vector<64x8xbf16>, vector<64x8xf32> -> vector<64x8xf32>
    %108 = arith.truncf %107 : vector<64x8xf32> to vector<64x8xbf16>
    %c0_73 = arith.constant 0 : index
    %c1_74 = arith.constant 1 : index
    %c0_75 = arith.constant 0 : index
    %c0_76 = arith.constant 0 : index
    %109 = vector.load %arg6[%c0_73, %c1_74, %c0_75, %c0_76] : memref<1x4x8x32xbf16, #tpu.memory_space<vmem>>, vector<1x1x8x32xbf16>
    %110 = vector.shape_cast %109 : vector<1x1x8x32xbf16> to vector<8x32xbf16>
    %cst_77 = arith.constant dense<0.000000e+00> : vector<64x32xf32>
    %111 = tpu.matmul %108, %110, %cst_77 {dimension_numbers = #tpu.dot_dimension_numbers<[1], [0], [0], [1], [0, 0, 1, 1], [], []>} : vector<64x8xbf16>, vector<8x32xbf16>, vector<64x32xf32> -> vector<64x32xf32>
    %112 = arith.addf %67, %111 : vector<64x32xf32>
    %c0_78 = arith.constant 0 : index
    %c2 = arith.constant 2 : index
    %c0_79 = arith.constant 0 : index
    %c0_80 = arith.constant 0 : index
    %113 = vector.load %arg4[%c0_78, %c2, %c0_79, %c0_80] : memref<1x12x32x8xbf16, #tpu.memory_space<vmem>>, vector<1x1x32x8xbf16>
    %114 = vector.shape_cast %113 : vector<1x1x32x8xbf16> to vector<32x8xbf16>
    %cst_81 = arith.constant dense<0.000000e+00> : vector<64x8xf32>
    %115 = tpu.matmul %21, %114, %cst_81 {dimension_numbers = #tpu.dot_dimension_numbers<[1], [0], [0], [1], [0, 0, 1, 1], [], []>} : vector<64x32xbf16>, vector<32x8xbf16>, vector<64x8xf32> -> vector<64x8xf32>
    %c0_82 = arith.constant 0 : index
    %c2_83 = arith.constant 2 : index
    %c0_84 = arith.constant 0 : index
    %c0_85 = arith.constant 0 : index
    %116 = vector.load %arg5[%c0_82, %c2_83, %c0_84, %c0_85] : memref<1x12x1x8xf32, #tpu.memory_space<vmem>>, vector<1x1x1x8xf32>
    %117 = vector.shape_cast %116 : vector<1x1x1x8xf32> to vector<1x8xf32>
    %118 = vector.broadcast %117 : vector<1x8xf32> to vector<64x8xf32>
    %119 = arith.addf %115, %118 : vector<64x8xf32>
    %c0_86 = arith.constant 0 : index
    %c6 = arith.constant 6 : index
    %c0_87 = arith.constant 0 : index
    %c0_88 = arith.constant 0 : index
    %120 = vector.load %arg4[%c0_86, %c6, %c0_87, %c0_88] : memref<1x12x32x8xbf16, #tpu.memory_space<vmem>>, vector<1x1x32x8xbf16>
    %121 = vector.shape_cast %120 : vector<1x1x32x8xbf16> to vector<32x8xbf16>
    %cst_89 = arith.constant dense<0.000000e+00> : vector<64x8xf32>
    %122 = tpu.matmul %21, %121, %cst_89 {dimension_numbers = #tpu.dot_dimension_numbers<[1], [0], [0], [1], [0, 0, 1, 1], [], []>} : vector<64x32xbf16>, vector<32x8xbf16>, vector<64x8xf32> -> vector<64x8xf32>
    %c0_90 = arith.constant 0 : index
    %c6_91 = arith.constant 6 : index
    %c0_92 = arith.constant 0 : index
    %c0_93 = arith.constant 0 : index
    %123 = vector.load %arg5[%c0_90, %c6_91, %c0_92, %c0_93] : memref<1x12x1x8xf32, #tpu.memory_space<vmem>>, vector<1x1x1x8xf32>
    %124 = vector.shape_cast %123 : vector<1x1x1x8xf32> to vector<1x8xf32>
    %125 = vector.broadcast %124 : vector<1x8xf32> to vector<64x8xf32>
    %126 = arith.addf %122, %125 : vector<64x8xf32>
    %c0_94 = arith.constant 0 : index
    %c10 = arith.constant 10 : index
    %c0_95 = arith.constant 0 : index
    %c0_96 = arith.constant 0 : index
    %127 = vector.load %arg4[%c0_94, %c10, %c0_95, %c0_96] : memref<1x12x32x8xbf16, #tpu.memory_space<vmem>>, vector<1x1x32x8xbf16>
    %128 = vector.shape_cast %127 : vector<1x1x32x8xbf16> to vector<32x8xbf16>
    %cst_97 = arith.constant dense<0.000000e+00> : vector<64x8xf32>
    %129 = tpu.matmul %21, %128, %cst_97 {dimension_numbers = #tpu.dot_dimension_numbers<[1], [0], [0], [1], [0, 0, 1, 1], [], []>} : vector<64x32xbf16>, vector<32x8xbf16>, vector<64x8xf32> -> vector<64x8xf32>
    %c0_98 = arith.constant 0 : index
    %c10_99 = arith.constant 10 : index
    %c0_100 = arith.constant 0 : index
    %c0_101 = arith.constant 0 : index
    %130 = vector.load %arg5[%c0_98, %c10_99, %c0_100, %c0_101] : memref<1x12x1x8xf32, #tpu.memory_space<vmem>>, vector<1x1x1x8xf32>
    %131 = vector.shape_cast %130 : vector<1x1x1x8xf32> to vector<1x8xf32>
    %132 = vector.broadcast %131 : vector<1x8xf32> to vector<64x8xf32>
    %133 = arith.addf %129, %132 : vector<64x8xf32>
    %134 = arith.truncf %119 : vector<64x8xf32> to vector<64x8xbf16>
    %135 = arith.truncf %126 : vector<64x8xf32> to vector<64x8xbf16>
    %cst_102 = arith.constant dense<0.000000e+00> : vector<64x64xf32>
    %136 = tpu.matmul %134, %135, %cst_102 {dimension_numbers = #tpu.dot_dimension_numbers<[1], [1], [0], [0], [0, 0, 1, 0], [], []>} : vector<64x8xbf16>, vector<64x8xbf16>, vector<64x64xf32> -> vector<64x64xf32>
    %cst_103 = arith.constant 0.353553385 : f32
    %137 = vector.broadcast %cst_103 : f32 to vector<64x64xf32>
    %138 = arith.mulf %136, %137 : vector<64x64xf32>
    %139 = arith.addf %138, %2 : vector<64x64xf32>
    %cst_104 = arith.constant dense<0xFF800000> : vector<64xf32>
    %140 = vector.multi_reduction <maximumf>, %139, %cst_104 [1] : vector<64x64xf32> to vector<64xf32>
    %141 = vector.shape_cast %140 : vector<64xf32> to vector<64x1xf32>
    %142 = vector.broadcast %141 : vector<64x1xf32> to vector<64x64xf32>
    %143 = arith.subf %139, %142 : vector<64x64xf32>
    %144 = math.exp %143 : vector<64x64xf32>
    %cst_105 = arith.constant dense<0.000000e+00> : vector<64xf32>
    %145 = vector.multi_reduction <add>, %144, %cst_105 [1] : vector<64x64xf32> to vector<64xf32>
    %146 = vector.shape_cast %145 : vector<64xf32> to vector<64x1xf32>
    %147 = tpu.reciprocal %146 {approx = true} : vector<64x1xf32> -> vector<64x1xf32>
    %148 = vector.broadcast %147 : vector<64x1xf32> to vector<64x64xf32>
    %149 = arith.mulf %144, %148 : vector<64x64xf32>
    %150 = arith.truncf %149 : vector<64x64xf32> to vector<64x64xbf16>
    %151 = arith.truncf %133 : vector<64x8xf32> to vector<64x8xbf16>
    %cst_106 = arith.constant dense<0.000000e+00> : vector<64x8xf32>
    %152 = tpu.matmul %150, %151, %cst_106 {dimension_numbers = #tpu.dot_dimension_numbers<[1], [0], [0], [1], [0, 0, 1, 1], [], []>} : vector<64x64xbf16>, vector<64x8xbf16>, vector<64x8xf32> -> vector<64x8xf32>
    %153 = arith.truncf %152 : vector<64x8xf32> to vector<64x8xbf16>
    %c0_107 = arith.constant 0 : index
    %c2_108 = arith.constant 2 : index
    %c0_109 = arith.constant 0 : index
    %c0_110 = arith.constant 0 : index
    %154 = vector.load %arg6[%c0_107, %c2_108, %c0_109, %c0_110] : memref<1x4x8x32xbf16, #tpu.memory_space<vmem>>, vector<1x1x8x32xbf16>
    %155 = vector.shape_cast %154 : vector<1x1x8x32xbf16> to vector<8x32xbf16>
    %cst_111 = arith.constant dense<0.000000e+00> : vector<64x32xf32>
    %156 = tpu.matmul %153, %155, %cst_111 {dimension_numbers = #tpu.dot_dimension_numbers<[1], [0], [0], [1], [0, 0, 1, 1], [], []>} : vector<64x8xbf16>, vector<8x32xbf16>, vector<64x32xf32> -> vector<64x32xf32>
    %157 = arith.addf %112, %156 : vector<64x32xf32>
    %c0_112 = arith.constant 0 : index
    %c3 = arith.constant 3 : index
    %c0_113 = arith.constant 0 : index
    %c0_114 = arith.constant 0 : index
    %158 = vector.load %arg4[%c0_112, %c3, %c0_113, %c0_114] : memref<1x12x32x8xbf16, #tpu.memory_space<vmem>>, vector<1x1x32x8xbf16>
    %159 = vector.shape_cast %158 : vector<1x1x32x8xbf16> to vector<32x8xbf16>
    %cst_115 = arith.constant dense<0.000000e+00> : vector<64x8xf32>
    %160 = tpu.matmul %21, %159, %cst_115 {dimension_numbers = #tpu.dot_dimension_numbers<[1], [0], [0], [1], [0, 0, 1, 1], [], []>} : vector<64x32xbf16>, vector<32x8xbf16>, vector<64x8xf32> -> vector<64x8xf32>
    %c0_116 = arith.constant 0 : index
    %c3_117 = arith.constant 3 : index
    %c0_118 = arith.constant 0 : index
    %c0_119 = arith.constant 0 : index
    %161 = vector.load %arg5[%c0_116, %c3_117, %c0_118, %c0_119] : memref<1x12x1x8xf32, #tpu.memory_space<vmem>>, vector<1x1x1x8xf32>
    %162 = vector.shape_cast %161 : vector<1x1x1x8xf32> to vector<1x8xf32>
    %163 = vector.broadcast %162 : vector<1x8xf32> to vector<64x8xf32>
    %164 = arith.addf %160, %163 : vector<64x8xf32>
    %c0_120 = arith.constant 0 : index
    %c7 = arith.constant 7 : index
    %c0_121 = arith.constant 0 : index
    %c0_122 = arith.constant 0 : index
    %165 = vector.load %arg4[%c0_120, %c7, %c0_121, %c0_122] : memref<1x12x32x8xbf16, #tpu.memory_space<vmem>>, vector<1x1x32x8xbf16>
    %166 = vector.shape_cast %165 : vector<1x1x32x8xbf16> to vector<32x8xbf16>
    %cst_123 = arith.constant dense<0.000000e+00> : vector<64x8xf32>
    %167 = tpu.matmul %21, %166, %cst_123 {dimension_numbers = #tpu.dot_dimension_numbers<[1], [0], [0], [1], [0, 0, 1, 1], [], []>} : vector<64x32xbf16>, vector<32x8xbf16>, vector<64x8xf32> -> vector<64x8xf32>
    %c0_124 = arith.constant 0 : index
    %c7_125 = arith.constant 7 : index
    %c0_126 = arith.constant 0 : index
    %c0_127 = arith.constant 0 : index
    %168 = vector.load %arg5[%c0_124, %c7_125, %c0_126, %c0_127] : memref<1x12x1x8xf32, #tpu.memory_space<vmem>>, vector<1x1x1x8xf32>
    %169 = vector.shape_cast %168 : vector<1x1x1x8xf32> to vector<1x8xf32>
    %170 = vector.broadcast %169 : vector<1x8xf32> to vector<64x8xf32>
    %171 = arith.addf %167, %170 : vector<64x8xf32>
    %c0_128 = arith.constant 0 : index
    %c11 = arith.constant 11 : index
    %c0_129 = arith.constant 0 : index
    %c0_130 = arith.constant 0 : index
    %172 = vector.load %arg4[%c0_128, %c11, %c0_129, %c0_130] : memref<1x12x32x8xbf16, #tpu.memory_space<vmem>>, vector<1x1x32x8xbf16>
    %173 = vector.shape_cast %172 : vector<1x1x32x8xbf16> to vector<32x8xbf16>
    %cst_131 = arith.constant dense<0.000000e+00> : vector<64x8xf32>
    %174 = tpu.matmul %21, %173, %cst_131 {dimension_numbers = #tpu.dot_dimension_numbers<[1], [0], [0], [1], [0, 0, 1, 1], [], []>} : vector<64x32xbf16>, vector<32x8xbf16>, vector<64x8xf32> -> vector<64x8xf32>
    %c0_132 = arith.constant 0 : index
    %c11_133 = arith.constant 11 : index
    %c0_134 = arith.constant 0 : index
    %c0_135 = arith.constant 0 : index
    %175 = vector.load %arg5[%c0_132, %c11_133, %c0_134, %c0_135] : memref<1x12x1x8xf32, #tpu.memory_space<vmem>>, vector<1x1x1x8xf32>
    %176 = vector.shape_cast %175 : vector<1x1x1x8xf32> to vector<1x8xf32>
    %177 = vector.broadcast %176 : vector<1x8xf32> to vector<64x8xf32>
    %178 = arith.addf %174, %177 : vector<64x8xf32>
    %179 = arith.truncf %164 : vector<64x8xf32> to vector<64x8xbf16>
    %180 = arith.truncf %171 : vector<64x8xf32> to vector<64x8xbf16>
    %cst_136 = arith.constant dense<0.000000e+00> : vector<64x64xf32>
    %181 = tpu.matmul %179, %180, %cst_136 {dimension_numbers = #tpu.dot_dimension_numbers<[1], [1], [0], [0], [0, 0, 1, 0], [], []>} : vector<64x8xbf16>, vector<64x8xbf16>, vector<64x64xf32> -> vector<64x64xf32>
    %cst_137 = arith.constant 0.353553385 : f32
    %182 = vector.broadcast %cst_137 : f32 to vector<64x64xf32>
    %183 = arith.mulf %181, %182 : vector<64x64xf32>
    %184 = arith.addf %183, %2 : vector<64x64xf32>
    %cst_138 = arith.constant dense<0xFF800000> : vector<64xf32>
    %185 = vector.multi_reduction <maximumf>, %184, %cst_138 [1] : vector<64x64xf32> to vector<64xf32>
    %186 = vector.shape_cast %185 : vector<64xf32> to vector<64x1xf32>
    %187 = vector.broadcast %186 : vector<64x1xf32> to vector<64x64xf32>
    %188 = arith.subf %184, %187 : vector<64x64xf32>
    %189 = math.exp %188 : vector<64x64xf32>
    %cst_139 = arith.constant dense<0.000000e+00> : vector<64xf32>
    %190 = vector.multi_reduction <add>, %189, %cst_139 [1] : vector<64x64xf32> to vector<64xf32>
    %191 = vector.shape_cast %190 : vector<64xf32> to vector<64x1xf32>
    %192 = tpu.reciprocal %191 {approx = true} : vector<64x1xf32> -> vector<64x1xf32>
    %193 = vector.broadcast %192 : vector<64x1xf32> to vector<64x64xf32>
    %194 = arith.mulf %189, %193 : vector<64x64xf32>
    %195 = arith.truncf %194 : vector<64x64xf32> to vector<64x64xbf16>
    %196 = arith.truncf %178 : vector<64x8xf32> to vector<64x8xbf16>
    %cst_140 = arith.constant dense<0.000000e+00> : vector<64x8xf32>
    %197 = tpu.matmul %195, %196, %cst_140 {dimension_numbers = #tpu.dot_dimension_numbers<[1], [0], [0], [1], [0, 0, 1, 1], [], []>} : vector<64x64xbf16>, vector<64x8xbf16>, vector<64x8xf32> -> vector<64x8xf32>
    %198 = arith.truncf %197 : vector<64x8xf32> to vector<64x8xbf16>
    %c0_141 = arith.constant 0 : index
    %c3_142 = arith.constant 3 : index
    %c0_143 = arith.constant 0 : index
    %c0_144 = arith.constant 0 : index
    %199 = vector.load %arg6[%c0_141, %c3_142, %c0_143, %c0_144] : memref<1x4x8x32xbf16, #tpu.memory_space<vmem>>, vector<1x1x8x32xbf16>
    %200 = vector.shape_cast %199 : vector<1x1x8x32xbf16> to vector<8x32xbf16>
    %cst_145 = arith.constant dense<0.000000e+00> : vector<64x32xf32>
    %201 = tpu.matmul %198, %200, %cst_145 {dimension_numbers = #tpu.dot_dimension_numbers<[1], [0], [0], [1], [0, 0, 1, 1], [], []>} : vector<64x8xbf16>, vector<8x32xbf16>, vector<64x32xf32> -> vector<64x32xf32>
    %202 = arith.addf %157, %201 : vector<64x32xf32>
    %203 = arith.addf %1, %202 : vector<64x32xf32>
    %c0_146 = arith.constant 0 : index
    %c0_147 = arith.constant 0 : index
    %c0_148 = arith.constant 0 : index
    %204 = vector.load %arg7[%c0_146, %c0_147, %c0_148] : memref<1x1x32xf32, #tpu.memory_space<vmem>>, vector<1x1x32xf32>
    %205 = vector.shape_cast %204 : vector<1x1x32xf32> to vector<1x32xf32>
    %206 = vector.broadcast %205 : vector<1x32xf32> to vector<64x32xf32>
    %207 = arith.addf %203, %206 : vector<64x32xf32>
    %c0_149 = arith.constant 0 : index
    %c0_150 = arith.constant 0 : index
    %208 = vector.load %arg3[%c0_149, %c0_150] : memref<64x64xf32, #tpu.memory_space<vmem>>, vector<64x64xf32>
    %cst_151 = arith.constant dense<0.000000e+00> : vector<64xf32>
    %209 = vector.multi_reduction <add>, %207, %cst_151 [1] : vector<64x32xf32> to vector<64xf32>
    %210 = vector.shape_cast %209 : vector<64xf32> to vector<64x1xf32>
    %cst_152 = arith.constant 3.200000e+01 : f32
    %211 = vector.broadcast %cst_152 : f32 to vector<64x1xf32>
    %212 = arith.divf %210, %211 : vector<64x1xf32>
    %213 = vector.broadcast %212 : vector<64x1xf32> to vector<64x32xf32>
    %214 = arith.subf %207, %213 : vector<64x32xf32>
    %215 = arith.mulf %214, %214 : vector<64x32xf32>
    %cst_153 = arith.constant dense<0.000000e+00> : vector<64xf32>
    %216 = vector.multi_reduction <add>, %215, %cst_153 [1] : vector<64x32xf32> to vector<64xf32>
    %217 = vector.shape_cast %216 : vector<64xf32> to vector<64x1xf32>
    %cst_154 = arith.constant 3.200000e+01 : f32
    %218 = vector.broadcast %cst_154 : f32 to vector<64x1xf32>
    %219 = arith.divf %217, %218 : vector<64x1xf32>
    %220 = vector.broadcast %212 : vector<64x1xf32> to vector<64x32xf32>
    %221 = arith.subf %207, %220 : vector<64x32xf32>
    %cst_155 = arith.constant 9.99999974E-6 : f32
    %222 = vector.broadcast %cst_155 : f32 to vector<64x1xf32>
    %223 = arith.addf %219, %222 : vector<64x1xf32>
    %224 = math.rsqrt %223 : vector<64x1xf32>
    %225 = vector.broadcast %224 : vector<64x1xf32> to vector<64x32xf32>
    %226 = arith.mulf %221, %225 : vector<64x32xf32>
    %227 = arith.truncf %226 : vector<64x32xf32> to vector<64x32xbf16>
    %cst_156 = arith.constant 0.000000e+00 : f32
    %228 = vector.broadcast %cst_156 : f32 to vector<64x32xf32>
    %c0_157 = arith.constant 0 : index
    %c0_158 = arith.constant 0 : index
    %c0_159 = arith.constant 0 : index
    %c0_160 = arith.constant 0 : index
    %229 = vector.load %arg8[%c0_157, %c0_158, %c0_159, %c0_160] : memref<1x12x32x8xbf16, #tpu.memory_space<vmem>>, vector<1x1x32x8xbf16>
    %230 = vector.shape_cast %229 : vector<1x1x32x8xbf16> to vector<32x8xbf16>
    %cst_161 = arith.constant dense<0.000000e+00> : vector<64x8xf32>
    %231 = tpu.matmul %227, %230, %cst_161 {dimension_numbers = #tpu.dot_dimension_numbers<[1], [0], [0], [1], [0, 0, 1, 1], [], []>} : vector<64x32xbf16>, vector<32x8xbf16>, vector<64x8xf32> -> vector<64x8xf32>
    %c0_162 = arith.constant 0 : index
    %c0_163 = arith.constant 0 : index
    %c0_164 = arith.constant 0 : index
    %c0_165 = arith.constant 0 : index
    %232 = vector.load %arg9[%c0_162, %c0_163, %c0_164, %c0_165] : memref<1x12x1x8xf32, #tpu.memory_space<vmem>>, vector<1x1x1x8xf32>
    %233 = vector.shape_cast %232 : vector<1x1x1x8xf32> to vector<1x8xf32>
    %234 = vector.broadcast %233 : vector<1x8xf32> to vector<64x8xf32>
    %235 = arith.addf %231, %234 : vector<64x8xf32>
    %c0_166 = arith.constant 0 : index
    %c4_167 = arith.constant 4 : index
    %c0_168 = arith.constant 0 : index
    %c0_169 = arith.constant 0 : index
    %236 = vector.load %arg8[%c0_166, %c4_167, %c0_168, %c0_169] : memref<1x12x32x8xbf16, #tpu.memory_space<vmem>>, vector<1x1x32x8xbf16>
    %237 = vector.shape_cast %236 : vector<1x1x32x8xbf16> to vector<32x8xbf16>
    %cst_170 = arith.constant dense<0.000000e+00> : vector<64x8xf32>
    %238 = tpu.matmul %227, %237, %cst_170 {dimension_numbers = #tpu.dot_dimension_numbers<[1], [0], [0], [1], [0, 0, 1, 1], [], []>} : vector<64x32xbf16>, vector<32x8xbf16>, vector<64x8xf32> -> vector<64x8xf32>
    %c0_171 = arith.constant 0 : index
    %c4_172 = arith.constant 4 : index
    %c0_173 = arith.constant 0 : index
    %c0_174 = arith.constant 0 : index
    %239 = vector.load %arg9[%c0_171, %c4_172, %c0_173, %c0_174] : memref<1x12x1x8xf32, #tpu.memory_space<vmem>>, vector<1x1x1x8xf32>
    %240 = vector.shape_cast %239 : vector<1x1x1x8xf32> to vector<1x8xf32>
    %241 = vector.broadcast %240 : vector<1x8xf32> to vector<64x8xf32>
    %242 = arith.addf %238, %241 : vector<64x8xf32>
    %c0_175 = arith.constant 0 : index
    %c8_176 = arith.constant 8 : index
    %c0_177 = arith.constant 0 : index
    %c0_178 = arith.constant 0 : index
    %243 = vector.load %arg8[%c0_175, %c8_176, %c0_177, %c0_178] : memref<1x12x32x8xbf16, #tpu.memory_space<vmem>>, vector<1x1x32x8xbf16>
    %244 = vector.shape_cast %243 : vector<1x1x32x8xbf16> to vector<32x8xbf16>
    %cst_179 = arith.constant dense<0.000000e+00> : vector<64x8xf32>
    %245 = tpu.matmul %227, %244, %cst_179 {dimension_numbers = #tpu.dot_dimension_numbers<[1], [0], [0], [1], [0, 0, 1, 1], [], []>} : vector<64x32xbf16>, vector<32x8xbf16>, vector<64x8xf32> -> vector<64x8xf32>
    %c0_180 = arith.constant 0 : index
    %c8_181 = arith.constant 8 : index
    %c0_182 = arith.constant 0 : index
    %c0_183 = arith.constant 0 : index
    %246 = vector.load %arg9[%c0_180, %c8_181, %c0_182, %c0_183] : memref<1x12x1x8xf32, #tpu.memory_space<vmem>>, vector<1x1x1x8xf32>
    %247 = vector.shape_cast %246 : vector<1x1x1x8xf32> to vector<1x8xf32>
    %248 = vector.broadcast %247 : vector<1x8xf32> to vector<64x8xf32>
    %249 = arith.addf %245, %248 : vector<64x8xf32>
    %250 = arith.truncf %235 : vector<64x8xf32> to vector<64x8xbf16>
    %251 = arith.truncf %242 : vector<64x8xf32> to vector<64x8xbf16>
    %cst_184 = arith.constant dense<0.000000e+00> : vector<64x64xf32>
    %252 = tpu.matmul %250, %251, %cst_184 {dimension_numbers = #tpu.dot_dimension_numbers<[1], [1], [0], [0], [0, 0, 1, 0], [], []>} : vector<64x8xbf16>, vector<64x8xbf16>, vector<64x64xf32> -> vector<64x64xf32>
    %cst_185 = arith.constant 0.353553385 : f32
    %253 = vector.broadcast %cst_185 : f32 to vector<64x64xf32>
    %254 = arith.mulf %252, %253 : vector<64x64xf32>
    %255 = arith.addf %254, %208 : vector<64x64xf32>
    %cst_186 = arith.constant dense<0xFF800000> : vector<64xf32>
    %256 = vector.multi_reduction <maximumf>, %255, %cst_186 [1] : vector<64x64xf32> to vector<64xf32>
    %257 = vector.shape_cast %256 : vector<64xf32> to vector<64x1xf32>
    %258 = vector.broadcast %257 : vector<64x1xf32> to vector<64x64xf32>
    %259 = arith.subf %255, %258 : vector<64x64xf32>
    %260 = math.exp %259 : vector<64x64xf32>
    %cst_187 = arith.constant dense<0.000000e+00> : vector<64xf32>
    %261 = vector.multi_reduction <add>, %260, %cst_187 [1] : vector<64x64xf32> to vector<64xf32>
    %262 = vector.shape_cast %261 : vector<64xf32> to vector<64x1xf32>
    %263 = tpu.reciprocal %262 {approx = true} : vector<64x1xf32> -> vector<64x1xf32>
    %264 = vector.broadcast %263 : vector<64x1xf32> to vector<64x64xf32>
    %265 = arith.mulf %260, %264 : vector<64x64xf32>
    %266 = arith.truncf %265 : vector<64x64xf32> to vector<64x64xbf16>
    %267 = arith.truncf %249 : vector<64x8xf32> to vector<64x8xbf16>
    %cst_188 = arith.constant dense<0.000000e+00> : vector<64x8xf32>
    %268 = tpu.matmul %266, %267, %cst_188 {dimension_numbers = #tpu.dot_dimension_numbers<[1], [0], [0], [1], [0, 0, 1, 1], [], []>} : vector<64x64xbf16>, vector<64x8xbf16>, vector<64x8xf32> -> vector<64x8xf32>
    %269 = arith.truncf %268 : vector<64x8xf32> to vector<64x8xbf16>
    %c0_189 = arith.constant 0 : index
    %c0_190 = arith.constant 0 : index
    %c0_191 = arith.constant 0 : index
    %c0_192 = arith.constant 0 : index
    %270 = vector.load %arg10[%c0_189, %c0_190, %c0_191, %c0_192] : memref<1x4x8x32xbf16, #tpu.memory_space<vmem>>, vector<1x1x8x32xbf16>
    %271 = vector.shape_cast %270 : vector<1x1x8x32xbf16> to vector<8x32xbf16>
    %cst_193 = arith.constant dense<0.000000e+00> : vector<64x32xf32>
    %272 = tpu.matmul %269, %271, %cst_193 {dimension_numbers = #tpu.dot_dimension_numbers<[1], [0], [0], [1], [0, 0, 1, 1], [], []>} : vector<64x8xbf16>, vector<8x32xbf16>, vector<64x32xf32> -> vector<64x32xf32>
    %273 = arith.addf %228, %272 : vector<64x32xf32>
    %c0_194 = arith.constant 0 : index
    %c1_195 = arith.constant 1 : index
    %c0_196 = arith.constant 0 : index
    %c0_197 = arith.constant 0 : index
    %274 = vector.load %arg8[%c0_194, %c1_195, %c0_196, %c0_197] : memref<1x12x32x8xbf16, #tpu.memory_space<vmem>>, vector<1x1x32x8xbf16>
    %275 = vector.shape_cast %274 : vector<1x1x32x8xbf16> to vector<32x8xbf16>
    %cst_198 = arith.constant dense<0.000000e+00> : vector<64x8xf32>
    %276 = tpu.matmul %227, %275, %cst_198 {dimension_numbers = #tpu.dot_dimension_numbers<[1], [0], [0], [1], [0, 0, 1, 1], [], []>} : vector<64x32xbf16>, vector<32x8xbf16>, vector<64x8xf32> -> vector<64x8xf32>
    %c0_199 = arith.constant 0 : index
    %c1_200 = arith.constant 1 : index
    %c0_201 = arith.constant 0 : index
    %c0_202 = arith.constant 0 : index
    %277 = vector.load %arg9[%c0_199, %c1_200, %c0_201, %c0_202] : memref<1x12x1x8xf32, #tpu.memory_space<vmem>>, vector<1x1x1x8xf32>
    %278 = vector.shape_cast %277 : vector<1x1x1x8xf32> to vector<1x8xf32>
    %279 = vector.broadcast %278 : vector<1x8xf32> to vector<64x8xf32>
    %280 = arith.addf %276, %279 : vector<64x8xf32>
    %c0_203 = arith.constant 0 : index
    %c5_204 = arith.constant 5 : index
    %c0_205 = arith.constant 0 : index
    %c0_206 = arith.constant 0 : index
    %281 = vector.load %arg8[%c0_203, %c5_204, %c0_205, %c0_206] : memref<1x12x32x8xbf16, #tpu.memory_space<vmem>>, vector<1x1x32x8xbf16>
    %282 = vector.shape_cast %281 : vector<1x1x32x8xbf16> to vector<32x8xbf16>
    %cst_207 = arith.constant dense<0.000000e+00> : vector<64x8xf32>
    %283 = tpu.matmul %227, %282, %cst_207 {dimension_numbers = #tpu.dot_dimension_numbers<[1], [0], [0], [1], [0, 0, 1, 1], [], []>} : vector<64x32xbf16>, vector<32x8xbf16>, vector<64x8xf32> -> vector<64x8xf32>
    %c0_208 = arith.constant 0 : index
    %c5_209 = arith.constant 5 : index
    %c0_210 = arith.constant 0 : index
    %c0_211 = arith.constant 0 : index
    %284 = vector.load %arg9[%c0_208, %c5_209, %c0_210, %c0_211] : memref<1x12x1x8xf32, #tpu.memory_space<vmem>>, vector<1x1x1x8xf32>
    %285 = vector.shape_cast %284 : vector<1x1x1x8xf32> to vector<1x8xf32>
    %286 = vector.broadcast %285 : vector<1x8xf32> to vector<64x8xf32>
    %287 = arith.addf %283, %286 : vector<64x8xf32>
    %c0_212 = arith.constant 0 : index
    %c9_213 = arith.constant 9 : index
    %c0_214 = arith.constant 0 : index
    %c0_215 = arith.constant 0 : index
    %288 = vector.load %arg8[%c0_212, %c9_213, %c0_214, %c0_215] : memref<1x12x32x8xbf16, #tpu.memory_space<vmem>>, vector<1x1x32x8xbf16>
    %289 = vector.shape_cast %288 : vector<1x1x32x8xbf16> to vector<32x8xbf16>
    %cst_216 = arith.constant dense<0.000000e+00> : vector<64x8xf32>
    %290 = tpu.matmul %227, %289, %cst_216 {dimension_numbers = #tpu.dot_dimension_numbers<[1], [0], [0], [1], [0, 0, 1, 1], [], []>} : vector<64x32xbf16>, vector<32x8xbf16>, vector<64x8xf32> -> vector<64x8xf32>
    %c0_217 = arith.constant 0 : index
    %c9_218 = arith.constant 9 : index
    %c0_219 = arith.constant 0 : index
    %c0_220 = arith.constant 0 : index
    %291 = vector.load %arg9[%c0_217, %c9_218, %c0_219, %c0_220] : memref<1x12x1x8xf32, #tpu.memory_space<vmem>>, vector<1x1x1x8xf32>
    %292 = vector.shape_cast %291 : vector<1x1x1x8xf32> to vector<1x8xf32>
    %293 = vector.broadcast %292 : vector<1x8xf32> to vector<64x8xf32>
    %294 = arith.addf %290, %293 : vector<64x8xf32>
    %295 = arith.truncf %280 : vector<64x8xf32> to vector<64x8xbf16>
    %296 = arith.truncf %287 : vector<64x8xf32> to vector<64x8xbf16>
    %cst_221 = arith.constant dense<0.000000e+00> : vector<64x64xf32>
    %297 = tpu.matmul %295, %296, %cst_221 {dimension_numbers = #tpu.dot_dimension_numbers<[1], [1], [0], [0], [0, 0, 1, 0], [], []>} : vector<64x8xbf16>, vector<64x8xbf16>, vector<64x64xf32> -> vector<64x64xf32>
    %cst_222 = arith.constant 0.353553385 : f32
    %298 = vector.broadcast %cst_222 : f32 to vector<64x64xf32>
    %299 = arith.mulf %297, %298 : vector<64x64xf32>
    %300 = arith.addf %299, %208 : vector<64x64xf32>
    %cst_223 = arith.constant dense<0xFF800000> : vector<64xf32>
    %301 = vector.multi_reduction <maximumf>, %300, %cst_223 [1] : vector<64x64xf32> to vector<64xf32>
    %302 = vector.shape_cast %301 : vector<64xf32> to vector<64x1xf32>
    %303 = vector.broadcast %302 : vector<64x1xf32> to vector<64x64xf32>
    %304 = arith.subf %300, %303 : vector<64x64xf32>
    %305 = math.exp %304 : vector<64x64xf32>
    %cst_224 = arith.constant dense<0.000000e+00> : vector<64xf32>
    %306 = vector.multi_reduction <add>, %305, %cst_224 [1] : vector<64x64xf32> to vector<64xf32>
    %307 = vector.shape_cast %306 : vector<64xf32> to vector<64x1xf32>
    %308 = tpu.reciprocal %307 {approx = true} : vector<64x1xf32> -> vector<64x1xf32>
    %309 = vector.broadcast %308 : vector<64x1xf32> to vector<64x64xf32>
    %310 = arith.mulf %305, %309 : vector<64x64xf32>
    %311 = arith.truncf %310 : vector<64x64xf32> to vector<64x64xbf16>
    %312 = arith.truncf %294 : vector<64x8xf32> to vector<64x8xbf16>
    %cst_225 = arith.constant dense<0.000000e+00> : vector<64x8xf32>
    %313 = tpu.matmul %311, %312, %cst_225 {dimension_numbers = #tpu.dot_dimension_numbers<[1], [0], [0], [1], [0, 0, 1, 1], [], []>} : vector<64x64xbf16>, vector<64x8xbf16>, vector<64x8xf32> -> vector<64x8xf32>
    %314 = arith.truncf %313 : vector<64x8xf32> to vector<64x8xbf16>
    %c0_226 = arith.constant 0 : index
    %c1_227 = arith.constant 1 : index
    %c0_228 = arith.constant 0 : index
    %c0_229 = arith.constant 0 : index
    %315 = vector.load %arg10[%c0_226, %c1_227, %c0_228, %c0_229] : memref<1x4x8x32xbf16, #tpu.memory_space<vmem>>, vector<1x1x8x32xbf16>
    %316 = vector.shape_cast %315 : vector<1x1x8x32xbf16> to vector<8x32xbf16>
    %cst_230 = arith.constant dense<0.000000e+00> : vector<64x32xf32>
    %317 = tpu.matmul %314, %316, %cst_230 {dimension_numbers = #tpu.dot_dimension_numbers<[1], [0], [0], [1], [0, 0, 1, 1], [], []>} : vector<64x8xbf16>, vector<8x32xbf16>, vector<64x32xf32> -> vector<64x32xf32>
    %318 = arith.addf %273, %317 : vector<64x32xf32>
    %c0_231 = arith.constant 0 : index
    %c2_232 = arith.constant 2 : index
    %c0_233 = arith.constant 0 : index
    %c0_234 = arith.constant 0 : index
    %319 = vector.load %arg8[%c0_231, %c2_232, %c0_233, %c0_234] : memref<1x12x32x8xbf16, #tpu.memory_space<vmem>>, vector<1x1x32x8xbf16>
    %320 = vector.shape_cast %319 : vector<1x1x32x8xbf16> to vector<32x8xbf16>
    %cst_235 = arith.constant dense<0.000000e+00> : vector<64x8xf32>
    %321 = tpu.matmul %227, %320, %cst_235 {dimension_numbers = #tpu.dot_dimension_numbers<[1], [0], [0], [1], [0, 0, 1, 1], [], []>} : vector<64x32xbf16>, vector<32x8xbf16>, vector<64x8xf32> -> vector<64x8xf32>
    %c0_236 = arith.constant 0 : index
    %c2_237 = arith.constant 2 : index
    %c0_238 = arith.constant 0 : index
    %c0_239 = arith.constant 0 : index
    %322 = vector.load %arg9[%c0_236, %c2_237, %c0_238, %c0_239] : memref<1x12x1x8xf32, #tpu.memory_space<vmem>>, vector<1x1x1x8xf32>
    %323 = vector.shape_cast %322 : vector<1x1x1x8xf32> to vector<1x8xf32>
    %324 = vector.broadcast %323 : vector<1x8xf32> to vector<64x8xf32>
    %325 = arith.addf %321, %324 : vector<64x8xf32>
    %c0_240 = arith.constant 0 : index
    %c6_241 = arith.constant 6 : index
    %c0_242 = arith.constant 0 : index
    %c0_243 = arith.constant 0 : index
    %326 = vector.load %arg8[%c0_240, %c6_241, %c0_242, %c0_243] : memref<1x12x32x8xbf16, #tpu.memory_space<vmem>>, vector<1x1x32x8xbf16>
    %327 = vector.shape_cast %326 : vector<1x1x32x8xbf16> to vector<32x8xbf16>
    %cst_244 = arith.constant dense<0.000000e+00> : vector<64x8xf32>
    %328 = tpu.matmul %227, %327, %cst_244 {dimension_numbers = #tpu.dot_dimension_numbers<[1], [0], [0], [1], [0, 0, 1, 1], [], []>} : vector<64x32xbf16>, vector<32x8xbf16>, vector<64x8xf32> -> vector<64x8xf32>
    %c0_245 = arith.constant 0 : index
    %c6_246 = arith.constant 6 : index
    %c0_247 = arith.constant 0 : index
    %c0_248 = arith.constant 0 : index
    %329 = vector.load %arg9[%c0_245, %c6_246, %c0_247, %c0_248] : memref<1x12x1x8xf32, #tpu.memory_space<vmem>>, vector<1x1x1x8xf32>
    %330 = vector.shape_cast %329 : vector<1x1x1x8xf32> to vector<1x8xf32>
    %331 = vector.broadcast %330 : vector<1x8xf32> to vector<64x8xf32>
    %332 = arith.addf %328, %331 : vector<64x8xf32>
    %c0_249 = arith.constant 0 : index
    %c10_250 = arith.constant 10 : index
    %c0_251 = arith.constant 0 : index
    %c0_252 = arith.constant 0 : index
    %333 = vector.load %arg8[%c0_249, %c10_250, %c0_251, %c0_252] : memref<1x12x32x8xbf16, #tpu.memory_space<vmem>>, vector<1x1x32x8xbf16>
    %334 = vector.shape_cast %333 : vector<1x1x32x8xbf16> to vector<32x8xbf16>
    %cst_253 = arith.constant dense<0.000000e+00> : vector<64x8xf32>
    %335 = tpu.matmul %227, %334, %cst_253 {dimension_numbers = #tpu.dot_dimension_numbers<[1], [0], [0], [1], [0, 0, 1, 1], [], []>} : vector<64x32xbf16>, vector<32x8xbf16>, vector<64x8xf32> -> vector<64x8xf32>
    %c0_254 = arith.constant 0 : index
    %c10_255 = arith.constant 10 : index
    %c0_256 = arith.constant 0 : index
    %c0_257 = arith.constant 0 : index
    %336 = vector.load %arg9[%c0_254, %c10_255, %c0_256, %c0_257] : memref<1x12x1x8xf32, #tpu.memory_space<vmem>>, vector<1x1x1x8xf32>
    %337 = vector.shape_cast %336 : vector<1x1x1x8xf32> to vector<1x8xf32>
    %338 = vector.broadcast %337 : vector<1x8xf32> to vector<64x8xf32>
    %339 = arith.addf %335, %338 : vector<64x8xf32>
    %340 = arith.truncf %325 : vector<64x8xf32> to vector<64x8xbf16>
    %341 = arith.truncf %332 : vector<64x8xf32> to vector<64x8xbf16>
    %cst_258 = arith.constant dense<0.000000e+00> : vector<64x64xf32>
    %342 = tpu.matmul %340, %341, %cst_258 {dimension_numbers = #tpu.dot_dimension_numbers<[1], [1], [0], [0], [0, 0, 1, 0], [], []>} : vector<64x8xbf16>, vector<64x8xbf16>, vector<64x64xf32> -> vector<64x64xf32>
    %cst_259 = arith.constant 0.353553385 : f32
    %343 = vector.broadcast %cst_259 : f32 to vector<64x64xf32>
    %344 = arith.mulf %342, %343 : vector<64x64xf32>
    %345 = arith.addf %344, %208 : vector<64x64xf32>
    %cst_260 = arith.constant dense<0xFF800000> : vector<64xf32>
    %346 = vector.multi_reduction <maximumf>, %345, %cst_260 [1] : vector<64x64xf32> to vector<64xf32>
    %347 = vector.shape_cast %346 : vector<64xf32> to vector<64x1xf32>
    %348 = vector.broadcast %347 : vector<64x1xf32> to vector<64x64xf32>
    %349 = arith.subf %345, %348 : vector<64x64xf32>
    %350 = math.exp %349 : vector<64x64xf32>
    %cst_261 = arith.constant dense<0.000000e+00> : vector<64xf32>
    %351 = vector.multi_reduction <add>, %350, %cst_261 [1] : vector<64x64xf32> to vector<64xf32>
    %352 = vector.shape_cast %351 : vector<64xf32> to vector<64x1xf32>
    %353 = tpu.reciprocal %352 {approx = true} : vector<64x1xf32> -> vector<64x1xf32>
    %354 = vector.broadcast %353 : vector<64x1xf32> to vector<64x64xf32>
    %355 = arith.mulf %350, %354 : vector<64x64xf32>
    %356 = arith.truncf %355 : vector<64x64xf32> to vector<64x64xbf16>
    %357 = arith.truncf %339 : vector<64x8xf32> to vector<64x8xbf16>
    %cst_262 = arith.constant dense<0.000000e+00> : vector<64x8xf32>
    %358 = tpu.matmul %356, %357, %cst_262 {dimension_numbers = #tpu.dot_dimension_numbers<[1], [0], [0], [1], [0, 0, 1, 1], [], []>} : vector<64x64xbf16>, vector<64x8xbf16>, vector<64x8xf32> -> vector<64x8xf32>
    %359 = arith.truncf %358 : vector<64x8xf32> to vector<64x8xbf16>
    %c0_263 = arith.constant 0 : index
    %c2_264 = arith.constant 2 : index
    %c0_265 = arith.constant 0 : index
    %c0_266 = arith.constant 0 : index
    %360 = vector.load %arg10[%c0_263, %c2_264, %c0_265, %c0_266] : memref<1x4x8x32xbf16, #tpu.memory_space<vmem>>, vector<1x1x8x32xbf16>
    %361 = vector.shape_cast %360 : vector<1x1x8x32xbf16> to vector<8x32xbf16>
    %cst_267 = arith.constant dense<0.000000e+00> : vector<64x32xf32>
    %362 = tpu.matmul %359, %361, %cst_267 {dimension_numbers = #tpu.dot_dimension_numbers<[1], [0], [0], [1], [0, 0, 1, 1], [], []>} : vector<64x8xbf16>, vector<8x32xbf16>, vector<64x32xf32> -> vector<64x32xf32>
    %363 = arith.addf %318, %362 : vector<64x32xf32>
    %c0_268 = arith.constant 0 : index
    %c3_269 = arith.constant 3 : index
    %c0_270 = arith.constant 0 : index
    %c0_271 = arith.constant 0 : index
    %364 = vector.load %arg8[%c0_268, %c3_269, %c0_270, %c0_271] : memref<1x12x32x8xbf16, #tpu.memory_space<vmem>>, vector<1x1x32x8xbf16>
    %365 = vector.shape_cast %364 : vector<1x1x32x8xbf16> to vector<32x8xbf16>
    %cst_272 = arith.constant dense<0.000000e+00> : vector<64x8xf32>
    %366 = tpu.matmul %227, %365, %cst_272 {dimension_numbers = #tpu.dot_dimension_numbers<[1], [0], [0], [1], [0, 0, 1, 1], [], []>} : vector<64x32xbf16>, vector<32x8xbf16>, vector<64x8xf32> -> vector<64x8xf32>
    %c0_273 = arith.constant 0 : index
    %c3_274 = arith.constant 3 : index
    %c0_275 = arith.constant 0 : index
    %c0_276 = arith.constant 0 : index
    %367 = vector.load %arg9[%c0_273, %c3_274, %c0_275, %c0_276] : memref<1x12x1x8xf32, #tpu.memory_space<vmem>>, vector<1x1x1x8xf32>
    %368 = vector.shape_cast %367 : vector<1x1x1x8xf32> to vector<1x8xf32>
    %369 = vector.broadcast %368 : vector<1x8xf32> to vector<64x8xf32>
    %370 = arith.addf %366, %369 : vector<64x8xf32>
    %c0_277 = arith.constant 0 : index
    %c7_278 = arith.constant 7 : index
    %c0_279 = arith.constant 0 : index
    %c0_280 = arith.constant 0 : index
    %371 = vector.load %arg8[%c0_277, %c7_278, %c0_279, %c0_280] : memref<1x12x32x8xbf16, #tpu.memory_space<vmem>>, vector<1x1x32x8xbf16>
    %372 = vector.shape_cast %371 : vector<1x1x32x8xbf16> to vector<32x8xbf16>
    %cst_281 = arith.constant dense<0.000000e+00> : vector<64x8xf32>
    %373 = tpu.matmul %227, %372, %cst_281 {dimension_numbers = #tpu.dot_dimension_numbers<[1], [0], [0], [1], [0, 0, 1, 1], [], []>} : vector<64x32xbf16>, vector<32x8xbf16>, vector<64x8xf32> -> vector<64x8xf32>
    %c0_282 = arith.constant 0 : index
    %c7_283 = arith.constant 7 : index
    %c0_284 = arith.constant 0 : index
    %c0_285 = arith.constant 0 : index
    %374 = vector.load %arg9[%c0_282, %c7_283, %c0_284, %c0_285] : memref<1x12x1x8xf32, #tpu.memory_space<vmem>>, vector<1x1x1x8xf32>
    %375 = vector.shape_cast %374 : vector<1x1x1x8xf32> to vector<1x8xf32>
    %376 = vector.broadcast %375 : vector<1x8xf32> to vector<64x8xf32>
    %377 = arith.addf %373, %376 : vector<64x8xf32>
    %c0_286 = arith.constant 0 : index
    %c11_287 = arith.constant 11 : index
    %c0_288 = arith.constant 0 : index
    %c0_289 = arith.constant 0 : index
    %378 = vector.load %arg8[%c0_286, %c11_287, %c0_288, %c0_289] : memref<1x12x32x8xbf16, #tpu.memory_space<vmem>>, vector<1x1x32x8xbf16>
    %379 = vector.shape_cast %378 : vector<1x1x32x8xbf16> to vector<32x8xbf16>
    %cst_290 = arith.constant dense<0.000000e+00> : vector<64x8xf32>
    %380 = tpu.matmul %227, %379, %cst_290 {dimension_numbers = #tpu.dot_dimension_numbers<[1], [0], [0], [1], [0, 0, 1, 1], [], []>} : vector<64x32xbf16>, vector<32x8xbf16>, vector<64x8xf32> -> vector<64x8xf32>
    %c0_291 = arith.constant 0 : index
    %c11_292 = arith.constant 11 : index
    %c0_293 = arith.constant 0 : index
    %c0_294 = arith.constant 0 : index
    %381 = vector.load %arg9[%c0_291, %c11_292, %c0_293, %c0_294] : memref<1x12x1x8xf32, #tpu.memory_space<vmem>>, vector<1x1x1x8xf32>
    %382 = vector.shape_cast %381 : vector<1x1x1x8xf32> to vector<1x8xf32>
    %383 = vector.broadcast %382 : vector<1x8xf32> to vector<64x8xf32>
    %384 = arith.addf %380, %383 : vector<64x8xf32>
    %385 = arith.truncf %370 : vector<64x8xf32> to vector<64x8xbf16>
    %386 = arith.truncf %377 : vector<64x8xf32> to vector<64x8xbf16>
    %cst_295 = arith.constant dense<0.000000e+00> : vector<64x64xf32>
    %387 = tpu.matmul %385, %386, %cst_295 {dimension_numbers = #tpu.dot_dimension_numbers<[1], [1], [0], [0], [0, 0, 1, 0], [], []>} : vector<64x8xbf16>, vector<64x8xbf16>, vector<64x64xf32> -> vector<64x64xf32>
    %cst_296 = arith.constant 0.353553385 : f32
    %388 = vector.broadcast %cst_296 : f32 to vector<64x64xf32>
    %389 = arith.mulf %387, %388 : vector<64x64xf32>
    %390 = arith.addf %389, %208 : vector<64x64xf32>
    %cst_297 = arith.constant dense<0xFF800000> : vector<64xf32>
    %391 = vector.multi_reduction <maximumf>, %390, %cst_297 [1] : vector<64x64xf32> to vector<64xf32>
    %392 = vector.shape_cast %391 : vector<64xf32> to vector<64x1xf32>
    %393 = vector.broadcast %392 : vector<64x1xf32> to vector<64x64xf32>
    %394 = arith.subf %390, %393 : vector<64x64xf32>
    %395 = math.exp %394 : vector<64x64xf32>
    %cst_298 = arith.constant dense<0.000000e+00> : vector<64xf32>
    %396 = vector.multi_reduction <add>, %395, %cst_298 [1] : vector<64x64xf32> to vector<64xf32>
    %397 = vector.shape_cast %396 : vector<64xf32> to vector<64x1xf32>
    %398 = tpu.reciprocal %397 {approx = true} : vector<64x1xf32> -> vector<64x1xf32>
    %399 = vector.broadcast %398 : vector<64x1xf32> to vector<64x64xf32>
    %400 = arith.mulf %395, %399 : vector<64x64xf32>
    %401 = arith.truncf %400 : vector<64x64xf32> to vector<64x64xbf16>
    %402 = arith.truncf %384 : vector<64x8xf32> to vector<64x8xbf16>
    %cst_299 = arith.constant dense<0.000000e+00> : vector<64x8xf32>
    %403 = tpu.matmul %401, %402, %cst_299 {dimension_numbers = #tpu.dot_dimension_numbers<[1], [0], [0], [1], [0, 0, 1, 1], [], []>} : vector<64x64xbf16>, vector<64x8xbf16>, vector<64x8xf32> -> vector<64x8xf32>
    %404 = arith.truncf %403 : vector<64x8xf32> to vector<64x8xbf16>
    %c0_300 = arith.constant 0 : index
    %c3_301 = arith.constant 3 : index
    %c0_302 = arith.constant 0 : index
    %c0_303 = arith.constant 0 : index
    %405 = vector.load %arg10[%c0_300, %c3_301, %c0_302, %c0_303] : memref<1x4x8x32xbf16, #tpu.memory_space<vmem>>, vector<1x1x8x32xbf16>
    %406 = vector.shape_cast %405 : vector<1x1x8x32xbf16> to vector<8x32xbf16>
    %cst_304 = arith.constant dense<0.000000e+00> : vector<64x32xf32>
    %407 = tpu.matmul %404, %406, %cst_304 {dimension_numbers = #tpu.dot_dimension_numbers<[1], [0], [0], [1], [0, 0, 1, 1], [], []>} : vector<64x8xbf16>, vector<8x32xbf16>, vector<64x32xf32> -> vector<64x32xf32>
    %408 = arith.addf %363, %407 : vector<64x32xf32>
    %409 = arith.addf %207, %408 : vector<64x32xf32>
    %c0_305 = arith.constant 0 : index
    %c0_306 = arith.constant 0 : index
    %c0_307 = arith.constant 0 : index
    %410 = vector.load %arg11[%c0_305, %c0_306, %c0_307] : memref<1x1x32xf32, #tpu.memory_space<vmem>>, vector<1x1x32xf32>
    %411 = vector.shape_cast %410 : vector<1x1x32xf32> to vector<1x32xf32>
    %412 = vector.broadcast %411 : vector<1x32xf32> to vector<64x32xf32>
    %413 = arith.addf %409, %412 : vector<64x32xf32>
    %cst_308 = arith.constant dense<0.000000e+00> : vector<64xf32>
    %414 = vector.multi_reduction <add>, %413, %cst_308 [1] : vector<64x32xf32> to vector<64xf32>
    %415 = vector.shape_cast %414 : vector<64xf32> to vector<64x1xf32>
    %cst_309 = arith.constant 3.200000e+01 : f32
    %416 = vector.broadcast %cst_309 : f32 to vector<64x1xf32>
    %417 = arith.divf %415, %416 : vector<64x1xf32>
    %418 = vector.broadcast %417 : vector<64x1xf32> to vector<64x32xf32>
    %419 = arith.subf %413, %418 : vector<64x32xf32>
    %420 = arith.mulf %419, %419 : vector<64x32xf32>
    %cst_310 = arith.constant dense<0.000000e+00> : vector<64xf32>
    %421 = vector.multi_reduction <add>, %420, %cst_310 [1] : vector<64x32xf32> to vector<64xf32>
    %422 = vector.shape_cast %421 : vector<64xf32> to vector<64x1xf32>
    %cst_311 = arith.constant 3.200000e+01 : f32
    %423 = vector.broadcast %cst_311 : f32 to vector<64x1xf32>
    %424 = arith.divf %422, %423 : vector<64x1xf32>
    %425 = vector.broadcast %417 : vector<64x1xf32> to vector<64x32xf32>
    %426 = arith.subf %413, %425 : vector<64x32xf32>
    %cst_312 = arith.constant 9.99999974E-6 : f32
    %427 = vector.broadcast %cst_312 : f32 to vector<64x1xf32>
    %428 = arith.addf %424, %427 : vector<64x1xf32>
    %429 = math.rsqrt %428 : vector<64x1xf32>
    %430 = vector.broadcast %429 : vector<64x1xf32> to vector<64x32xf32>
    %431 = arith.mulf %426, %430 : vector<64x32xf32>
    %432 = arith.truncf %431 : vector<64x32xf32> to vector<64x32xbf16>
    %c0_313 = arith.constant 0 : index
    %c0_314 = arith.constant 0 : index
    %c0_315 = arith.constant 0 : index
    %433 = vector.load %arg12[%c0_313, %c0_314, %c0_315] : memref<1x32x64xbf16, #tpu.memory_space<vmem>>, vector<1x32x64xbf16>
    %434 = vector.shape_cast %433 : vector<1x32x64xbf16> to vector<32x64xbf16>
    %cst_316 = arith.constant dense<0.000000e+00> : vector<64x64xf32>
    %435 = tpu.matmul %432, %434, %cst_316 {dimension_numbers = #tpu.dot_dimension_numbers<[1], [0], [0], [1], [0, 0, 1, 1], [], []>} : vector<64x32xbf16>, vector<32x64xbf16>, vector<64x64xf32> -> vector<64x64xf32>
    %c0_317 = arith.constant 0 : index
    %c0_318 = arith.constant 0 : index
    %c0_319 = arith.constant 0 : index
    %436 = vector.load %arg13[%c0_317, %c0_318, %c0_319] : memref<1x1x64xf32, #tpu.memory_space<vmem>>, vector<1x1x64xf32>
    %437 = vector.shape_cast %436 : vector<1x1x64xf32> to vector<1x64xf32>
    %438 = vector.broadcast %437 : vector<1x64xf32> to vector<64x64xf32>
    %439 = arith.addf %435, %438 : vector<64x64xf32>
    %cst_320 = arith.constant 5.000000e-01 : f32
    %440 = vector.broadcast %cst_320 : f32 to vector<64x64xf32>
    %441 = arith.mulf %440, %439 : vector<64x64xf32>
    %cst_321 = arith.constant 4.471500e-02 : f32
    %442 = vector.broadcast %cst_321 : f32 to vector<64x64xf32>
    %443 = arith.mulf %442, %439 : vector<64x64xf32>
    %444 = arith.mulf %443, %439 : vector<64x64xf32>
    %445 = arith.mulf %444, %439 : vector<64x64xf32>
    %446 = arith.addf %439, %445 : vector<64x64xf32>
    %cst_322 = arith.constant 0.797884583 : f32
    %447 = vector.broadcast %cst_322 : f32 to vector<64x64xf32>
    %448 = arith.mulf %447, %446 : vector<64x64xf32>
    %449 = math.tanh %448 : vector<64x64xf32>
    %cst_323 = arith.constant 1.000000e+00 : f32
    %450 = vector.broadcast %cst_323 : f32 to vector<64x64xf32>
    %451 = arith.addf %450, %449 : vector<64x64xf32>
    %452 = arith.mulf %441, %451 : vector<64x64xf32>
    %453 = arith.truncf %452 : vector<64x64xf32> to vector<64x64xbf16>
    %c0_324 = arith.constant 0 : index
    %c0_325 = arith.constant 0 : index
    %c0_326 = arith.constant 0 : index
    %454 = vector.load %arg14[%c0_324, %c0_325, %c0_326] : memref<1x64x32xbf16, #tpu.memory_space<vmem>>, vector<1x64x32xbf16>
    %455 = vector.shape_cast %454 : vector<1x64x32xbf16> to vector<64x32xbf16>
    %cst_327 = arith.constant dense<0.000000e+00> : vector<64x32xf32>
    %456 = tpu.matmul %453, %455, %cst_327 {dimension_numbers = #tpu.dot_dimension_numbers<[1], [0], [0], [1], [0, 0, 1, 1], [], []>} : vector<64x64xbf16>, vector<64x32xbf16>, vector<64x32xf32> -> vector<64x32xf32>
    %457 = arith.addf %413, %456 : vector<64x32xf32>
    %c0_328 = arith.constant 0 : index
    %c0_329 = arith.constant 0 : index
    %c0_330 = arith.constant 0 : index
    %458 = vector.load %arg15[%c0_328, %c0_329, %c0_330] : memref<1x1x32xf32, #tpu.memory_space<vmem>>, vector<1x1x32xf32>
    %459 = vector.shape_cast %458 : vector<1x1x32xf32> to vector<1x32xf32>
    %460 = vector.broadcast %459 : vector<1x32xf32> to vector<64x32xf32>
    %461 = arith.addf %457, %460 : vector<64x32xf32>
    %c0_331 = arith.constant 0 : index
    %c0_332 = arith.constant 0 : index
    %c0_333 = arith.constant 0 : index
    %462 = vector.load %arg16[%c0_331, %c0_332, %c0_333] : memref<1x64x32xf32, #tpu.memory_space<vmem>>, vector<1x64x32xf32>
    %463 = vector.shape_cast %462 : vector<1x64x32xf32> to vector<64x32xf32>
    %464 = vector.shape_cast %461 : vector<64x32xf32> to vector<1x64x32xf32>
    tpu.vector_store %arg16[%c0_331, %c0_332, %c0_333], %464 {strides = array<i32>} : memref<1x64x32xf32, #tpu.memory_space<vmem>>, vector<1x64x32xf32>,
    return
  }
  func.func @transform_0(%arg0: i32) -> (i32, i32, i32) {
    %c0_i32 = arith.constant 0 : i32
    %c0_i32_0 = arith.constant 0 : i32
    %c0_i32_1 = arith.constant 0 : i32
    return %arg0, %c0_i32, %c0_i32_0 : i32, i32, i32
  }
  func.func @transform_1(%arg0: i32) -> (i32, i32) {
    %c0_i32 = arith.constant 0 : i32
    %c0_i32_0 = arith.constant 0 : i32
    %c0_i32_1 = arith.constant 0 : i32
    return %c0_i32, %c0_i32_0 : i32, i32
  }
  func.func @transform_2(%arg0: i32) -> (i32, i32) {
    %c0_i32 = arith.constant 0 : i32
    %c0_i32_0 = arith.constant 0 : i32
    %c0_i32_1 = arith.constant 0 : i32
    return %c0_i32, %c0_i32_0 : i32, i32
  }
  func.func @transform_3(%arg0: i32) -> (i32, i32, i32, i32) {
    %c0_i32 = arith.constant 0 : i32
    %c0_i32_0 = arith.constant 0 : i32
    %c0_i32_1 = arith.constant 0 : i32
    %c0_i32_2 = arith.constant 0 : i32
    return %arg0, %c0_i32, %c0_i32_0, %c0_i32_1 : i32, i32, i32, i32
  }
  func.func @transform_4(%arg0: i32) -> (i32, i32, i32, i32) {
    %c0_i32 = arith.constant 0 : i32
    %c0_i32_0 = arith.constant 0 : i32
    %c0_i32_1 = arith.constant 0 : i32
    %c0_i32_2 = arith.constant 0 : i32
    return %arg0, %c0_i32, %c0_i32_0, %c0_i32_1 : i32, i32, i32, i32
  }
  func.func @transform_5(%arg0: i32) -> (i32, i32, i32, i32) {
    %c0_i32 = arith.constant 0 : i32
    %c0_i32_0 = arith.constant 0 : i32
    %c0_i32_1 = arith.constant 0 : i32
    %c0_i32_2 = arith.constant 0 : i32
    return %arg0, %c0_i32, %c0_i32_0, %c0_i32_1 : i32, i32, i32, i32
  }
  func.func @transform_6(%arg0: i32) -> (i32, i32, i32) {
    %c0_i32 = arith.constant 0 : i32
    %c0_i32_0 = arith.constant 0 : i32
    %c0_i32_1 = arith.constant 0 : i32
    return %arg0, %c0_i32, %c0_i32_0 : i32, i32, i32
  }
  func.func @transform_7(%arg0: i32) -> (i32, i32, i32, i32) {
    %c0_i32 = arith.constant 0 : i32
    %c0_i32_0 = arith.constant 0 : i32
    %c0_i32_1 = arith.constant 0 : i32
    %c0_i32_2 = arith.constant 0 : i32
    return %arg0, %c0_i32, %c0_i32_0, %c0_i32_1 : i32, i32, i32, i32
  }
  func.func @transform_8(%arg0: i32) -> (i32, i32, i32, i32) {
    %c0_i32 = arith.constant 0 : i32
    %c0_i32_0 = arith.constant 0 : i32
    %c0_i32_1 = arith.constant 0 : i32
    %c0_i32_2 = arith.constant 0 : i32
    return %arg0, %c0_i32, %c0_i32_0, %c0_i32_1 : i32, i32, i32, i32
  }
  func.func @transform_9(%arg0: i32) -> (i32, i32, i32, i32) {
    %c0_i32 = arith.constant 0 : i32
    %c0_i32_0 = arith.constant 0 : i32
    %c0_i32_1 = arith.constant 0 : i32
    %c0_i32_2 = arith.constant 0 : i32
    return %arg0, %c0_i32, %c0_i32_0, %c0_i32_1 : i32, i32, i32, i32
  }
  func.func @transform_10(%arg0: i32) -> (i32, i32, i32) {
    %c0_i32 = arith.constant 0 : i32
    %c0_i32_0 = arith.constant 0 : i32
    %c0_i32_1 = arith.constant 0 : i32
    return %arg0, %c0_i32, %c0_i32_0 : i32, i32, i32
  }
  func.func @transform_11(%arg0: i32) -> (i32, i32, i32) {
    %c0_i32 = arith.constant 0 : i32
    %c0_i32_0 = arith.constant 0 : i32
    %c0_i32_1 = arith.constant 0 : i32
    return %arg0, %c0_i32, %c0_i32_0 : i32, i32, i32
  }
  func.func @transform_12(%arg0: i32) -> (i32, i32, i32) {
    %c0_i32 = arith.constant 0 : i32
    %c0_i32_0 = arith.constant 0 : i32
    %c0_i32_1 = arith.constant 0 : i32
    return %arg0, %c0_i32, %c0_i32_0 : i32, i32, i32
  }
  func.func @transform_13(%arg0: i32) -> (i32, i32, i32) {
    %c0_i32 = arith.constant 0 : i32
    %c0_i32_0 = arith.constant 0 : i32
    %c0_i32_1 = arith.constant 0 : i32
    return %arg0, %c0_i32, %c0_i32_0 : i32, i32, i32
  }
  func.func @transform_14(%arg0: i32) -> (i32, i32, i32) {
    %c0_i32 = arith.constant 0 : i32
    %c0_i32_0 = arith.constant 0 : i32
    %c0_i32_1 = arith.constant 0 : i32
    return %arg0, %c0_i32, %c0_i32_0 : i32, i32, i32
  }
  func.func @transform_15(%arg0: i32) -> (i32, i32, i32) {
    %c0_i32 = arith.constant 0 : i32
    %c0_i32_0 = arith.constant 0 : i32
    %c0_i32_1 = arith.constant 0 : i32
    return %arg0, %c0_i32, %c0_i32_0 : i32, i32, i32
  }
}

</mosaic_0001>

<bundles_post_ra>
// kernel: ensemble_forward.4
= control target key start
LH: loop header
LB: loop body
LE: loop exit
PB: predicated region body
PF: predicated region fallthrough
CT: control target
= control target key end

     0   :  { %s403_s12 = smov 0   ;;  %s485_s0 = inlined_call_operand.vmem [shape: f32[64,1], index: 0, kind: input, shape index: {}]   ;;  %s486_s1 = inlined_call_operand.vmem [shape: f32[2,64,32], index: 1, kind: input, shape index: {}]   ;;  %s487_s2 = inlined_call_operand.vmem [shape: f32[2,64,32], index: 2, kind: input, shape index: {}]   ;;  %s488_s3 = inlined_call_operand.vmem [shape: f32[2,64,32], index: 3, kind: output, shape index: {}]  }
   0x1 LB: > { %s347_s13 = sadd.s32 4294967295, %s380_s12   ;;  %p351_p0 = scmp.ge.s32.totalorder %s380_s12, 1  ;;  %s380_s12 = sphi %s403_s12, %s13_s12  }
   0x2   : > { %p147_p1 = scmp.lt.s32.totalorder %s380_s12, 3 }
   0x4   : > { %p148_p2 = pnand %p351_p0, %p147_p1 }
   0x5   : > { %v193_v0 = vld [vmem:[%s485_s0 + $0x10] sm:$0xff] (!%p148_p2)  ;;  %v191_v1 = vld [vmem:[%s485_s0] sm:$0xff] (!%p148_p2)  ;;  %v382_v2 = vmov (!%p148_p2), 0   ;;  %v194_v3 = vld [vmem:[%s485_s0 + $0x18] sm:$0xff] (!%p148_p2)  ;;  %p176_p3 = scmp.lt.s32.totalorder (!%p148_p2), %s347_s13, 1  ;;  %vm271_vm0 = vcmask (!%p148_p2), 261120  }
   0x6   : > { %151 = sbr.rel (%p148_p2) target bundleno = 152 (0x98), region = 32  ;;  %373 = vset.pattern.permute.xlu1 (!%p148_p2), %v382_v2  ;;  %372 = vset.pattern.permute.xlu0 (!%p148_p2), %v382_v2  ;;  %v192_v4 = vld [vmem:[%s485_s0 + $0x8] sm:$0xff] (!%p148_p2)  ;;  %v195_v6 = vld [vmem:[%s485_s0 + $0x20] sm:$0xff] (!%p148_p2)  ;;  %v198_v7 = vld [vmem:[%s485_s0 + $0x38] sm:$0xff] (!%p148_p2) }
   0x7   : > { %219 = vperm.xlu1 (!%p148_p2), %373, %v193_v0   ;;  %209 = vperm.xlu0 (!%p148_p2), %372, %v191_v1   ;;  %v196_v5 = vld [vmem:[%s485_s0 + $0x28] sm:$0xff] (!%p148_p2)  ;;  %v197_v8 = vld [vmem:[%s485_s0 + $0x30] sm:$0xff] (!%p148_p2) }
   0xb   : > { %224 = vperm.xlu1 (!%p148_p2), %373, %v194_v3   ;;  %214 = vperm.xlu0 (!%p148_p2), %372, %v192_v4  }
   0xd   : > { %s490_s13 = smov (!%p176_p3, %s347_s13), 1 }
   0xe   : > { %s360_s30 = sshll.u32 %s490_s13, 6 }
   0xf   : > { %234 = vperm.xlu1 %373, %v196_v5   ;;  %229 = vperm.xlu0 %372, %v195_v6   ;;  %s438_s6 = scalar_lea.vmem %s486_s1, %s360_s30  ;;  %s443_s9 = scalar_lea.vmem %s487_s2, %s360_s30 }
  0x10   : > { %v201_v9 = vld [vmem:[%s438_s6 + $0x10] sm:$0xff]  ;;  %v199_v10 = vld [vmem:[%s438_s6] sm:$0xff]  ;;  %s452_s13 = scalar_lea.vmem %s488_s3, %s360_s30  ;;  %v202_v17 = vld [vmem:[%s438_s6 + $0x18] sm:$0xff] }
  0x11   : > { %v257_v12 = vld [vmem:[%s443_s9 + $0x10] sm:$0xff]  ;;  %v255_v14 = vld [vmem:[%s443_s9] sm:$0xff]  ;;  %v200_v18 = vld [vmem:[%s438_s6 + $0x8] sm:$0xff] }
  0x12   : > { %v258_v22 = vld [vmem:[%s443_s9 + $0x18] sm:$0xff]  ;;  %v256_v24 = vld [vmem:[%s443_s9 + $0x8] sm:$0xff]  ;;  %v203_v28 = vld [vmem:[%s438_s6 + $0x20] sm:$0xff] }
  0x13   : > { %244 = vperm.xlu1 %373, %v198_v7   ;;  %239 = vperm.xlu0 %372, %v197_v8   ;;  %v204_v27 = vld [vmem:[%s438_s6 + $0x28] sm:$0xff]  ;;  %v259_v34 = vld [vmem:[%s443_s9 + $0x20] sm:$0xff]  ;;  %v206_v37 = vld [vmem:[%s438_s6 + $0x38] sm:$0xff] }
  0x14   : > { %v260_v32 = vld [vmem:[%s443_s9 + $0x28] sm:$0xff]  ;;  %v205_v38 = vld [vmem:[%s438_s6 + $0x30] sm:$0xff]  ;;  %v262_v42 = vld [vmem:[%s443_s9 + $0x38] sm:$0xff] }
  0x15   : > { %v261_v44 = vld [vmem:[%s443_s9 + $0x30] sm:$0xff] }
  0x86   : > { %v220_v11 = vpop.permute.xlu1 %219  ;;  %v210_v13 = vpop.permute.xlu0 %209 }
  0x87   : > { %v249_v15 = vmul.f32 %v220_v11, %v201_v9  ;;  %v247_v16 = vmul.f32 %v210_v13, %v199_v10 }
  0x89   : > { %v265_v19 = vadd.f32 %v257_v12, %v249_v15  ;;  %v263_v20 = vadd.f32 %v255_v14, %v247_v16 }
  0x8a   : > { %v225_v21 = vpop.permute.xlu1 %224  ;;  %v215_v23 = vpop.permute.xlu0 %214 }
  0x8b   : > { %274 = vst.msk [vmem:[%s452_s13 + $0x10] sm:$0xff] %vm271_vm0, %v265_v19  ;;  %272 = vst.msk [vmem:[%s452_s13] sm:$0xff] %vm271_vm0, %v263_v20  ;;  %v250_v25 = vmul.f32 %v225_v21, %v202_v17  ;;  %v248_v26 = vmul.f32 %v215_v23, %v200_v18 }
  0x8d   : > { %v266_v29 = vadd.f32 %v258_v22, %v250_v25  ;;  %v264_v30 = vadd.f32 %v256_v24, %v248_v26 }
  0x8e   : > { %v235_v31 = vpop.permute.xlu1 %234  ;;  %v230_v33 = vpop.permute.xlu0 %229 }
  0x8f   : > { %275 = vst.msk [vmem:[%s452_s13 + $0x18] sm:$0xff] %vm271_vm0, %v266_v29  ;;  %273 = vst.msk [vmem:[%s452_s13 + $0x8] sm:$0xff] %vm271_vm0, %v264_v30  ;;  %v252_v35 = vmul.f32 %v235_v31, %v204_v27  ;;  %v251_v36 = vmul.f32 %v230_v33, %v203_v28 }
  0x91   : > { %v268_v39 = vadd.f32 %v260_v32, %v252_v35  ;;  %v267_v40 = vadd.f32 %v259_v34, %v251_v36 }
  0x92   : > { %v245_v41 = vpop.permute.xlu1 %244  ;;  %v240_v43 = vpop.permute.xlu0 %239 }
  0x93   : > { %277 = vst.msk [vmem:[%s452_s13 + $0x28] sm:$0xff] %vm271_vm0, %v268_v39  ;;  %276 = vst.msk [vmem:[%s452_s13 + $0x20] sm:$0xff] %vm271_vm0, %v267_v40  ;;  %v254_v45 = vmul.f32 %v245_v41, %v206_v37  ;;  %v253_v46 = vmul.f32 %v240_v43, %v205_v38 }
  0x95   : > { %v270_v47 = vadd.f32 %v262_v42, %v254_v45  ;;  %v269_v48 = vadd.f32 %v261_v44, %v253_v46 }
  0x97   : > { %279 = vst.msk [vmem:[%s452_s13 + $0x38] sm:$0xff] %vm271_vm0, %v270_v47  ;;  %278 = vst.msk [vmem:[%s452_s13 + $0x30] sm:$0xff] %vm271_vm0, %v269_v48 }
  0x98 PF: > { %s13_s12 = sadd.s32 1, %s380_s12  }
  0x99   : > { %p10_p4 = scmp.ge.s32.totalorder %s13_s12, 4  }
  0x9b   :  { %12 = sbr.rel (!%p10_p4) target bundleno = 1 (0x1), region = 65 }

// kernel: ensemble_forward.7
= control target key start
LH: loop header
LB: loop body
LE: loop exit
PB: predicated region body
PF: predicated region fallthrough
CT: control target
= control target key end

     0   :  { %s659_s18 = smov 0   ;;  %s699_s0 = inlined_call_operand.vmem [shape: f32[2,4,32], index: 0, kind: input, shape index: {}]   ;;  %s700_s1 = inlined_call_operand.vmem [shape: bf16[2,32,64], index: 1, kind: input, shape index: {}]   ;;  %s701_s2 = inlined_call_operand.vmem [shape: f32[2,1,64], index: 2, kind: input, shape index: {}]   ;;  %s702_s3 = inlined_call_operand.vmem [shape: bf16[2,64,4], index: 3, kind: input, shape index: {}]   ;;  %s703_s4 = inlined_call_operand.vmem [shape: f32[2,1,4], index: 4, kind: input, shape index: {}]   ;;  %s704_s5 = inlined_call_operand.vmem [shape: f32[2,4,4], index: 5, kind: output, shape index: {}]  }
   0x1 LB: > { %s548_s19 = sadd.s32 4294967295, %s625_s18   ;;  %p552_p0 = scmp.ge.s32.totalorder %s625_s18, 1  ;;  %s625_s18 = sphi %s659_s18, %s15_s18  }
   0x2   : > { %p222_p1 = scmp.lt.s32.totalorder %s625_s18, 3 }
   0x4   : > { %p223_p2 = pnand %p552_p0, %p222_p1 }
   0x5   : > { %p264_p3 = scmp.lt.s32.totalorder (!%p223_p2), %s548_s19, 1  ;;  %v627_v0 = vmov (!%p223_p2), 0.0   ;;  %vm628_vm0 = vmmov (!%p223_p2), 0   ;;  %vm314_vm1 = vcmask (!%p223_p2), 261120   ;;  %vm407_vm2 = vcmask (!%p223_p2), 523264  }
   0x6   : > { %226 = sbr.rel (%p223_p2) target bundleno = 480 (0x1e0), region = 40  ;;  %581 = vmatprep.subr.bf16.mxu0 (!%p223_p2), %v627_v0  ;;  %585 = vmatprep.mubr.msk.bf16.mxu0 (!%p223_p2), %vm628_vm0, %v627_v0  ;;  %vm451_vm3 = vcmask (!%p223_p2), 27648  }
   0x7   : > { %589 = vmatprep.subr.bf16.mxu1 (!%p223_p2), %v627_v0  ;;  %597 = vmatprep.mubr.msk.bf16.mxu1 (!%p223_p2), %vm628_vm0, %v627_v0 }
   0xd   : > { %s706_s19 = smov (!%p264_p3, %s548_s19), 1 }
   0xe   : > { %s571_s20 = sshll.u32 %s706_s19, 4  ;;  %s553_s21 = sshll.u32 %s706_s19, 2 }
   0xf   : > { %s272_s24 = scalar_lea.vmem %s700_s1, %s571_s20  ;;  %s267_s27 = scalar_lea.vmem %s699_s0, %s553_s21 }
  0x10   : > { %v611_v1 = vld [vmem:[%s272_s24] sm:$0xff]   ;;  %v612_v2 = vld [vmem:[%s272_s24 + $0x8] sm:$0xff]   ;;  %s572_s28 = sshll.u32 %s706_s19, 5  ;;  %s275_s9 = scalar_lea.vmem %s701_s2, %s706_s19 }
  0x11   : > { %582 = vmatpush3.bf16.msra.mxu0 %v611_v1  ;;  %v289_v3 = vld [vmem:[%s267_s27] sm:$0xf]  ;;  %s280_s6 = scalar_lea.vmem %s702_s3, %s572_s28  ;;  %s283_s12 = scalar_lea.vmem %s703_s4, %s706_s19 }
  0x12   : > { %583 = vmatprep.subr.bf16.mxu0 %v627_v0  ;;  %v290_v4 = vpack.c.bf16 %v289_v3, %v289_v3  ;;  %v613_v5 = vld [vmem:[%s280_s6] sm:$0xff]   ;;  %v614_v6 = vld [vmem:[%s280_s6 + $0x8] sm:$0xff]   ;;  %v615_v7 = vld [vmem:[%s280_s6 + $0x10] sm:$0xff]   ;;  %s287_s15 = scalar_lea.vmem %s704_s5, %s553_s21 }
  0x13   : > { %590 = vmatpush3.bf16.msra.mxu1 %v613_v5  ;;  %v616_v8 = vld [vmem:[%s280_s6 + $0x18] sm:$0xff]   ;;  %v559_v9 = vld [vmem:[%s275_s9] ss:$0 sm:$0xff] }
  0x14   : > { %591 = vmatprep.subr.bf16.mxu1 %v627_v0  ;;  %v563_v25 = vld [vmem:[%s283_s12] ss:$0 sm:$0xff] }
  0x15   : > { %584 = vmatpush3.bf16.msra.mxu0 %v612_v2 }
  0x17   : > { %592 = vmatpush3.bf16.msra.mxu1 %v614_v6 }
  0x18   : > { %586 = vmatmul.mubr.msk.bf16.vlgmr.msra.gmra.mrb[0].mxu0 %vm314_vm1, %v290_v4  ;;  %593 = vmatprep.subr.bf16.mxu1 %v627_v0 }
  0x1b   : > { %594 = vmatpush3.bf16.msra.mxu1 %v615_v7 }
  0x1c   : > { %595 = vmatprep.subr.bf16.mxu1 %v627_v0 }
  0x1f   : > { %596 = vmatpush3.bf16.msra.mxu1 %v616_v8 }
  0xeb   : > { %v352_v10 = vpop.f32.mrb[0].mxu0 }
  0xec   : > { %v353_v11 = vadd.f32 %v559_v9, %v352_v10  ;;  %v587_v12 = vpop.f32.mrb[1].mxu0 }
  0xed   : > { %v355_v13 = vpop.f32.mrb[2].mxu0 }
  0xee   : > { %v359_v14 = vmul.f32 0.044715, %v353_v11  ;;  %v588_v15 = vpop.f32.mrb[3].mxu0  ;;  %v358_v21 = vmul.f32 0.5, %v353_v11 }
  0xf0   : > { %v360_v16 = vmul.f32 %v359_v14, %v353_v11 }
  0xf2   : > { %v361_v17 = vmul.f32 %v360_v16, %v353_v11 }
  0xf4   : > { %v362_v18 = vadd.f32 %v361_v17, %v353_v11 }
  0xf6   : > { %v363_v19 = vmul.f32 0.7978846, %v362_v18 }
  0xf8   : > { %617 = vtanh.f32 %v363_v19 }
 0x102   : > { %v618_v20 = vpop.eup %617 }
 0x103   : > { %v365_v22 = vadd.f32 1.0, %v618_v20 }
 0x105   : > { %v366_v23 = vmul.f32 %v365_v22, %v358_v21 }
 0x107   : > { %v367_v24 = vpack.c.bf16 %v366_v23, %v366_v23 }
 0x109   : > { %598 = vmatmul.mubr.msk.bf16.vlgmr.msra.gmra.mrb[0].mxu1 %vm407_vm2, %v367_v24 }
 0x1dc   : > { %v445_v26 = vpop.f32.mrb[0].mxu1 }
 0x1dd   : > { %v446_v27 = vadd.f32 %v563_v25, %v445_v26  ;;  %v599_v28 = vpop.f32.mrb[1].mxu1 }
 0x1de   : > { %v448_v29 = vpop.f32.mrb[2].mxu1 }
 0x1df   : > { %452 = vst.msk [vmem:[%s287_s15] sm:$0xf] %vm451_vm3, %v446_v27  ;;  %v600_v30 = vpop.f32.mrb[3].mxu1 }
 0x1e0 PF: > { %s15_s18 = sadd.s32 1, %s625_s18  }
 0x1e1   : > { %p12_p4 = scmp.ge.s32.totalorder %s15_s18, 4  }
 0x1e3   :  { %14 = sbr.rel (!%p12_p4) target bundleno = 1 (0x1), region = 82 }

// kernel: ensemble_forward.5
= control target key start
LH: loop header
LB: loop body
LE: loop exit
PB: predicated region body
PF: predicated region fallthrough
CT: control target
= control target key end

     0   :  { %s8781_s18 = smov 0   ;;  %s10452_s0 = inlined_call_operand.vmem [shape: f32[2,64,32], index: 0, kind: input, shape index: {}]   ;;  %s10453_s1 = inlined_call_operand.vmem [shape: f32[64,64], index: 1, kind: input, shape index: {}]   ;;  %s10454_s2 = inlined_call_operand.vmem [shape: f32[64,64], index: 2, kind: input, shape index: {}]   ;;  %s10455_s3 = inlined_call_operand.vmem [shape: bf16[2,12,32,8], index: 3, kind: input, shape index: {}]   ;;  %s10456_s4 = inlined_call_operand.vmem [shape: f32[2,12,1,8], index: 4, kind: input, shape index: {}]   ;;  %s10457_s5 = inlined_call_operand.vmem [shape: bf16[2,4,8,32], index: 5, kind: input, shape index: {}]   ;;  %s10458_s6 = inlined_call_operand.vmem [shape: f32[2,1,32], index: 6, kind: input, shape index: {}]   ;;  %s10459_s7 = inlined_call_operand.vmem [shape: bf16[2,12,32,8], index: 7, kind: input, shape index: {}]   ;;  %s10460_s8 = inlined_call_operand.vmem [shape: f32[2,12,1,8], index: 8, kind: input, shape index: {}]   ;;  %s10461_s9 = inlined_call_operand.vmem [shape: bf16[2,4,8,32], index: 9, kind: input, shape index: {}]   ;;  %s10462_s10 = inlined_call_operand.vmem [shape: f32[2,1,32], index: 10, kind: input, shape index: {}]   ;;  %s10463_s11 = inlined_call_operand.vmem [shape: bf16[2,32,64], index: 11, kind: input, shape index: {}]   ;;  %s10464_s12 = inlined_call_operand.vmem [shape: f32[2,1,64], index: 12, kind: input, shape index: {}]   ;;  %s10465_s13 = inlined_call_operand.vmem [shape: bf16[2,64,32], index: 13, kind: input, shape index: {}]   ;;  %s10466_s14 = inlined_call_operand.vmem [shape: f32[2,1,32], index: 14, kind: input, shape index: {}]   ;;  %s10467_s15 = inlined_call_operand.vmem [shape: f32[2,64,32], index: 15, kind: output, shape index: {}]  }
   0x1 LB: > { %s6794_s19 = sadd.s32 4294967295, %s8699_s18   ;;  %p6798_p0 = scmp.ge.s32.totalorder %s8699_s18, 1  ;;  %s8699_s18 = sphi %s8781_s18, %s25_s18  }
   0x2   : > { %p547_p1 = scmp.lt.s32.totalorder %s8699_s18, 3 }
   0x4   : > { %p548_p2 = pnand %p6798_p0, %p547_p1 }
   0x6   : > { %551 = sbr.rel (%p548_p2) target bundleno = 8479 (0x211f), region = 80 }
   0xd   : > { %p645_p3 = scmp.lt.s32.totalorder %s6794_s19, 1  ;;  %vm722_vm0 = vcmask 261120   ;;  %vm1120_vm1 = vcmask 64512   ;;  %vm1226_vm2 = vcmask 523264   ;;  %vm1979_vm3 = vcmask 1043456  }
   0xf   : > { %s10481_s19 = smov (!%p645_p3, %s6794_s19), 1 }
  0x10   : > { %s7213_s20 = sshll.u32 %s10481_s19, 6  ;;  %s8285_s21 = smul.u32 192, %s10481_s19 }
  0x11   : > { %s8798_s24 = scalar_lea.vmem %s10452_s0, %s7213_s20  ;;  %s8286_s16 = smul.u32 12, %s10481_s19 }
  0x12   : > { %v706_v0 = vld [vmem:[%s8798_s24] sm:$0xff]  ;;  %v708_v1 = vld [vmem:[%s8798_s24 + $0x10] sm:$0xff]  ;;  %v707_v2 = vld [vmem:[%s8798_s24 + $0x8] sm:$0xff]  ;;  %s8811_s27 = scalar_lea.vmem %s10455_s3, %s8285_s21  ;;  %s8824_s30 = scalar_lea.vmem %s10459_s7, %s8285_s21 }
  0x13   : > { %v723_v3 = vsel %vm722_vm0, %v706_v0, 0.0  ;;  %v729_v4 = vsel %vm722_vm0, %v708_v1, 0.0  ;;  %v709_v5 = vld [vmem:[%s8798_s24 + $0x18] sm:$0xff]  ;;  %v710_v6 = vld [vmem:[%s8798_s24 + $0x20] sm:$0xff]  ;;  %v711_v7 = vld [vmem:[%s8798_s24 + $0x28] sm:$0xff]  ;;  %v726_v8 = vsel %vm722_vm0, %v707_v2, 0.0  ;;  %s8918_s22 = scalar_lea.vmem %s10456_s4, %s8286_s16  ;;  %s666_s23 = scalar_lea.vmem %s10458_s6, %s10481_s19 }
  0x14   : > { %724 = vadd.xlane.f32.xlu0 %v723_v3  ;;  %730 = vadd.xlane.f32.xlu1 %v729_v4  ;;  %v732_v9 = vsel %vm722_vm0, %v709_v5, 0.0  ;;  %v735_v10 = vsel %vm722_vm0, %v710_v6, 0.0  ;;  %v738_v11 = vsel %vm722_vm0, %v711_v7, 0.0  ;;  %v712_v12 = vld [vmem:[%s8798_s24 + $0x30] sm:$0xff]  ;;  %v713_v13 = vld [vmem:[%s8798_s24 + $0x38] sm:$0xff]  ;;  %v8295_v56 = vld [vmem:[%s8811_s27] sm:$0xff]   ;;  %s9663_s28 = scalar_lea.vmem %s10460_s8, %s8286_s16 }
  0x15   : > { %v741_v14 = vsel %vm722_vm0, %v712_v12, 0.0  ;;  %v744_v15 = vsel %vm722_vm0, %v713_v13, 0.0  ;;  %v8296_v57 = vld [vmem:[%s8811_s27 + $0x40] sm:$0xff]   ;;  %7545 = vmatprep.subr.bf16.mxu0 %v8295_v56  ;;  %v8297_v58 = vld [vmem:[%s8811_s27 + $0x8] sm:$0xff]   ;;  %s9325_s26 = sshll.u32 %s10481_s19, 4 }
  0x16   : > { %7557 = vmatprep.subr.bf16.mxu1 %v8296_v57  ;;  %7546 = vmatpush3.bf16.msra.mxu0 %v8295_v56  ;;  %v8298_v59 = vld [vmem:[%s8811_s27 + $0x48] sm:$0xff]   ;;  %v8299_v60 = vld [vmem:[%s8811_s27 + $0x80] sm:$0xff]   ;;  %s9331_s17 = scalar_lea.vmem %s10457_s5, %s9325_s26  ;;  %s10073_s16 = scalar_lea.vmem %s10461_s9, %s9325_s26 }
  0x17   : > { %7558 = vmatpush3.bf16.msra.mxu1 %v8296_v57  ;;  %7547 = vmatprep.subr.bf16.mxu0 %v8297_v58 }
  0x18   : > { %727 = vadd.xlane.f32.xlu0 %v726_v8  ;;  %733 = vadd.xlane.f32.xlu1 %v732_v9 }
  0x19   : > { %7559 = vmatprep.subr.bf16.mxu1 %v8298_v59 }
  0x1a   : > { %7548 = vmatpush3.bf16.msra.mxu0 %v8297_v58 }
  0x1b   : > { %7560 = vmatpush3.bf16.msra.mxu1 %v8298_v59  ;;  %7569 = vmatprep.subr.bf16.mxu0 %v8299_v60 }
  0x1c   : > { %736 = vadd.xlane.f32.xlu0 %v735_v10  ;;  %739 = vadd.xlane.f32.xlu1 %v738_v11 }
  0x20   : > { %742 = vadd.xlane.f32.xlu0 %v741_v14  ;;  %745 = vadd.xlane.f32.xlu1 %v744_v15 }
  0xa1   : > { %v725_v16 = vpop.xlane.xlu0 %724  ;;  %v731_v17 = vpop.xlane.xlu1 %730 }
  0xa2   : > { %v748_v18 = vmul.f32 0.03125, %v725_v16  ;;  %v750_v19 = vmul.f32 0.03125, %v731_v17 }
  0xa4   : > { %v8826_v20 = vsub.f32 %v706_v0, %v748_v18  ;;  %v8828_v21 = vsub.f32 %v708_v1, %v750_v19 }
  0xa5   : > { %v728_v22 = vpop.xlane.xlu0 %727  ;;  %v734_v23 = vpop.xlane.xlu1 %733 }
  0xa6   : > { %v749_v24 = vmul.f32 0.03125, %v728_v22  ;;  %v751_v25 = vmul.f32 0.03125, %v734_v23  ;;  %v764_v26 = vmul.f32 %v8826_v20, %v8826_v20  ;;  %v766_v27 = vmul.f32 %v8828_v21, %v8828_v21 }
  0xa8   : > { %v8834_v28 = vsub.f32 %v707_v2, %v749_v24  ;;  %v8836_v29 = vsub.f32 %v709_v5, %v751_v25  ;;  %v772_v30 = vsel %vm722_vm0, %v764_v26, 0.0  ;;  %v778_v33 = vsel %vm722_vm0, %v766_v27, 0.0 }
  0xa9   : > { %773 = vadd.xlane.f32.xlu0 %v772_v30  ;;  %v737_v31 = vpop.xlane.xlu0 %736  ;;  %v740_v32 = vpop.xlane.xlu1 %739 }
  0xaa   : > { %v752_v34 = vmul.f32 0.03125, %v737_v31  ;;  %v753_v35 = vmul.f32 0.03125, %v740_v32  ;;  %v765_v36 = vmul.f32 %v8834_v28, %v8834_v28  ;;  %v767_v37 = vmul.f32 %v8836_v29, %v8836_v29 }
  0xac   : > { %v8844_v38 = vsub.f32 %v710_v6, %v752_v34  ;;  %v8846_v39 = vsub.f32 %v711_v7, %v753_v35  ;;  %v775_v40 = vsel %vm722_vm0, %v765_v36, 0.0  ;;  %v781_v43 = vsel %vm722_vm0, %v767_v37, 0.0 }
  0xad   : > { %779 = vadd.xlane.f32.xlu0 %v778_v33  ;;  %776 = vadd.xlane.f32.xlu1 %v775_v40  ;;  %v743_v41 = vpop.xlane.xlu0 %742  ;;  %v746_v42 = vpop.xlane.xlu1 %745 }
  0xae   : > { %v754_v44 = vmul.f32 0.03125, %v743_v41  ;;  %v755_v45 = vmul.f32 0.03125, %v746_v42  ;;  %v768_v46 = vmul.f32 %v8844_v38, %v8844_v38  ;;  %v769_v47 = vmul.f32 %v8846_v39, %v8846_v39 }
  0xb0   : > { %v8854_v48 = vsub.f32 %v712_v12, %v754_v44  ;;  %v8856_v49 = vsub.f32 %v713_v13, %v755_v45  ;;  %v784_v50 = vsel %vm722_vm0, %v768_v46, 0.0  ;;  %v787_v51 = vsel %vm722_vm0, %v769_v47, 0.0  ;;  %v6825_v45 = vld [vmem:[%s8918_s22 + $0x4] ss:$0 sm:$0xff] }
  0xb1   : > { %782 = vadd.xlane.f32.xlu1 %v781_v43  ;;  %785 = vadd.xlane.f32.xlu0 %v784_v50  ;;  %v6813_v43 = vld [vmem:[%s8918_s22] ss:$0 sm:$0xff] }
  0xb2   : > { %v770_v52 = vmul.f32 %v8854_v48, %v8854_v48  ;;  %v771_v53 = vmul.f32 %v8856_v49, %v8856_v49 }
  0xb4   : > { %v790_v54 = vsel %vm722_vm0, %v770_v52, 0.0  ;;  %v793_v55 = vsel %vm722_vm0, %v771_v53, 0.0 }
  0xb5   : > { %788 = vadd.xlane.f32.xlu1 %v787_v51  ;;  %791 = vadd.xlane.f32.xlu0 %v790_v54 }
  0xb9   : > { %794 = vadd.xlane.f32.xlu1 %v793_v55 }
 0x136   : > { %v774_v61 = vpop.xlane.xlu0 %773 }
 0x137   : > { %v796_v62 = vmul.f32 0.03125, %v774_v61 }
 0x139   : > { %v804_v63 = vadd.f32 1e-05, %v796_v62 }
 0x13a   : > { %v777_v0 = vpop.xlane.xlu1 %776  ;;  %v780_v1 = vpop.xlane.xlu0 %779 }
 0x13b   : > { %v797_v2 = vmul.f32 0.03125, %v777_v0  ;;  %v798_v3 = vmul.f32 0.03125, %v780_v1  ;;  %8349 = vrsqrt.f32 %v804_v63 }
 0x13d   : > { %v805_v4 = vadd.f32 1e-05, %v797_v2  ;;  %v806_v5 = vadd.f32 1e-05, %v798_v3 }
 0x13e   : > { %v783_v6 = vpop.xlane.xlu1 %782  ;;  %v786_v7 = vpop.xlane.xlu0 %785 }
 0x13f   : > { %8351 = vrsqrt.f32 %v805_v4  ;;  %v799_v8 = vmul.f32 0.03125, %v783_v6  ;;  %v800_v9 = vmul.f32 0.03125, %v786_v7 }
 0x140   : > { %8353 = vrsqrt.f32 %v806_v5 }
 0x141   : > { %v807_v10 = vadd.f32 1e-05, %v799_v8  ;;  %v808_v11 = vadd.f32 1e-05, %v800_v9 }
 0x142   : > { %v789_v12 = vpop.xlane.xlu1 %788  ;;  %v792_v13 = vpop.xlane.xlu0 %791 }
 0x143   : > { %8355 = vrsqrt.f32 %v807_v10  ;;  %v801_v14 = vmul.f32 0.03125, %v789_v12  ;;  %v802_v15 = vmul.f32 0.03125, %v792_v13 }
 0x144   : > { %8357 = vrsqrt.f32 %v808_v11 }
 0x145   : > { %v809_v16 = vadd.f32 1e-05, %v801_v14  ;;  %v810_v17 = vadd.f32 1e-05, %v802_v15  ;;  %v8350_v19 = vpop.eup %8349 }
 0x146   : > { %v795_v18 = vpop.xlane.xlu1 %794  ;;  %v820_v25 = vmul.f32 %v8350_v19, %v8826_v20  ;;  %v8300_v20 = vld [vmem:[%s8811_s27 + $0x88] sm:$0xff]  }
 0x147   : > { %8359 = vrsqrt.f32 %v809_v16  ;;  %v803_v22 = vmul.f32 0.03125, %v795_v18 }
 0x148   : > { %8361 = vrsqrt.f32 %v810_v17 }
 0x149   : > { %v8352_v23 = vpop.eup %8351  ;;  %v811_v24 = vadd.f32 1e-05, %v803_v22 }
 0x14a   : > { %v821_v26 = vmul.f32 %v8352_v23, %v8834_v28  ;;  %v8354_v27 = vpop.eup %8353 }
 0x14b   : > { %8363 = vrsqrt.f32 %v811_v24  ;;  %v822_v32 = vmul.f32 %v8354_v27, %v8828_v21  ;;  %v6837_v24 = vld [vmem:[%s8918_s22 + $0x8] ss:$0 sm:$0xff] }
 0x14c   : > { %v8873_v30 = vpack.c.bf16 %v821_v26, %v820_v25 }
 0x14d   : > { %v8356_v31 = vpop.eup %8355 }
 0x14e   : > { %v823_v33 = vmul.f32 %v8356_v31, %v8836_v29  ;;  %7549 = vmatprep.mubr.msk.bf16.mxu0 %vm722_vm0, %v8873_v30  ;;  %7561 = vmatprep.mubr.msk.bf16.mxu1 %vm722_vm0, %v8873_v30  ;;  %v8358_v34 = vpop.eup %8357 }
 0x14f   : > { %v824_v36 = vmul.f32 %v8358_v34, %v8844_v38 }
 0x150   : > { %v8881_v35 = vpack.c.bf16 %v823_v33, %v822_v32 }
 0x151   : > { %v8360_v28 = vpop.eup %8359 }
 0x152   : > { %v825_v37 = vmul.f32 %v8360_v28, %v8846_v39  ;;  %7550 = vmatmul.mubr.msk.bf16.vlgmr.msra.gmra.mrb[0].mxu0 %vm722_vm0, %v8881_v35  ;;  %7562 = vmatmul.mubr.msk.bf16.vlgmr.msra.gmra.mrb[0].mxu1 %vm722_vm0, %v8881_v35  ;;  %v8362_v21 = vpop.eup %8361 }
 0x153   : > { %7570 = vmatpush3.bf16.msra.mxu0 %v8299_v60  ;;  %v826_v41 = vmul.f32 %v8362_v21, %v8854_v48 }
 0x154   : > { %v8890_v29 = vpack.c.bf16 %v825_v37, %v824_v36  ;;  %7571 = vmatprep.subr.bf16.mxu0 %v8300_v20 }
 0x155   : > { %v8364_v40 = vpop.eup %8363 }
 0x156   : > { %v827_v38 = vmul.f32 %v8364_v40, %v8856_v49  ;;  %7553 = vmatprep.mubr.msk.bf16.mxu0 %vm722_vm0, %v8890_v29  ;;  %7565 = vmatprep.mubr.msk.bf16.mxu1 %vm722_vm0, %v8890_v29 }
 0x157   : > { %7572 = vmatpush3.bf16.msra.mxu0 %v8300_v20 }
 0x158   : > { %v8898_v39 = vpack.c.bf16 %v827_v38, %v826_v41 }
 0x15a   : > { %7554 = vmatmul.mubr.msk.bf16.gmra.mrb[4].mxu0 %vm722_vm0, %v8898_v39  ;;  %7566 = vmatmul.mubr.msk.bf16.gmra.mrb[4].mxu1 %vm722_vm0, %v8898_v39 }
 0x15b   : > { %7573 = vmatprep.mubr.msk.bf16.mxu0 %vm722_vm0, %v8873_v30 }
 0x162   : > { %7574 = vmatmul.mubr.msk.bf16.vlgmr.msra.gmra.mrb[8].mxu0 %vm722_vm0, %v8881_v35 }
 0x163   : > { %7577 = vmatprep.mubr.msk.bf16.mxu0 %vm722_vm0, %v8890_v29 }
 0x16a   : > { %7578 = vmatmul.mubr.msk.bf16.gmra.mrb[12].mxu0 %vm722_vm0, %v8898_v39 }
 0x225   : > { %v7551_v42 = vpop.f32.mrb[0].mxu0  ;;  %v7563_v44 = vpop.f32.mrb[0].mxu1 }
 0x226   : > { %v901_v46 = vpop.f32.mrb[1].mxu0  ;;  %v991_v47 = vpop.f32.mrb[1].mxu1  ;;  %v8922_v50 = vadd.f32 %v7551_v42, %v6813_v43  ;;  %v1000_v51 = vadd.f32 %v7563_v44, %v6825_v45 }
 0x227   : > { %v7552_v48 = vpop.f32.mrb[2].mxu0  ;;  %v7564_v49 = vpop.f32.mrb[2].mxu1  ;;  %v902_v56 = vadd.f32 %v6813_v43, %v901_v46  ;;  %v992_v57 = vadd.f32 %v6825_v45, %v991_v47 }
 0x228   : > { %v8924_v52 = vadd.f32 %v7552_v48, %v6813_v43  ;;  %v1003_v53 = vadd.f32 %v7564_v49, %v6825_v45  ;;  %v904_v54 = vpop.f32.mrb[3].mxu0  ;;  %v994_v55 = vpop.f32.mrb[3].mxu1  ;;  %v8301_v48 = vld [vmem:[%s8811_s27 + $0x50] sm:$0xff]  }
 0x229   : > { %v905_v58 = vadd.f32 %v6813_v43, %v904_v54  ;;  %v995_v59 = vadd.f32 %v6825_v45, %v994_v55 }
 0x22a   : > { %v1113_v60 = vpack.c.bf16 %v8924_v52, %v8922_v50  ;;  %v1117_v61 = vpack.c.bf16 %v1003_v53, %v1000_v51  ;;  %v8302_v51 = vld [vmem:[%s8811_s27 + $0x58] sm:$0xff]   ;;  %v8957_v53 = vld [vmem:[%s10453_s1] sm:$0xff] }
 0x22b   : > { %v1112_v62 = vpack.c.bf16 %v905_v58, %v902_v56  ;;  %v1116_v63 = vpack.c.bf16 %v995_v59, %v992_v57  ;;  %v8962_v58 = vld [vmem:[%s10453_s1 + $0x8] sm:$0xff]  ;;  %v8967_v59 = vld [vmem:[%s10453_s1 + $0x10] sm:$0xff] }
 0x22c   : > { %v1137_v25 = vsel %vm1120_vm1, %v1117_v61, 0 }
 0x22d   : > { %v7555_v0 = vpop.f32.mrb[4].mxu0  ;;  %v7567_v1 = vpop.f32.mrb[4].mxu1  ;;  %8245 = vmatprep.subr.msk.bf16.mxu1 %vm1120_vm1, %v1116_v63  ;;  %7589 = vmatprep.mubr.msk.bf16.mxu1 %vm1120_vm1, %v1112_v62  ;;  %v1134_v2 = vsel %vm1120_vm1, %v1116_v63, 0  ;;  %v8975_v63 = vld [vmem:[%s10453_s1 + $0x18] sm:$0xff] }
 0x22e   : > { %v917_v3 = vpop.f32.mrb[5].mxu0  ;;  %v1007_v4 = vpop.f32.mrb[5].mxu1  ;;  %7582 = vmatpush3.bf16.xpose.msra.mxu1 %v1134_v2  ;;  %v926_v7 = vadd.f32 %v7555_v0, %v6813_v43  ;;  %v1016_v8 = vadd.f32 %v7567_v1, %v6825_v45 }
 0x22f   : > { %v7556_v5 = vpop.f32.mrb[6].mxu0  ;;  %v7568_v6 = vpop.f32.mrb[6].mxu1  ;;  %8246 = vmatprep.subr.msk.bf16.mxu1 %vm1120_vm1, %v1117_v61  ;;  %v918_v13 = vadd.f32 %v6813_v43, %v917_v3  ;;  %v1008_v14 = vadd.f32 %v6825_v45, %v1007_v4 }
 0x230   : > { %v929_v9 = vadd.f32 %v7556_v5, %v6813_v43  ;;  %v1019_v10 = vadd.f32 %v7568_v6, %v6825_v45  ;;  %v920_v11 = vpop.f32.mrb[7].mxu0  ;;  %v1010_v12 = vpop.f32.mrb[7].mxu1 }
 0x231   : > { %v921_v15 = vadd.f32 %v6813_v43, %v920_v11  ;;  %v1011_v16 = vadd.f32 %v6825_v45, %v1010_v12 }
 0x232   : > { %v1115_v17 = vpack.c.bf16 %v929_v9, %v926_v7  ;;  %v1119_v18 = vpack.c.bf16 %v1019_v10, %v1016_v8  ;;  %v8993_v7 = vld [vmem:[%s10453_s1 + $0x20] sm:$0xff] }
 0x233   : > { %v1114_v19 = vpack.c.bf16 %v921_v15, %v918_v13  ;;  %v1118_v22 = vpack.c.bf16 %v1011_v16, %v1008_v14  ;;  %v9000_v13 = vld [vmem:[%s10453_s1 + $0x28] sm:$0xff]  ;;  %v9005_v14 = vld [vmem:[%s10453_s1 + $0x30] sm:$0xff] }
 0x234   : > { %v1143_v49 = vsel %vm1120_vm1, %v1119_v18, 0 }
 0x235   : > { %v7575_v23 = vpop.f32.mrb[8].mxu0  ;;  %v1140_v21 = vsel %vm1120_vm1, %v1118_v22, 0 }
 0x236   : > { %v1081_v26 = vpop.f32.mrb[9].mxu0  ;;  %7584 = vmatpush3.bf16.xpose.msra.mxu1 %v1137_v25  ;;  %v1090_v31 = vadd.f32 %v7575_v23, %v6837_v24 }
 0x237   : > { %v7576_v27 = vpop.f32.mrb[10].mxu0  ;;  %8247 = vmatprep.subr.msk.bf16.mxu1 %vm1120_vm1, %v1118_v22  ;;  %v1082_v34 = vadd.f32 %v6837_v24, %v1081_v26  ;;  %v6869_v26 = vld [vmem:[%s8918_s22 + $0x5] ss:$0 sm:$0xff] }
 0x238   : > { %v1093_v32 = vadd.f32 %v7576_v27, %v6837_v24  ;;  %v1084_v33 = vpop.f32.mrb[11].mxu0 }
 0x239   : > { %v1085_v20 = vadd.f32 %v6837_v24, %v1084_v33 }
 0x23a   : > { %v1320_v28 = vpack.c.bf16 %v1093_v32, %v1090_v31 }
 0x23b   : > { %v1319_v36 = vpack.c.bf16 %v1085_v20, %v1082_v34 }
 0x23d   : > { %v7579_v37 = vpop.f32.mrb[12].mxu0  ;;  %7597 = vmatprep.subr.bf16.mxu0 %v1319_v36 }
 0x23e   : > { %v1097_v40 = vpop.f32.mrb[13].mxu0  ;;  %7586 = vmatpush3.bf16.xpose.msra.mxu1 %v1140_v21  ;;  %7598 = vmatpush3.bf16.msra.mxu0 %v1319_v36  ;;  %v1106_v38 = vadd.f32 %v7579_v37, %v6837_v24 }
 0x23f   : > { %v7580_v41 = vpop.f32.mrb[14].mxu0  ;;  %8248 = vmatprep.subr.msk.bf16.mxu1 %vm1120_vm1, %v1119_v18  ;;  %7599 = vmatprep.subr.bf16.mxu0 %v1320_v28  ;;  %v1098_v44 = vadd.f32 %v6837_v24, %v1097_v40 }
 0x240   : > { %v1109_v42 = vadd.f32 %v7580_v41, %v6837_v24  ;;  %v1100_v43 = vpop.f32.mrb[15].mxu0 }
 0x241   : > { %v1101_v45 = vadd.f32 %v6837_v24, %v1100_v43 }
 0x242   : > { %v1322_v46 = vpack.c.bf16 %v1109_v42, %v1106_v38  ;;  %7600 = vmatpush3.bf16.msra.mxu0 %v1320_v28 }
 0x243   : > { %v1321_v47 = vpack.c.bf16 %v1101_v45, %v1098_v44 }
 0x245   : > { %7601 = vmatprep.subr.bf16.mxu0 %v1321_v47 }
 0x246   : > { %7588 = vmatpush3.bf16.xpose.msra.mxu1 %v1143_v49  ;;  %7602 = vmatpush3.bf16.msra.mxu0 %v1321_v47 }
 0x247   : > { %7603 = vmatprep.subr.bf16.mxu0 %v1322_v46  ;;  %7625 = vmatprep.subr.bf16.mxu1 %v8301_v48 }
 0x24a   : > { %7604 = vmatpush3.bf16.msra.mxu0 %v1322_v46 }
 0x24d   : > { %7590 = vmatmul.mubr.msk.bf16.vlgmr.msra.gmra.mrb[8].mxu1 %vm1120_vm1, %v1113_v60 }
 0x24e   : > { %7593 = vmatprep.mubr.msk.bf16.mxu1 %vm1120_vm1, %v1114_v19  ;;  %7626 = vmatpush3.bf16.msra.mxu1 %v8301_v48  ;;  %v9015_v19 = vld [vmem:[%s10453_s1 + $0x38] sm:$0xff] }
 0x24f   : > { %7627 = vmatprep.subr.bf16.mxu1 %v8302_v51 }
 0x252   : > { %7628 = vmatpush3.bf16.msra.mxu1 %v8302_v51 }
 0x255   : > { %7594 = vmatmul.mubr.msk.bf16.gmra.mrb[12].mxu1 %vm1120_vm1, %v1115_v17 }
 0x256   : > { %7629 = vmatprep.mubr.msk.bf16.mxu1 %vm722_vm0, %v8873_v30 }
 0x25d   : > { %7630 = vmatmul.mubr.msk.bf16.vlgmr.msra.gmra.mrb[16].mxu1 %vm722_vm0, %v8881_v35 }
 0x25e   : > { %7633 = vmatprep.mubr.msk.bf16.mxu1 %vm722_vm0, %v8890_v29 }
 0x265   : > { %7634 = vmatmul.mubr.msk.bf16.gmra.mrb[20].mxu1 %vm722_vm0, %v8898_v39 }
 0x320   : > { %v7591_v50 = vpop.f32.mrb[8].mxu1 }
 0x321   : > { %v1179_v52 = vpop.f32.mrb[9].mxu1  ;;  %v1212_v54 = vmul.f32 0.35355338, %v7591_v50 }
 0x322   : > { %v1210_v55 = vmul.f32 0.35355338, %v1179_v52  ;;  %v7592_v56 = vpop.f32.mrb[10].mxu1 }
 0x323   : > { %v1182_v57 = vpop.f32.mrb[11].mxu1  ;;  %v1213_v60 = vmul.f32 0.35355338, %v7592_v56  ;;  %v8983_v2 = vadd.f32 %v1212_v54, %v8967_v59 }
 0x324   : > { %v1211_v61 = vmul.f32 0.35355338, %v1182_v57  ;;  %v8970_v62 = vadd.f32 %v1210_v55, %v8957_v53 }
 0x325   : > { %v8988_v5 = vadd.f32 %v1213_v60, %v8975_v63  ;;  %v1233_v11 = vsel %vm1226_vm2, %v8983_v2, -inf }
 0x326   : > { %v1227_v0 = vsel %vm1226_vm2, %v8970_v62, -inf  ;;  %v8980_v1 = vadd.f32 %v1211_v61, %v8962_v58 }
 0x327   : > { %1228 = vmax.xlane.f32.xlu0 %v1227_v0  ;;  %v1236_v17 = vsel %vm1226_vm2, %v8988_v5, -inf }
 0x328   : > { %v7595_v3 = vpop.f32.mrb[12].mxu1  ;;  %v1230_v4 = vsel %vm1226_vm2, %v8980_v1, -inf }
 0x329   : > { %1231 = vmax.xlane.f32.xlu1 %v1230_v4  ;;  %v1195_v6 = vpop.f32.mrb[13].mxu1  ;;  %v1216_v8 = vmul.f32 0.35355338, %v7595_v3 }
 0x32a   : > { %v1214_v9 = vmul.f32 0.35355338, %v1195_v6  ;;  %v7596_v10 = vpop.f32.mrb[14].mxu1 }
 0x32b   : > { %1234 = vmax.xlane.f32.xlu0 %v1233_v11  ;;  %v1198_v12 = vpop.f32.mrb[15].mxu1  ;;  %v1217_v15 = vmul.f32 0.35355338, %v7596_v10  ;;  %v9023_v24 = vadd.f32 %v1216_v8, %v9005_v14 }
 0x32c   : > { %v1215_v16 = vmul.f32 0.35355338, %v1198_v12  ;;  %v9010_v18 = vadd.f32 %v1214_v9, %v8993_v7 }
 0x32d   : > { %1237 = vmax.xlane.f32.xlu1 %v1236_v17  ;;  %v9029_v31 = vadd.f32 %v1217_v15, %v9015_v19  ;;  %v1245_v34 = vsel %vm1226_vm2, %v9023_v24, -inf }
 0x32e   : > { %v1239_v22 = vsel %vm1226_vm2, %v9010_v18, -inf  ;;  %v9020_v23 = vadd.f32 %v1215_v16, %v9000_v13 }
 0x32f   : > { %1240 = vmax.xlane.f32.xlu0 %v1239_v22  ;;  %v1248_v40 = vsel %vm1226_vm2, %v9029_v31, -inf }
 0x330   : > { %v7631_v25 = vpop.f32.mrb[16].mxu1  ;;  %v1242_v27 = vsel %vm1226_vm2, %v9020_v23, -inf }
 0x331   : > { %v1554_v32 = vpop.f32.mrb[17].mxu1  ;;  %1243 = vmax.xlane.f32.xlu1 %v1242_v27  ;;  %v1563_v20 = vadd.f32 %v7631_v25, %v6869_v26 }
 0x332   : > { %v7632_v33 = vpop.f32.mrb[18].mxu1  ;;  %v1555_v37 = vadd.f32 %v6869_v26, %v1554_v32 }
 0x333   : > { %v1566_v28 = vadd.f32 %v7632_v33, %v6869_v26  ;;  %1246 = vmax.xlane.f32.xlu0 %v1245_v34  ;;  %v1557_v36 = vpop.f32.mrb[19].mxu1 }
 0x334   : > { %v1558_v21 = vadd.f32 %v6869_v26, %v1557_v36 }
 0x335   : > { %v1680_v41 = vpack.c.bf16 %v1566_v28, %v1563_v20  ;;  %1249 = vmax.xlane.f32.xlu1 %v1248_v40 }
 0x336   : > { %v1679_v38 = vpack.c.bf16 %v1558_v21, %v1555_v37 }
 0x337   : > { %v1699_v54 = vsel %vm1120_vm1, %v1680_v41, 0 }
 0x338   : > { %v7635_v42 = vpop.f32.mrb[20].mxu1  ;;  %8249 = vmatprep.subr.msk.bf16.mxu1 %vm1120_vm1, %v1679_v38  ;;  %v1696_v43 = vsel %vm1120_vm1, %v1679_v38, 0 }
 0x339   : > { %v1570_v44 = vpop.f32.mrb[21].mxu1  ;;  %7650 = vmatpush3.bf16.xpose.msra.mxu1 %v1696_v43  ;;  %v1579_v46 = vadd.f32 %v7635_v42, %v6869_v26 }
 0x33a   : > { %v7636_v45 = vpop.f32.mrb[22].mxu1  ;;  %8250 = vmatprep.subr.msk.bf16.mxu1 %vm1120_vm1, %v1680_v41  ;;  %v1571_v49 = vadd.f32 %v6869_v26, %v1570_v44  ;;  %v8303_v44 = vld [vmem:[%s8811_s27 + $0x10] sm:$0xff]  }
 0x33b   : > { %v1582_v47 = vadd.f32 %v7636_v45, %v6869_v26  ;;  %v1573_v48 = vpop.f32.mrb[23].mxu1  ;;  %7613 = vmatprep.subr.bf16.mxu0 %v8303_v44 }
 0x33c   : > { %v1574_v51 = vadd.f32 %v6869_v26, %v1573_v48 }
 0x33d   : > { %v1682_v50 = vpack.c.bf16 %v1582_v47, %v1579_v46 }
 0x33e   : > { %v1681_v52 = vpack.c.bf16 %v1574_v51, %v1571_v49 }
 0x33f   : > { %v1705_v56 = vsel %vm1120_vm1, %v1682_v50, 0 }
 0x340   : > { %v1702_v55 = vsel %vm1120_vm1, %v1681_v52, 0 }
 0x341   : > { %7652 = vmatpush3.bf16.xpose.msra.mxu1 %v1699_v54 }
 0x342   : > { %8251 = vmatprep.subr.msk.bf16.mxu1 %vm1120_vm1, %v1681_v52 }
 0x349   : > { %7654 = vmatpush3.bf16.xpose.msra.mxu1 %v1702_v55 }
 0x34a   : > { %8252 = vmatprep.subr.msk.bf16.mxu1 %vm1120_vm1, %v1682_v50 }
 0x351   : > { %7656 = vmatpush3.bf16.xpose.msra.mxu1 %v1705_v56 }
 0x3b4   : > { %v1229_v57 = vpop.xlane.xlu0 %1228 }
 0x3b5   : > { %v1251_v60 = vsub.f32 %v8970_v62, %v1229_v57 }
 0x3b6   : > { %v1232_v61 = vpop.xlane.xlu1 %1231 }
 0x3b7   : > { %v1259_v0 = vmul.f32 1.442695, %v1251_v60  ;;  %v1252_v3 = vsub.f32 %v8980_v1, %v1232_v61 }
 0x3b8   : > { %v1235_v4 = vpop.xlane.xlu0 %1234 }
 0x3b9   : > { %8365 = vpow2.f32 %v1259_v0  ;;  %v1261_v6 = vmul.f32 1.442695, %v1252_v3  ;;  %v1253_v8 = vsub.f32 %v8983_v2, %v1235_v4 }
 0x3ba   : > { %v1238_v9 = vpop.xlane.xlu1 %1237 }
 0x3bb   : > { %8367 = vpow2.f32 %v1261_v6  ;;  %v1263_v10 = vmul.f32 1.442695, %v1253_v8  ;;  %v1254_v11 = vsub.f32 %v8988_v5, %v1238_v9  ;;  %v8304_v9 = vld [vmem:[%s8811_s27 + $0x18] sm:$0xff]  }
 0x3bc   : > { %v1241_v12 = vpop.xlane.xlu0 %1240 }
 0x3bd   : > { %8369 = vpow2.f32 %v1263_v10  ;;  %v1265_v15 = vmul.f32 1.442695, %v1254_v11  ;;  %v1255_v16 = vsub.f32 %v9010_v18, %v1241_v12 }
 0x3be   : > { %v1244_v62 = vpop.xlane.xlu1 %1243 }
 0x3bf   : > { %8371 = vpow2.f32 %v1265_v15  ;;  %v1267_v17 = vmul.f32 1.442695, %v1255_v16  ;;  %v1256_v1 = vsub.f32 %v9020_v23, %v1244_v62  ;;  %v8305_v62 = vld [vmem:[%s8811_s27 + $0x90] sm:$0xff]  }
 0x3c0   : > { %v1247_v22 = vpop.xlane.xlu0 %1246 }
 0x3c1   : > { %8373 = vpow2.f32 %v1267_v17  ;;  %v1269_v25 = vmul.f32 1.442695, %v1256_v1  ;;  %v1257_v2 = vsub.f32 %v9023_v24, %v1247_v22 }
 0x3c2   : > { %v1250_v26 = vpop.xlane.xlu1 %1249 }
 0x3c3   : > { %v8366_v27 = vpop.eup %8365  ;;  %8375 = vpow2.f32 %v1269_v25  ;;  %v1271_v32 = vmul.f32 1.442695, %v1257_v2  ;;  %v1258_v5 = vsub.f32 %v9029_v31, %v1250_v26  ;;  %v8306_v2 = vld [vmem:[%s8811_s27 + $0x98] sm:$0xff]   ;;  %v8307_v26 = vld [vmem:[%s8811_s27 + $0x20] sm:$0xff]  }
 0x3c4   : > { %v1275_v33 = vsel %vm1226_vm2, %v8366_v27, 0.0  ;;  %7701 = vmatprep.subr.bf16.mxu1 %v8307_v26 }
 0x3c5   : > { %v8368_v34 = vpop.eup %8367  ;;  %8377 = vpow2.f32 %v1271_v32  ;;  %v1273_v18 = vmul.f32 1.442695, %v1258_v5  ;;  %1276 = vadd.xlane.f32.xlu0 %v1275_v33 }
 0x3c6   : > { %v1278_v20 = vsel %vm1226_vm2, %v8368_v34, 0.0 }
 0x3c7   : > { %v8370_v23 = vpop.eup %8369  ;;  %8379 = vpow2.f32 %v1273_v18  ;;  %1279 = vadd.xlane.f32.xlu1 %v1278_v20 }
 0x3c8   : > { %v1281_v28 = vsel %vm1226_vm2, %v8370_v23, 0.0 }
 0x3c9   : > { %v8372_v24 = vpop.eup %8371  ;;  %1282 = vadd.xlane.f32.xlu0 %v1281_v28 }
 0x3ca   : > { %v1284_v36 = vsel %vm1226_vm2, %v8372_v24, 0.0 }
 0x3cb   : > { %v8374_v37 = vpop.eup %8373  ;;  %1285 = vadd.xlane.f32.xlu1 %v1284_v36 }
 0x3cc   : > { %v1287_v31 = vsel %vm1226_vm2, %v8374_v37, 0.0 }
 0x3cd   : > { %v8376_v21 = vpop.eup %8375  ;;  %1288 = vadd.xlane.f32.xlu0 %v1287_v31 }
 0x3ce   : > { %v1290_v40 = vsel %vm1226_vm2, %v8376_v21, 0.0 }
 0x3cf   : > { %v8378_v41 = vpop.eup %8377  ;;  %1291 = vadd.xlane.f32.xlu1 %v1290_v40 }
 0x3d0   : > { %v1293_v38 = vsel %vm1226_vm2, %v8378_v41, 0.0 }
 0x3d1   : > { %v8380_v42 = vpop.eup %8379  ;;  %1294 = vadd.xlane.f32.xlu0 %v1293_v38 }
 0x3d2   : > { %v1296_v43 = vsel %vm1226_vm2, %v8380_v42, 0.0 }
 0x3d3   : > { %1297 = vadd.xlane.f32.xlu1 %v1296_v43 }
 0x452   : > { %v1277_v45 = vpop.xlane.xlu0 %1276 }
 0x453   : > { %8381 = vrcp.f32 %v1277_v45 }
 0x454   : > { %v1280_v46 = vpop.xlane.xlu1 %1279 }
 0x455   : > { %8383 = vrcp.f32 %v1280_v46 }
 0x456   : > { %v1283_v47 = vpop.xlane.xlu0 %1282 }
 0x457   : > { %8385 = vrcp.f32 %v1283_v47 }
 0x458   : > { %v1286_v48 = vpop.xlane.xlu1 %1285 }
 0x459   : > { %8387 = vrcp.f32 %v1286_v48  ;;  %v8308_v48 = vld [vmem:[%s8811_s27 + $0x28] sm:$0xff]  }
 0x45a   : > { %v1289_v49 = vpop.xlane.xlu0 %1288 }
 0x45b   : > { %8389 = vrcp.f32 %v1289_v49 }
 0x45c   : > { %v1292_v51 = vpop.xlane.xlu1 %1291 }
 0x45d   : > { %v8382_v50 = vpop.eup %8381  ;;  %8391 = vrcp.f32 %v1292_v51 }
 0x45e   : > { %v1295_v52 = vpop.xlane.xlu0 %1294  ;;  %v1307_v56 = vmul.f32 %v8382_v50, %v8366_v27 }
 0x45f   : > { %v8384_v54 = vpop.eup %8383  ;;  %8393 = vrcp.f32 %v1295_v52 }
 0x460   : > { %v1298_v55 = vpop.xlane.xlu1 %1297  ;;  %v1308_v57 = vmul.f32 %v8384_v54, %v8368_v34 }
 0x461   : > { %v8386_v60 = vpop.eup %8385  ;;  %8395 = vrcp.f32 %v1298_v55 }
 0x462   : > { %v1315_v61 = vpack.c.bf16 %v1308_v57, %v1307_v56  ;;  %v1309_v3 = vmul.f32 %v8386_v60, %v8370_v23  ;;  %v8309_v56 = vld [vmem:[%s8811_s27 + $0x60] sm:$0xff]  }
 0x463   : > { %v8388_v0 = vpop.eup %8387 }
 0x464   : > { %v1310_v4 = vmul.f32 %v8388_v0, %v8372_v24  ;;  %7605 = vmatprep.mubr.msk.bf16.mxu0 %vm1226_vm2, %v1315_v61 }
 0x465   : > { %v8390_v6 = vpop.eup %8389 }
 0x466   : > { %v1316_v8 = vpack.c.bf16 %v1310_v4, %v1309_v3  ;;  %v1311_v11 = vmul.f32 %v8390_v6, %v8374_v37  ;;  %v6881_v4 = vld [vmem:[%s8918_s22 + $0x9] ss:$0 sm:$0xff] }
 0x467   : > { %v8392_v10 = vpop.eup %8391 }
 0x468   : > { %7606 = vmatmul.mubr.msk.bf16.vlgmr.msra.gmra.mrb[16].mxu0 %vm1226_vm2, %v1316_v8  ;;  %v1312_v12 = vmul.f32 %v8392_v10, %v8376_v21  ;;  %v6857_v21 = vld [vmem:[%s8918_s22 + $0x1] ss:$0 sm:$0xff] }
 0x469   : > { %v8394_v15 = vpop.eup %8393  ;;  %7614 = vmatpush3.bf16.msra.mxu0 %v8303_v44 }
 0x46a   : > { %v1317_v16 = vpack.c.bf16 %v1312_v12, %v1311_v11  ;;  %7615 = vmatprep.subr.bf16.mxu0 %v8304_v9  ;;  %v1313_v1 = vmul.f32 %v8394_v15, %v8378_v41 }
 0x46b   : > { %v8396_v17 = vpop.eup %8395 }
 0x46c   : > { %7609 = vmatprep.mubr.msk.bf16.mxu0 %vm1226_vm2, %v1317_v16  ;;  %v1314_v22 = vmul.f32 %v8396_v17, %v8380_v42 }
 0x46d   : > { %7616 = vmatpush3.bf16.msra.mxu0 %v8304_v9 }
 0x46e   : > { %v1318_v25 = vpack.c.bf16 %v1314_v22, %v1313_v1  ;;  %7637 = vmatprep.subr.bf16.mxu0 %v8305_v62  ;;  %v8310_v1 = vld [vmem:[%s8811_s27 + $0x68] sm:$0xff]  }
 0x470   : > { %7610 = vmatmul.mubr.msk.bf16.gmra.mrb[20].mxu0 %vm1226_vm2, %v1318_v25 }
 0x471   : > { %7617 = vmatprep.mubr.msk.bf16.mxu0 %vm722_vm0, %v8873_v30 }
 0x478   : > { %7618 = vmatmul.mubr.msk.bf16.vlgmr.msra.gmra.mrb[24].mxu0 %vm722_vm0, %v8881_v35 }
 0x479   : > { %7621 = vmatprep.mubr.msk.bf16.mxu0 %vm722_vm0, %v8890_v29  ;;  %7638 = vmatpush3.bf16.msra.mxu0 %v8305_v62 }
 0x47a   : > { %7639 = vmatprep.subr.bf16.mxu0 %v8306_v2 }
 0x47d   : > { %7640 = vmatpush3.bf16.msra.mxu0 %v8306_v2 }
 0x480   : > { %7622 = vmatmul.mubr.msk.bf16.gmra.mrb[28].mxu0 %vm722_vm0, %v8898_v39 }
 0x481   : > { %7641 = vmatprep.mubr.msk.bf16.mxu0 %vm722_vm0, %v8873_v30 }
 0x488   : > { %7642 = vmatmul.mubr.msk.bf16.vlgmr.msra.gmra.mrb[32].mxu0 %vm722_vm0, %v8881_v35 }
 0x489   : > { %7645 = vmatprep.mubr.msk.bf16.mxu0 %vm722_vm0, %v8890_v29 }
 0x490   : > { %7646 = vmatmul.mubr.msk.bf16.gmra.mrb[36].mxu0 %vm722_vm0, %v8898_v39 }
 0x53b   : > { %v9084_v27 = vpop.f32.mrb[16].mxu0 }
 0x53c   : > { %v9086_v32 = vpop.f32.mrb[17].mxu0 }
 0x53d   : > { %v9088_v5 = vpop.f32.mrb[18].mxu0 }
 0x53e   : > { %v1401_v33 = vpack.c.bf16 %v9088_v5, %v9084_v27  ;;  %v9092_v34 = vpop.f32.mrb[19].mxu0 }
 0x53f   : > { %v1400_v18 = vpack.c.bf16 %v9092_v34, %v9086_v32 }
 0x543   : > { %v9096_v20 = vpop.f32.mrb[20].mxu0 }
 0x544   : > { %v9098_v23 = vpop.f32.mrb[21].mxu0 }
 0x545   : > { %v9100_v28 = vpop.f32.mrb[22].mxu0 }
 0x546   : > { %v1403_v24 = vpack.c.bf16 %v9100_v28, %v9096_v20  ;;  %v9104_v36 = vpop.f32.mrb[23].mxu0 }
 0x547   : > { %v1402_v37 = vpack.c.bf16 %v9104_v36, %v9098_v23  ;;  %v6934_v36 = vld [vmem:[%s8918_s22 + $0xa] ss:$0 sm:$0xff] }
 0x54b   : > { %v7619_v31 = vpop.f32.mrb[24].mxu0 }
 0x54c   : > { %v1464_v40 = vpop.f32.mrb[25].mxu0  ;;  %v1473_v38 = vadd.f32 %v7619_v31, %v6857_v21 }
 0x54d   : > { %v7620_v41 = vpop.f32.mrb[26].mxu0  ;;  %v1465_v44 = vadd.f32 %v6857_v21, %v1464_v40 }
 0x54e   : > { %v1476_v42 = vadd.f32 %v7620_v41, %v6857_v21  ;;  %v1467_v43 = vpop.f32.mrb[27].mxu0 }
 0x54f   : > { %v1468_v45 = vadd.f32 %v6857_v21, %v1467_v43 }
 0x550   : > { %v1676_v46 = vpack.c.bf16 %v1476_v42, %v1473_v38 }
 0x551   : > { %v1675_v47 = vpack.c.bf16 %v1468_v45, %v1465_v44 }
 0x553   : > { %v7623_v49 = vpop.f32.mrb[28].mxu0  ;;  %7657 = vmatprep.mubr.msk.bf16.mxu1 %vm1120_vm1, %v1675_v47 }
 0x554   : > { %v1480_v51 = vpop.f32.mrb[29].mxu0  ;;  %7658 = vmatmul.mubr.msk.bf16.vlgmr.msra.gmra.mrb[24].mxu1 %vm1120_vm1, %v1676_v46  ;;  %v1489_v52 = vadd.f32 %v7623_v49, %v6857_v21 }
 0x555   : > { %v7624_v50 = vpop.f32.mrb[30].mxu0  ;;  %7702 = vmatpush3.bf16.msra.mxu1 %v8307_v26  ;;  %v1481_v57 = vadd.f32 %v6857_v21, %v1480_v51 }
 0x556   : > { %v1492_v54 = vadd.f32 %v7624_v50, %v6857_v21  ;;  %v1483_v55 = vpop.f32.mrb[31].mxu0  ;;  %7703 = vmatprep.subr.bf16.mxu1 %v8308_v48 }
 0x557   : > { %v1484_v60 = vadd.f32 %v6857_v21, %v1483_v55 }
 0x558   : > { %v1678_v61 = vpack.c.bf16 %v1492_v54, %v1489_v52 }
 0x559   : > { %v1677_v0 = vpack.c.bf16 %v1484_v60, %v1481_v57  ;;  %7704 = vmatpush3.bf16.msra.mxu1 %v8308_v48 }
 0x55a   : > { %7713 = vmatprep.subr.bf16.mxu1 %v8309_v56 }
 0x55b   : > { %v7643_v3 = vpop.f32.mrb[32].mxu0  ;;  %7661 = vmatprep.mubr.msk.bf16.mxu1 %vm1120_vm1, %v1677_v0 }
 0x55c   : > { %v1644_v6 = vpop.f32.mrb[33].mxu0  ;;  %7662 = vmatmul.mubr.msk.bf16.gmra.mrb[28].mxu1 %vm1120_vm1, %v1678_v61  ;;  %v1653_v9 = vadd.f32 %v7643_v3, %v6881_v4 }
 0x55d   : > { %v7644_v8 = vpop.f32.mrb[34].mxu0  ;;  %7705 = vmatprep.mubr.msk.bf16.mxu1 %vm722_vm0, %v8873_v30  ;;  %v1645_v12 = vadd.f32 %v6881_v4, %v1644_v6 }
 0x55e   : > { %v1656_v10 = vadd.f32 %v7644_v8, %v6881_v4  ;;  %v1647_v11 = vpop.f32.mrb[35].mxu0 }
 0x55f   : > { %v1648_v15 = vadd.f32 %v6881_v4, %v1647_v11 }
 0x560   : > { %v1881_v16 = vpack.c.bf16 %v1656_v10, %v1653_v9 }
 0x561   : > { %v1880_v62 = vpack.c.bf16 %v1648_v15, %v1645_v12 }
 0x563   : > { %v7647_v17 = vpop.f32.mrb[36].mxu0  ;;  %7665 = vmatprep.subr.bf16.mxu0 %v1880_v62 }
 0x564   : > { %v1660_v22 = vpop.f32.mrb[37].mxu0  ;;  %7666 = vmatpush3.bf16.msra.mxu0 %v1880_v62  ;;  %7706 = vmatmul.mubr.msk.bf16.vlgmr.msra.gmra.mrb[32].mxu1 %vm722_vm0, %v8881_v35  ;;  %v1669_v2 = vadd.f32 %v7647_v17, %v6881_v4  ;;  %v6910_v17 = vld [vmem:[%s8918_s22 + $0x2] ss:$0 sm:$0xff] }
 0x565   : > { %v7648_v25 = vpop.f32.mrb[38].mxu0  ;;  %7667 = vmatprep.subr.bf16.mxu0 %v1881_v16  ;;  %7709 = vmatprep.mubr.msk.bf16.mxu1 %vm722_vm0, %v8890_v29  ;;  %v1661_v21 = vadd.f32 %v6881_v4, %v1660_v22 }
 0x566   : > { %v1672_v26 = vadd.f32 %v7648_v25, %v6881_v4  ;;  %v1663_v31 = vpop.f32.mrb[39].mxu0  ;;  %7714 = vmatpush3.bf16.msra.mxu1 %v8309_v56 }
 0x567   : > { %v1664_v40 = vadd.f32 %v6881_v4, %v1663_v31  ;;  %7715 = vmatprep.subr.bf16.mxu1 %v8310_v1 }
 0x568   : > { %v1883_v41 = vpack.c.bf16 %v1672_v26, %v1669_v2  ;;  %7668 = vmatpush3.bf16.msra.mxu0 %v1881_v16 }
 0x569   : > { %v1882_v38 = vpack.c.bf16 %v1664_v40, %v1661_v21 }
 0x56a   : > { %7716 = vmatpush3.bf16.msra.mxu1 %v8310_v1 }
 0x56b   : > { %7669 = vmatprep.subr.bf16.mxu0 %v1882_v38 }
 0x56c   : > { %7670 = vmatpush3.bf16.msra.mxu0 %v1882_v38  ;;  %7710 = vmatmul.mubr.msk.bf16.gmra.mrb[36].mxu1 %vm722_vm0, %v8898_v39 }
 0x56d   : > { %7671 = vmatprep.subr.bf16.mxu0 %v1883_v41  ;;  %7717 = vmatprep.mubr.msk.bf16.mxu1 %vm722_vm0, %v8873_v30 }
 0x570   : > { %7672 = vmatpush3.bf16.msra.mxu0 %v1883_v41 }
 0x574   : > { %7718 = vmatmul.mubr.msk.bf16.vlgmr.msra.gmra.mrb[40].mxu1 %vm722_vm0, %v8881_v35 }
 0x575   : > { %7721 = vmatprep.mubr.msk.bf16.mxu1 %vm722_vm0, %v8890_v29 }
 0x57c   : > { %7722 = vmatmul.mubr.msk.bf16.gmra.mrb[44].mxu1 %vm722_vm0, %v8898_v39 }
 0x627   : > { %v7659_v42 = vpop.f32.mrb[24].mxu1 }
 0x628   : > { %v1741_v43 = vpop.f32.mrb[25].mxu1  ;;  %v1774_v44 = vmul.f32 0.35355338, %v7659_v42 }
 0x629   : > { %v1772_v45 = vmul.f32 0.35355338, %v1741_v43  ;;  %v7660_v46 = vpop.f32.mrb[26].mxu1 }
 0x62a   : > { %v1744_v47 = vpop.f32.mrb[27].mxu1  ;;  %v1775_v48 = vmul.f32 0.35355338, %v7660_v46  ;;  %v9142_v54 = vadd.f32 %v1774_v44, %v8967_v59 }
 0x62b   : > { %v1773_v49 = vmul.f32 0.35355338, %v1744_v47  ;;  %v9134_v51 = vadd.f32 %v1772_v45, %v8957_v53 }
 0x62c   : > { %v9147_v57 = vadd.f32 %v1775_v48, %v8975_v63  ;;  %v1794_v4 = vsel %vm1226_vm2, %v9142_v54, -inf }
 0x62d   : > { %v1788_v50 = vsel %vm1226_vm2, %v9134_v51, -inf  ;;  %v9139_v52 = vadd.f32 %v1773_v49, %v8962_v58 }
 0x62e   : > { %1789 = vmax.xlane.f32.xlu0 %v1788_v50  ;;  %v1797_v10 = vsel %vm1226_vm2, %v9147_v57, -inf }
 0x62f   : > { %v7663_v55 = vpop.f32.mrb[28].mxu1  ;;  %v1791_v56 = vsel %vm1226_vm2, %v9139_v52, -inf }
 0x630   : > { %1792 = vmax.xlane.f32.xlu1 %v1791_v56  ;;  %v1757_v60 = vpop.f32.mrb[29].mxu1  ;;  %v1778_v61 = vmul.f32 0.35355338, %v7663_v55 }
 0x631   : > { %v1776_v0 = vmul.f32 0.35355338, %v1757_v60  ;;  %v7664_v3 = vpop.f32.mrb[30].mxu1 }
 0x632   : > { %1795 = vmax.xlane.f32.xlu0 %v1794_v4  ;;  %v1760_v6 = vpop.f32.mrb[31].mxu1  ;;  %v1779_v8 = vmul.f32 0.35355338, %v7664_v3  ;;  %v9162_v16 = vadd.f32 %v1778_v61, %v9005_v14  ;;  %v6922_v3 = vld [vmem:[%s8918_s22 + $0x6] ss:$0 sm:$0xff] }
 0x633   : > { %v1777_v9 = vmul.f32 0.35355338, %v1760_v6  ;;  %v9154_v11 = vadd.f32 %v1776_v0, %v8993_v7 }
 0x634   : > { %1798 = vmax.xlane.f32.xlu1 %v1797_v10  ;;  %v9168_v22 = vadd.f32 %v1779_v8, %v9015_v19  ;;  %v1806_v26 = vsel %vm1226_vm2, %v9162_v16, -inf }
 0x635   : > { %v1800_v12 = vsel %vm1226_vm2, %v9154_v11, -inf  ;;  %v9159_v15 = vadd.f32 %v1777_v9, %v9000_v13 }
 0x636   : > { %1801 = vmax.xlane.f32.xlu0 %v1800_v12  ;;  %v1809_v42 = vsel %vm1226_vm2, %v9168_v22, -inf }
 0x637   : > { %v7707_v62 = vpop.f32.mrb[32].mxu1  ;;  %v1803_v1 = vsel %vm1226_vm2, %v9159_v15, -inf }
 0x638   : > { %v2187_v25 = vpop.f32.mrb[33].mxu1  ;;  %1804 = vmax.xlane.f32.xlu1 %v1803_v1  ;;  %v2196_v31 = vadd.f32 %v7707_v62, %v6910_v17 }
 0x639   : > { %v7708_v2 = vpop.f32.mrb[34].mxu1  ;;  %v2188_v41 = vadd.f32 %v6910_v17, %v2187_v25 }
 0x63a   : > { %v2199_v21 = vadd.f32 %v7708_v2, %v6910_v17  ;;  %1807 = vmax.xlane.f32.xlu0 %v1806_v26  ;;  %v2190_v40 = vpop.f32.mrb[35].mxu1 }
 0x63b   : > { %v2191_v38 = vadd.f32 %v6910_v17, %v2190_v40 }
 0x63c   : > { %v2399_v43 = vpack.c.bf16 %v2199_v21, %v2196_v31  ;;  %1810 = vmax.xlane.f32.xlu1 %v1809_v42 }
 0x63d   : > { %v2398_v44 = vpack.c.bf16 %v2191_v38, %v2188_v41 }
 0x63f   : > { %v7711_v45 = vpop.f32.mrb[36].mxu1  ;;  %7745 = vmatprep.mubr.msk.bf16.mxu1 %vm1120_vm1, %v2398_v44 }
 0x640   : > { %v2203_v46 = vpop.f32.mrb[37].mxu1  ;;  %v2212_v48 = vadd.f32 %v7711_v45, %v6910_v17 }
 0x641   : > { %v7712_v47 = vpop.f32.mrb[38].mxu1  ;;  %v2204_v55 = vadd.f32 %v6910_v17, %v2203_v46 }
 0x642   : > { %v2215_v49 = vadd.f32 %v7712_v47, %v6910_v17  ;;  %v2206_v50 = vpop.f32.mrb[39].mxu1 }
 0x643   : > { %v2207_v56 = vadd.f32 %v6910_v17, %v2206_v50  ;;  %v8312_v50 = vld [vmem:[%s8811_s27 + $0x38] sm:$0xff]  }
 0x644   : > { %v2401_v60 = vpack.c.bf16 %v2215_v49, %v2212_v48  ;;  %v8311_v48 = vld [vmem:[%s8811_s27 + $0x30] sm:$0xff]  }
 0x645   : > { %v2400_v61 = vpack.c.bf16 %v2207_v56, %v2204_v55  ;;  %v8313_v55 = vld [vmem:[%s8811_s27 + $0xb0] sm:$0xff]   ;;  %v8314_v56 = vld [vmem:[%s8811_s27 + $0xb8] sm:$0xff]  }
 0x647   : > { %v7719_v0 = vpop.f32.mrb[40].mxu1 }
 0x648   : > { %v2277_v4 = vpop.f32.mrb[41].mxu1  ;;  %v2286_v8 = vadd.f32 %v7719_v0, %v6922_v3 }
 0x649   : > { %v7720_v6 = vpop.f32.mrb[42].mxu1  ;;  %v2278_v12 = vadd.f32 %v6922_v3, %v2277_v4 }
 0x64a   : > { %v2289_v9 = vadd.f32 %v7720_v6, %v6922_v3  ;;  %v2280_v10 = vpop.f32.mrb[43].mxu1 }
 0x64b   : > { %v2281_v62 = vadd.f32 %v6922_v3, %v2280_v10 }
 0x64c   : > { %v2403_v1 = vpack.c.bf16 %v2289_v9, %v2286_v8 }
 0x64d   : > { %v2402_v25 = vpack.c.bf16 %v2281_v62, %v2278_v12 }
 0x64e   : > { %v2422_v46 = vsel %vm1120_vm1, %v2403_v1, 0 }
 0x64f   : > { %v7723_v2 = vpop.f32.mrb[44].mxu1  ;;  %8255 = vmatprep.subr.msk.bf16.mxu1 %vm1120_vm1, %v2402_v25  ;;  %v2419_v26 = vsel %vm1120_vm1, %v2402_v25, 0 }
 0x650   : > { %v2293_v31 = vpop.f32.mrb[45].mxu1  ;;  %7738 = vmatpush3.bf16.xpose.msra.mxu1 %v2419_v26  ;;  %v2302_v21 = vadd.f32 %v7723_v2, %v6922_v3 }
 0x651   : > { %v7724_v17 = vpop.f32.mrb[46].mxu1  ;;  %8256 = vmatprep.subr.msk.bf16.mxu1 %vm1120_vm1, %v2403_v1  ;;  %v2294_v38 = vadd.f32 %v6922_v3, %v2293_v31 }
 0x652   : > { %v2305_v40 = vadd.f32 %v7724_v17, %v6922_v3  ;;  %v2296_v41 = vpop.f32.mrb[47].mxu1 }
 0x653   : > { %v2297_v42 = vadd.f32 %v6922_v3, %v2296_v41 }
 0x654   : > { %v2405_v44 = vpack.c.bf16 %v2305_v40, %v2302_v21 }
 0x655   : > { %v2404_v45 = vpack.c.bf16 %v2297_v42, %v2294_v38 }
 0x656   : > { %v2428_v49 = vsel %vm1120_vm1, %v2405_v44, 0 }
 0x657   : > { %v2425_v47 = vsel %vm1120_vm1, %v2404_v45, 0 }
 0x658   : > { %7740 = vmatpush3.bf16.xpose.msra.mxu1 %v2422_v46 }
 0x659   : > { %8257 = vmatprep.subr.msk.bf16.mxu1 %vm1120_vm1, %v2404_v45 }
 0x660   : > { %7742 = vmatpush3.bf16.xpose.msra.mxu1 %v2425_v47 }
 0x661   : > { %8258 = vmatprep.subr.msk.bf16.mxu1 %vm1120_vm1, %v2405_v44 }
 0x668   : > { %7744 = vmatpush3.bf16.xpose.msra.mxu1 %v2428_v49 }
 0x669   : > { %7779 = vmatprep.subr.bf16.mxu1 %v8311_v48 }
 0x66f   : > { %7746 = vmatmul.mubr.msk.bf16.vlgmr.msra.gmra.mrb[48].mxu1 %vm1120_vm1, %v2399_v43 }
 0x670   : > { %7749 = vmatprep.mubr.msk.bf16.mxu1 %vm1120_vm1, %v2400_v61  ;;  %7780 = vmatpush3.bf16.msra.mxu1 %v8311_v48 }
 0x671   : > { %7781 = vmatprep.subr.bf16.mxu1 %v8312_v50 }
 0x674   : > { %7782 = vmatpush3.bf16.msra.mxu1 %v8312_v50 }
 0x675   : > { %7803 = vmatprep.subr.bf16.mxu1 %v8313_v55 }
 0x677   : > { %7750 = vmatmul.mubr.msk.bf16.gmra.mrb[52].mxu1 %vm1120_vm1, %v2401_v60 }
 0x678   : > { %7783 = vmatprep.mubr.msk.bf16.mxu1 %vm722_vm0, %v8873_v30 }
 0x67f   : > { %7784 = vmatmul.mubr.msk.bf16.vlgmr.msra.gmra.mrb[56].mxu1 %vm722_vm0, %v8881_v35 }
 0x680   : > { %7787 = vmatprep.mubr.msk.bf16.mxu1 %vm722_vm0, %v8890_v29  ;;  %7804 = vmatpush3.bf16.msra.mxu1 %v8313_v55 }
 0x681   : > { %7805 = vmatprep.subr.bf16.mxu1 %v8314_v56 }
 0x684   : > { %7806 = vmatpush3.bf16.msra.mxu1 %v8314_v56 }
 0x687   : > { %7788 = vmatmul.mubr.msk.bf16.gmra.mrb[60].mxu1 %vm722_vm0, %v8898_v39 }
 0x688   : > { %7807 = vmatprep.mubr.msk.bf16.mxu1 %vm722_vm0, %v8873_v30 }
 0x68f   : > { %7808 = vmatmul.mubr.msk.bf16.vlgmr.msra.gmra.mrb[64].mxu1 %vm722_vm0, %v8881_v35 }
 0x690   : > { %7811 = vmatprep.mubr.msk.bf16.mxu1 %vm722_vm0, %v8890_v29 }
 0x697   : > { %7812 = vmatmul.mubr.msk.bf16.gmra.mrb[68].mxu1 %vm722_vm0, %v8898_v39 }
 0x6bb   : > { %v1790_v43 = vpop.xlane.xlu0 %1789 }
 0x6bc   : > { %v1812_v60 = vsub.f32 %v9134_v51, %v1790_v43 }
 0x6bd   : > { %v1793_v61 = vpop.xlane.xlu1 %1792 }
 0x6be   : > { %v1820_v0 = vmul.f32 1.442695, %v1812_v60  ;;  %v1813_v3 = vsub.f32 %v9139_v52, %v1793_v61 }
 0x6bf   : > { %v1796_v4 = vpop.xlane.xlu0 %1795 }
 0x6c0   : > { %8397 = vpow2.f32 %v1820_v0  ;;  %v1822_v6 = vmul.f32 1.442695, %v1813_v3  ;;  %v1814_v8 = vsub.f32 %v9142_v54, %v1796_v4 }
 0x6c1   : > { %v1799_v9 = vpop.xlane.xlu1 %1798 }
 0x6c2   : > { %8399 = vpow2.f32 %v1822_v6  ;;  %v1824_v10 = vmul.f32 1.442695, %v1814_v8  ;;  %v1815_v12 = vsub.f32 %v9147_v57, %v1799_v9 }
 0x6c3   : > { %v1802_v62 = vpop.xlane.xlu0 %1801 }
 0x6c4   : > { %8401 = vpow2.f32 %v1824_v10  ;;  %v1826_v1 = vmul.f32 1.442695, %v1815_v12  ;;  %v1816_v25 = vsub.f32 %v9154_v11, %v1802_v62 }
 0x6c5   : > { %v1805_v51 = vpop.xlane.xlu1 %1804 }
 0x6c6   : > { %8403 = vpow2.f32 %v1826_v1  ;;  %v1828_v2 = vmul.f32 1.442695, %v1816_v25  ;;  %v1817_v52 = vsub.f32 %v9159_v15, %v1805_v51 }
 0x6c7   : > { %v1808_v26 = vpop.xlane.xlu0 %1807 }
 0x6c8   : > { %8405 = vpow2.f32 %v1828_v2  ;;  %v1830_v31 = vmul.f32 1.442695, %v1817_v52  ;;  %v1818_v54 = vsub.f32 %v9162_v16, %v1808_v26 }
 0x6c9   : > { %v1811_v17 = vpop.xlane.xlu1 %1810 }
 0x6ca   : > { %v9214_v21 = vpop.eup %8397  ;;  %8407 = vpow2.f32 %v1830_v31  ;;  %v1832_v57 = vmul.f32 1.442695, %v1818_v54  ;;  %v1819_v40 = vsub.f32 %v9168_v22, %v1811_v17 }
 0x6cb   : > { %v1836_v11 = vsel %vm1226_vm2, %v9214_v21, 0.0 }
 0x6cc   : > { %v9219_v41 = vpop.eup %8399  ;;  %8409 = vpow2.f32 %v1832_v57  ;;  %v1834_v38 = vmul.f32 1.442695, %v1819_v40  ;;  %1837 = vadd.xlane.f32.xlu0 %v1836_v11  ;;  %v6959_v40 = vld [vmem:[%s8918_s22 + $0x3] ss:$0 sm:$0xff] }
 0x6cd   : > { %v1839_v15 = vsel %vm1226_vm2, %v9219_v41, 0.0 }
 0x6ce   : > { %v9223_v42 = vpop.eup %8401  ;;  %8411 = vpow2.f32 %v1834_v38  ;;  %1840 = vadd.xlane.f32.xlu1 %v1839_v15 }
 0x6cf   : > { %v1842_v16 = vsel %vm1226_vm2, %v9223_v42, 0.0 }
 0x6d0   : > { %v9227_v44 = vpop.eup %8403  ;;  %1843 = vadd.xlane.f32.xlu0 %v1842_v16 }
 0x6d1   : > { %v1845_v22 = vsel %vm1226_vm2, %v9227_v44, 0.0 }
 0x6d2   : > { %v9231_v45 = vpop.eup %8405  ;;  %1846 = vadd.xlane.f32.xlu1 %v1845_v22 }
 0x6d3   : > { %v1848_v46 = vsel %vm1226_vm2, %v9231_v45, 0.0 }
 0x6d4   : > { %v9235_v47 = vpop.eup %8407  ;;  %1849 = vadd.xlane.f32.xlu0 %v1848_v46 }
 0x6d5   : > { %v1851_v48 = vsel %vm1226_vm2, %v9235_v47, 0.0 }
 0x6d6   : > { %v9239_v49 = vpop.eup %8409  ;;  %1852 = vadd.xlane.f32.xlu1 %v1851_v48 }
 0x6d7   : > { %v1854_v50 = vsel %vm1226_vm2, %v9239_v49, 0.0 }
 0x6d8   : > { %v9243_v55 = vpop.eup %8411  ;;  %1855 = vadd.xlane.f32.xlu0 %v1854_v50 }
 0x6d9   : > { %v1857_v56 = vsel %vm1226_vm2, %v9243_v55, 0.0 }
 0x6da   : > { %1858 = vadd.xlane.f32.xlu1 %v1857_v56 }
 0x742   : > { %v7747_v43 = vpop.f32.mrb[48].mxu1 }
 0x743   : > { %v2464_v60 = vpop.f32.mrb[49].mxu1  ;;  %v2497_v61 = vmul.f32 0.35355338, %v7747_v43 }
 0x744   : > { %v2495_v0 = vmul.f32 0.35355338, %v2464_v60  ;;  %v7748_v3 = vpop.f32.mrb[50].mxu1 }
 0x745   : > { %v2467_v4 = vpop.f32.mrb[51].mxu1  ;;  %v2498_v6 = vmul.f32 0.35355338, %v7748_v3  ;;  %v9256_v62 = vadd.f32 %v2497_v61, %v8967_v59 }
 0x746   : > { %v2496_v8 = vmul.f32 0.35355338, %v2467_v4  ;;  %v9248_v9 = vadd.f32 %v2495_v0, %v8957_v53 }
 0x747   : > { %v9261_v51 = vadd.f32 %v2498_v6, %v8975_v63 }
 0x748   : > { %v2511_v10 = vsel %vm1226_vm2, %v9248_v9, -inf  ;;  %v9253_v12 = vadd.f32 %v2496_v8, %v8962_v58  ;;  %v2517_v58 = vsel %vm1226_vm2, %v9256_v62, -inf }
 0x749   : > { %2512 = vmax.xlane.f32.xlu0 %v2511_v10  ;;  %v2520_v17 = vsel %vm1226_vm2, %v9261_v51, -inf }
 0x74a   : > { %v7751_v1 = vpop.f32.mrb[52].mxu1  ;;  %v2514_v25 = vsel %vm1226_vm2, %v9253_v12, -inf }
 0x74b   : > { %v2480_v53 = vpop.f32.mrb[53].mxu1  ;;  %2515 = vmax.xlane.f32.xlu1 %v2514_v25  ;;  %v2501_v2 = vmul.f32 0.35355338, %v7751_v1 }
 0x74c   : > { %v2499_v52 = vmul.f32 0.35355338, %v2480_v53  ;;  %v7752_v26 = vpop.f32.mrb[54].mxu1 }
 0x74d   : > { %2518 = vmax.xlane.f32.xlu0 %v2517_v58  ;;  %v2483_v59 = vpop.f32.mrb[55].mxu1  ;;  %v2502_v31 = vmul.f32 0.35355338, %v7752_v26  ;;  %v9277_v38 = vadd.f32 %v2501_v2, %v9005_v14 }
 0x74e   : > { %v2500_v54 = vmul.f32 0.35355338, %v2483_v59  ;;  %v9268_v57 = vadd.f32 %v2499_v52, %v8993_v7 }
 0x74f   : > { %2521 = vmax.xlane.f32.xlu1 %v2520_v17  ;;  %v9282_v22 = vadd.f32 %v2502_v31, %v9015_v19  ;;  %v6983_v17 = vld [vmem:[%s8918_s22 + $0xb] ss:$0 sm:$0xff] }
 0x750   : > { %v2523_v63 = vsel %vm1226_vm2, %v9268_v57, -inf  ;;  %v9274_v11 = vadd.f32 %v2500_v54, %v9000_v13  ;;  %v2529_v13 = vsel %vm1226_vm2, %v9277_v38, -inf }
 0x751   : > { %2524 = vmax.xlane.f32.xlu0 %v2523_v63  ;;  %v2532_v19 = vsel %vm1226_vm2, %v9282_v22, -inf }
 0x752   : > { %v7785_v15 = vpop.f32.mrb[56].mxu1  ;;  %v2526_v16 = vsel %vm1226_vm2, %v9274_v11, -inf }
 0x753   : > { %v9284_v7 = vadd.f32 %v7785_v15, %v6959_v40  ;;  %v2837_v46 = vpop.f32.mrb[57].mxu1  ;;  %2527 = vmax.xlane.f32.xlu1 %v2526_v16 }
 0x754   : > { %v7786_v48 = vpop.f32.mrb[58].mxu1  ;;  %v9290_v56 = vadd.f32 %v6959_v40, %v2837_v46 }
 0x755   : > { %v9288_v50 = vadd.f32 %v7786_v48, %v6959_v40  ;;  %2530 = vmax.xlane.f32.xlu0 %v2529_v13  ;;  %v2840_v14 = vpop.f32.mrb[59].mxu1 }
 0x756   : > { %v9292_v43 = vadd.f32 %v6959_v40, %v2840_v14 }
 0x757   : > { %v3049_v60 = vpack.c.bf16 %v9288_v50, %v9284_v7  ;;  %2533 = vmax.xlane.f32.xlu1 %v2532_v19  ;;  %v8669_v50 = vld [vmem:[%s10453_s1] sm:$0xff] }
 0x758   : > { %v3048_v61 = vpack.c.bf16 %v9292_v43, %v9290_v56 }
 0x759   : > { %v1838_v0 = vpop.xlane.xlu0 %1837 }
 0x75a   : > { %8413 = vrcp.f32 %v1838_v0  ;;  %v7789_v3 = vpop.f32.mrb[60].mxu1 }
 0x75b   : > { %v9300_v4 = vadd.f32 %v7789_v3, %v6959_v40  ;;  %v2853_v6 = vpop.f32.mrb[61].mxu1  ;;  %v1841_v8 = vpop.xlane.xlu1 %1840 }
 0x75c   : > { %v9302_v10 = vadd.f32 %v6959_v40, %v2853_v6  ;;  %8415 = vrcp.f32 %v1841_v8  ;;  %v7790_v1 = vpop.f32.mrb[62].mxu1 }
 0x75d   : > { %v9304_v25 = vadd.f32 %v7790_v1, %v6959_v40  ;;  %v1844_v53 = vpop.xlane.xlu0 %1843  ;;  %v2856_v2 = vpop.f32.mrb[63].mxu1 }
 0x75e   : > { %8417 = vrcp.f32 %v1844_v53  ;;  %v9306_v52 = vadd.f32 %v6959_v40, %v2856_v2 }
 0x75f   : > { %v1847_v58 = vpop.xlane.xlu1 %1846 }
 0x760   : > { %v3050_v59 = vpack.c.bf16 %v9306_v52, %v9302_v10  ;;  %8419 = vrcp.f32 %v1847_v58  ;;  %v8671_v52 = vld [vmem:[%s10453_s1 + $0x10] sm:$0xff] }
 0x761   : > { %v1850_v31 = vpop.xlane.xlu0 %1849 }
 0x762   : > { %8421 = vrcp.f32 %v1850_v31  ;;  %v7809_v54 = vpop.f32.mrb[64].mxu1 }
 0x763   : > { %v3017_v63 = vpop.f32.mrb[65].mxu1  ;;  %v1853_v15 = vpop.xlane.xlu1 %1852  ;;  %v3026_v48 = vadd.f32 %v7809_v54, %v6983_v17 }
 0x764   : > { %v8414_v16 = vpop.eup %8413  ;;  %8423 = vrcp.f32 %v1853_v15  ;;  %v7810_v46 = vpop.f32.mrb[66].mxu1  ;;  %v3018_v0 = vadd.f32 %v6983_v17, %v3017_v63 }
 0x765   : > { %v3029_v40 = vadd.f32 %v7810_v46, %v6983_v17  ;;  %v1856_v13 = vpop.xlane.xlu0 %1855  ;;  %v3020_v14 = vpop.f32.mrb[67].mxu1  ;;  %v1868_v1 = vmul.f32 %v8414_v16, %v9214_v21 }
 0x766   : > { %v8416_v19 = vpop.eup %8415  ;;  %8425 = vrcp.f32 %v1856_v13  ;;  %v3021_v3 = vadd.f32 %v6983_v17, %v3020_v14 }
 0x767   : > { %v3254_v6 = vpack.c.bf16 %v3029_v40, %v3026_v48  ;;  %v1859_v8 = vpop.xlane.xlu1 %1858  ;;  %v1869_v53 = vmul.f32 %v8416_v19, %v9219_v41 }
 0x768   : > { %v8418_v2 = vpop.eup %8417  ;;  %v3253_v58 = vpack.c.bf16 %v3021_v3, %v3018_v0  ;;  %8427 = vrcp.f32 %v1859_v8 }
 0x769   : > { %v1876_v31 = vpack.c.bf16 %v1869_v53, %v1868_v1  ;;  %v1870_v54 = vmul.f32 %v8418_v2, %v9223_v42 }
 0x76a   : > { %v8420_v15 = vpop.eup %8419  ;;  %v7813_v26 = vpop.f32.mrb[68].mxu1  ;;  %7831 = vmatprep.subr.bf16.mxu1 %v3253_v58 }
 0x76b   : > { %v1871_v46 = vmul.f32 %v8420_v15, %v9227_v44  ;;  %7673 = vmatprep.mubr.msk.bf16.mxu0 %vm1226_vm2, %v1876_v31  ;;  %v3033_v63 = vpop.f32.mrb[69].mxu1  ;;  %7832 = vmatpush3.bf16.msra.mxu1 %v3253_v58  ;;  %v3042_v41 = vadd.f32 %v7813_v26, %v6983_v17 }
 0x76c   : > { %v8422_v48 = vpop.eup %8421  ;;  %v7814_v40 = vpop.f32.mrb[70].mxu1  ;;  %7833 = vmatprep.subr.bf16.mxu1 %v3254_v6  ;;  %v3034_v19 = vadd.f32 %v6983_v17, %v3033_v63 }
 0x76d   : > { %v1877_v21 = vpack.c.bf16 %v1871_v46, %v1870_v54  ;;  %v3045_v16 = vadd.f32 %v7814_v40, %v6983_v17  ;;  %v3036_v13 = vpop.f32.mrb[71].mxu1  ;;  %v1872_v42 = vmul.f32 %v8422_v48, %v9231_v45  ;;  %v6896_v45 = vld [vmem:[%s9331_s17 + $0x4] sm:$0xf] }
 0x76e   : > { %v8424_v14 = vpop.eup %8423  ;;  %v3037_v0 = vadd.f32 %v6983_v17, %v3036_v13  ;;  %8253 = vmatprep.subr.msk.bf16.mxu0 %vm1979_vm3, %v6896_v45 }
 0x76f   : > { %v3256_v3 = vpack.c.bf16 %v3045_v16, %v3042_v41  ;;  %7674 = vmatmul.mubr.msk.bf16.vlgmr.msra.gmra.mrb[40].mxu0 %vm1226_vm2, %v1877_v21  ;;  %7834 = vmatpush3.bf16.msra.mxu1 %v3254_v6  ;;  %v1873_v44 = vmul.f32 %v8424_v14, %v9235_v47  ;;  %v1981_v47 = vsel %vm1979_vm3, %v6896_v45, 0 }
 0x770   : > { %v8426_v8 = vpop.eup %8425  ;;  %v3255_v1 = vpack.c.bf16 %v3037_v0, %v3034_v19  ;;  %7682 = vmatpush3.bf16.msra.mxu0 %v1981_v47 }
 0x771   : > { %v1878_v53 = vpack.c.bf16 %v1873_v44, %v1872_v42  ;;  %v1874_v26 = vmul.f32 %v8426_v8, %v9239_v49  ;;  %v9338_v49 = vld [vmem:[%s9331_s17] sm:$0xf] }
 0x772   : > { %v8428_v2 = vpop.eup %8427  ;;  %7835 = vmatprep.subr.bf16.mxu1 %v3255_v1  ;;  %8254 = vmatprep.subr.msk.bf16.mxu0 %vm1979_vm3, %v9338_v49 }
 0x773   : > { %7677 = vmatprep.mubr.msk.bf16.mxu0 %vm1226_vm2, %v1878_v53  ;;  %7836 = vmatpush3.bf16.msra.mxu1 %v3255_v1  ;;  %v1875_v17 = vmul.f32 %v8428_v2, %v9243_v55 }
 0x774   : > { %7837 = vmatprep.subr.bf16.mxu1 %v3256_v3 }
 0x775   : > { %v1879_v58 = vpack.c.bf16 %v1875_v17, %v1874_v26 }
 0x777   : > { %7678 = vmatmul.mubr.msk.bf16.gmra.mrb[44].mxu0 %vm1226_vm2, %v1879_v58  ;;  %7838 = vmatpush3.bf16.msra.mxu1 %v3256_v3 }
 0x7d6   : > { %v2513_v55 = vpop.xlane.xlu0 %2512 }
 0x7d7   : > { %v2535_v6 = vsub.f32 %v9248_v9, %v2513_v55 }
 0x7d8   : > { %v2516_v31 = vpop.xlane.xlu1 %2515 }
 0x7d9   : > { %v2543_v15 = vmul.f32 1.442695, %v2535_v6  ;;  %v2536_v54 = vsub.f32 %v9253_v12, %v2516_v31 }
 0x7da   : > { %v2519_v46 = vpop.xlane.xlu0 %2518 }
 0x7db   : > { %8429 = vpow2.f32 %v2543_v15  ;;  %v2545_v63 = vmul.f32 1.442695, %v2536_v54  ;;  %v2537_v48 = vsub.f32 %v9256_v62, %v2519_v46 }
 0x7dc   : > { %v2522_v40 = vpop.xlane.xlu1 %2521 }
 0x7dd   : > { %8431 = vpow2.f32 %v2545_v63  ;;  %v2547_v21 = vmul.f32 1.442695, %v2537_v48  ;;  %v2538_v41 = vsub.f32 %v9261_v51, %v2522_v40 }
 0x7de   : > { %v2525_v16 = vpop.xlane.xlu0 %2524 }
 0x7df   : > { %8433 = vpow2.f32 %v2547_v21  ;;  %v2549_v13 = vmul.f32 1.442695, %v2538_v41  ;;  %v2539_v14 = vsub.f32 %v9268_v57, %v2525_v16  ;;  %v2061_v41 = vsel %vm1979_vm3, %v9338_v49, 0  ;;  %v8315_v16 = vld [vmem:[%s8811_s27 + $0xa0] sm:$0xff]   ;;  %v8316_v49 = vld [vmem:[%s8811_s27 + $0xa8] sm:$0xff]  }
 0x7e0   : > { %v2528_v9 = vpop.xlane.xlu1 %2527 }
 0x7e1   : > { %8435 = vpow2.f32 %v2549_v13  ;;  %v2551_v19 = vmul.f32 1.442695, %v2539_v14  ;;  %v2540_v12 = vsub.f32 %v9274_v11, %v2528_v9 }
 0x7e2   : > { %v2531_v0 = vpop.xlane.xlu0 %2530 }
 0x7e3   : > { %8437 = vpow2.f32 %v2551_v19  ;;  %v2553_v3 = vmul.f32 1.442695, %v2540_v12  ;;  %v2541_v62 = vsub.f32 %v9277_v38, %v2531_v0 }
 0x7e4   : > { %v2534_v42 = vpop.xlane.xlu1 %2533 }
 0x7e5   : > { %v9349_v44 = vpop.eup %8429  ;;  %8439 = vpow2.f32 %v2553_v3  ;;  %v2555_v51 = vmul.f32 1.442695, %v2541_v62  ;;  %v2542_v8 = vsub.f32 %v9282_v22, %v2534_v42 }
 0x7e6   : > { %v2559_v57 = vsel %vm1226_vm2, %v9349_v44, 0.0 }
 0x7e7   : > { %v9354_v1 = vpop.eup %8431  ;;  %8441 = vpow2.f32 %v2555_v51  ;;  %v2557_v53 = vmul.f32 1.442695, %v2542_v8  ;;  %2560 = vadd.xlane.f32.xlu0 %v2559_v57 }
 0x7e8   : > { %v2562_v11 = vsel %vm1226_vm2, %v9354_v1, 0.0 }
 0x7e9   : > { %v9358_v2 = vpop.eup %8433  ;;  %8443 = vpow2.f32 %v2557_v53  ;;  %2563 = vadd.xlane.f32.xlu1 %v2562_v11 }
 0x7ea   : > { %v2565_v38 = vsel %vm1226_vm2, %v9358_v2, 0.0 }
 0x7eb   : > { %v9362_v26 = vpop.eup %8435  ;;  %2566 = vadd.xlane.f32.xlu0 %v2565_v38 }
 0x7ec   : > { %v2568_v22 = vsel %vm1226_vm2, %v9362_v26, 0.0 }
 0x7ed   : > { %v9366_v17 = vpop.eup %8437  ;;  %2569 = vadd.xlane.f32.xlu1 %v2568_v22 }
 0x7ee   : > { %v2571_v58 = vsel %vm1226_vm2, %v9366_v17, 0.0 }
 0x7ef   : > { %v9370_v45 = vpop.eup %8439  ;;  %2572 = vadd.xlane.f32.xlu0 %v2571_v58 }
 0x7f0   : > { %v2574_v47 = vsel %vm1226_vm2, %v9370_v45, 0.0 }
 0x7f1   : > { %v9374_v55 = vpop.eup %8441  ;;  %2575 = vadd.xlane.f32.xlu1 %v2574_v47 }
 0x7f2   : > { %v2577_v6 = vsel %vm1226_vm2, %v9374_v55, 0.0 }
 0x7f3   : > { %v9378_v31 = vpop.eup %8443  ;;  %2578 = vadd.xlane.f32.xlu0 %v2577_v6 }
 0x7f4   : > { %v2580_v15 = vsel %vm1226_vm2, %v9378_v31, 0.0 }
 0x7f5   : > { %2581 = vadd.xlane.f32.xlu1 %v2580_v15 }
 0x842   : > { %v7675_v54 = vpop.f32.mrb[40].mxu0 }
 0x843   : > { %v1930_v46 = vpop.f32.mrb[41].mxu0 }
 0x844   : > { %v7676_v63 = vpop.f32.mrb[42].mxu0 }
 0x845   : > { %v1962_v48 = vpack.c.bf16 %v7676_v63, %v7675_v54  ;;  %v1933_v40 = vpop.f32.mrb[43].mxu0 }
 0x846   : > { %v1961_v21 = vpack.c.bf16 %v1933_v40, %v1930_v46 }
 0x848   : > { %7683 = vmatprep.mubr.msk.bf16.mxu0 %vm1120_vm1, %v1961_v21 }
 0x849   : > { %7684 = vmatmul.mubr.msk.bf16.vlgmr.msra.gmra.mrb[48].mxu0 %vm1120_vm1, %v1962_v48 }
 0x84a   : > { %v7679_v13 = vpop.f32.mrb[44].mxu0  ;;  %7692 = vmatpush3.bf16.msra.mxu0 %v2061_v41 }
 0x84b   : > { %v1946_v14 = vpop.f32.mrb[45].mxu0  ;;  %7725 = vmatprep.subr.bf16.mxu0 %v8315_v16 }
 0x84c   : > { %v7680_v9 = vpop.f32.mrb[46].mxu0 }
 0x84d   : > { %v1964_v19 = vpack.c.bf16 %v7680_v9, %v7679_v13  ;;  %v1949_v12 = vpop.f32.mrb[47].mxu0 }
 0x84e   : > { %v1963_v0 = vpack.c.bf16 %v1949_v12, %v1946_v14  ;;  %v6949_v12 = vld [vmem:[%s9331_s17 + $0x8] sm:$0xf] }
 0x850   : > { %7687 = vmatprep.mubr.msk.bf16.mxu0 %vm1120_vm1, %v1963_v0 }
 0x851   : > { %7688 = vmatmul.mubr.msk.bf16.gmra.mrb[52].mxu0 %vm1120_vm1, %v1964_v19 }
 0x852   : > { %7693 = vmatprep.mubr.msk.bf16.mxu0 %vm1120_vm1, %v1400_v18 }
 0x859   : > { %7694 = vmatmul.mubr.msk.bf16.vlgmr.msra.gmra.mrb[48].mxu0 %vm1120_vm1, %v1401_v33 }
 0x85a   : > { %7697 = vmatprep.mubr.msk.bf16.mxu0 %vm1120_vm1, %v1402_v37  ;;  %7726 = vmatpush3.bf16.msra.mxu0 %v8315_v16 }
 0x85b   : > { %7727 = vmatprep.subr.bf16.mxu0 %v8316_v49 }
 0x85e   : > { %7728 = vmatpush3.bf16.msra.mxu0 %v8316_v49 }
 0x861   : > { %7698 = vmatmul.mubr.msk.bf16.gmra.mrb[52].mxu0 %vm1120_vm1, %v1403_v24 }
 0x862   : > { %7729 = vmatprep.mubr.msk.bf16.mxu0 %vm722_vm0, %v8873_v30 }
 0x869   : > { %7730 = vmatmul.mubr.msk.bf16.vlgmr.msra.gmra.mrb[56].mxu0 %vm722_vm0, %v8881_v35 }
 0x86a   : > { %7733 = vmatprep.mubr.msk.bf16.mxu0 %vm722_vm0, %v8890_v29 }
 0x871   : > { %7734 = vmatmul.mubr.msk.bf16.gmra.mrb[60].mxu0 %vm722_vm0, %v8898_v39 }
 0x874   : > { %v2561_v27 = vpop.xlane.xlu0 %2560 }
 0x875   : > { %8445 = vrcp.f32 %v2561_v27 }
 0x876   : > { %v2564_v32 = vpop.xlane.xlu1 %2563 }
 0x877   : > { %8447 = vrcp.f32 %v2564_v32  ;;  %v2703_v32 = vsel %vm1979_vm3, %v6949_v12, 0 }
 0x878   : > { %v2567_v28 = vpop.xlane.xlu0 %2566 }
 0x87a   : > { %v2570_v23 = vpop.xlane.xlu1 %2569 }
 0x87b   : > { %8449 = vrcp.f32 %v2570_v23 }
 0x87c   : > { %v2573_v11 = vpop.xlane.xlu0 %2572 }
 0x87e   : > { %v2576_v62 = vpop.xlane.xlu1 %2575 }
 0x87f   : > { %v8446_v5 = vpop.eup %8445  ;;  %8451 = vrcp.f32 %v2576_v62 }
 0x880   : > { %v2591_v34 = vmul.f32 %v8446_v5, %v9349_v44  ;;  %8453 = vrcp.f32 %v2567_v28  ;;  %v2579_v46 = vpop.xlane.xlu0 %2578 }
 0x881   : > { %v8448_v33 = vpop.eup %8447  ;;  %8455 = vrcp.f32 %v2573_v11 }
 0x882   : > { %v2592_v18 = vmul.f32 %v8448_v33, %v9354_v1  ;;  %v2582_v58 = vpop.xlane.xlu1 %2581 }
 0x883   : > { %8457 = vrcp.f32 %v2582_v58 }
 0x884   : > { %v2599_v20 = vpack.c.bf16 %v2592_v18, %v2591_v34  ;;  %8459 = vrcp.f32 %v2579_v46 }
 0x885   : > { %v8450_v41 = vpop.eup %8449 }
 0x886   : > { %7761 = vmatprep.mubr.msk.bf16.mxu0 %vm1226_vm2, %v2599_v20  ;;  %v2594_v9 = vmul.f32 %v8450_v41, %v9362_v26  ;;  %v10469_v41 = vpack.c.bf16 %v9304_v25, %v9300_v4  ;;  %v8670_v4 = vld [vmem:[%s10453_s1 + $0x8] sm:$0xff] }
 0x889   : > { %v8452_v16 = vpop.eup %8451 }
 0x88a   : > { %v8454_v13 = vpop.eup %8453  ;;  %v2596_v19 = vmul.f32 %v8452_v16, %v9370_v45 }
 0x88b   : > { %v8456_v14 = vpop.eup %8455  ;;  %v2593_v0 = vmul.f32 %v8454_v13, %v9358_v2 }
 0x88c   : > { %v2595_v49 = vmul.f32 %v8456_v14, %v9366_v17  ;;  %v8317_v17 = vld [vmem:[%s8811_s27 + $0x70] sm:$0xff]  }
 0x88d   : > { %v2600_v27 = vpack.c.bf16 %v2594_v9, %v2593_v0  ;;  %v8458_v5 = vpop.eup %8457 }
 0x88e   : > { %v2601_v33 = vpack.c.bf16 %v2596_v19, %v2595_v49  ;;  %v8460_v26 = vpop.eup %8459  ;;  %v2598_v2 = vmul.f32 %v8458_v5, %v9378_v31 }
 0x88f   : > { %v2597_v45 = vmul.f32 %v8460_v26, %v9374_v55 }
 0x891   : > { %v2602_v34 = vpack.c.bf16 %v2598_v2, %v2597_v45 }
 0x93c   : > { %v7731_v24 = vpop.f32.mrb[56].mxu0 }
 0x93d   : > { %v2367_v37 = vpop.f32.mrb[57].mxu0  ;;  %v2376_v42 = vadd.f32 %v7731_v24, %v6934_v36 }
 0x93e   : > { %v7732_v3 = vpop.f32.mrb[58].mxu0  ;;  %v2368_v57 = vadd.f32 %v6934_v36, %v2367_v37  ;;  %v8318_v37 = vld [vmem:[%s8811_s27 + $0x78] sm:$0xff]  }
 0x93f   : > { %v2379_v51 = vadd.f32 %v7732_v3, %v6934_v36  ;;  %v2370_v8 = vpop.f32.mrb[59].mxu0 }
 0x940   : > { %v2371_v53 = vadd.f32 %v6934_v36, %v2370_v8 }
 0x941   : > { %v2604_v44 = vpack.c.bf16 %v2379_v51, %v2376_v42 }
 0x942   : > { %v2603_v1 = vpack.c.bf16 %v2371_v53, %v2368_v57  ;;  %v6971_v57 = vld [vmem:[%s8918_s22 + $0x7] ss:$0 sm:$0xff] }
 0x944   : > { %v7735_v38 = vpop.f32.mrb[60].mxu0  ;;  %7753 = vmatprep.subr.bf16.mxu0 %v2603_v1 }
 0x945   : > { %v2383_v22 = vpop.f32.mrb[61].mxu0  ;;  %7754 = vmatpush3.bf16.msra.mxu0 %v2603_v1  ;;  %v2392_v6 = vadd.f32 %v7735_v38, %v6934_v36 }
 0x946   : > { %v7736_v47 = vpop.f32.mrb[62].mxu0  ;;  %7755 = vmatprep.subr.bf16.mxu0 %v2604_v44  ;;  %v2384_v63 = vadd.f32 %v6934_v36, %v2383_v22 }
 0x947   : > { %v2395_v15 = vadd.f32 %v7736_v47, %v6934_v36  ;;  %v2386_v54 = vpop.f32.mrb[63].mxu0 }
 0x948   : > { %v2387_v48 = vadd.f32 %v6934_v36, %v2386_v54 }
 0x949   : > { %v2606_v40 = vpack.c.bf16 %v2395_v15, %v2392_v6  ;;  %7756 = vmatpush3.bf16.msra.mxu0 %v2604_v44 }
 0x94a   : > { %v2605_v21 = vpack.c.bf16 %v2387_v48, %v2384_v63 }
 0x94c   : > { %7757 = vmatprep.subr.bf16.mxu0 %v2605_v21 }
 0x94d   : > { %7758 = vmatpush3.bf16.msra.mxu0 %v2605_v21 }
 0x94e   : > { %7759 = vmatprep.subr.bf16.mxu0 %v2606_v40 }
 0x951   : > { %7760 = vmatpush3.bf16.msra.mxu0 %v2606_v40 }
 0x952   : > { %8259 = vmatprep.subr.msk.bf16.mxu0 %vm1979_vm3, %v6949_v12 }
 0x954   : > { %7762 = vmatmul.mubr.msk.bf16.vlgmr.msra.gmra.mrb[64].mxu0 %vm1226_vm2, %v2600_v27 }
 0x955   : > { %7765 = vmatprep.mubr.msk.bf16.mxu0 %vm1226_vm2, %v2601_v33  ;;  %7770 = vmatpush3.bf16.msra.mxu0 %v2703_v32  ;;  %v8672_v32 = vld [vmem:[%s10453_s1 + $0x18] sm:$0xff] }
 0x956   : > { %7791 = vmatprep.subr.bf16.mxu0 %v8317_v17 }
 0x95c   : > { %7766 = vmatmul.mubr.msk.bf16.gmra.mrb[68].mxu0 %vm1226_vm2, %v2602_v34 }
 0xa27   : > { %v7763_v18 = vpop.f32.mrb[64].mxu0 }
 0xa28   : > { %v2653_v20 = vpop.f32.mrb[65].mxu0 }
 0xa29   : > { %v7764_v23 = vpop.f32.mrb[66].mxu0 }
 0xa2a   : > { %v2685_v28 = vpack.c.bf16 %v7764_v23, %v7763_v18  ;;  %v2656_v24 = vpop.f32.mrb[67].mxu0 }
 0xa2b   : > { %v2684_v36 = vpack.c.bf16 %v2656_v24, %v2653_v20 }
 0xa2d   : > { %7771 = vmatprep.mubr.msk.bf16.mxu0 %vm1120_vm1, %v2684_v36 }
 0xa2e   : > { %7772 = vmatmul.mubr.msk.bf16.vlgmr.msra.gmra.mrb[48].mxu0 %vm1120_vm1, %v2685_v28  ;;  %v8673_v28 = vld [vmem:[%s10453_s1 + $0x20] sm:$0xff] }
 0xa2f   : > { %v7767_v3 = vpop.f32.mrb[68].mxu0  ;;  %7792 = vmatpush3.bf16.msra.mxu0 %v8317_v17 }
 0xa30   : > { %v2669_v55 = vpop.f32.mrb[69].mxu0  ;;  %7793 = vmatprep.subr.bf16.mxu0 %v8318_v37 }
 0xa31   : > { %v7768_v31 = vpop.f32.mrb[70].mxu0 }
 0xa32   : > { %v2687_v62 = vpack.c.bf16 %v7768_v31, %v7767_v3  ;;  %v2672_v42 = vpop.f32.mrb[71].mxu0 }
 0xa33   : > { %v2686_v51 = vpack.c.bf16 %v2672_v42, %v2669_v55  ;;  %7794 = vmatpush3.bf16.msra.mxu0 %v8318_v37  ;;  %v8674_v37 = vld [vmem:[%s10453_s1 + $0x28] sm:$0xff]  ;;  %v8675_v55 = vld [vmem:[%s10453_s1 + $0x30] sm:$0xff]  ;;  %v8676_v42 = vld [vmem:[%s10453_s1 + $0x38] sm:$0xff] }
 0xa35   : > { %7775 = vmatprep.mubr.msk.bf16.mxu0 %vm1120_vm1, %v2686_v51 }
 0xa36   : > { %7776 = vmatmul.mubr.msk.bf16.gmra.mrb[52].mxu0 %vm1120_vm1, %v2687_v62 }
 0xa37   : > { %7795 = vmatprep.mubr.msk.bf16.mxu0 %vm722_vm0, %v8873_v30 }
 0xa3e   : > { %7796 = vmatmul.mubr.msk.bf16.vlgmr.msra.gmra.mrb[72].mxu0 %vm722_vm0, %v8881_v35 }
 0xa3f   : > { %7799 = vmatprep.mubr.msk.bf16.mxu0 %vm722_vm0, %v8890_v29 }
 0xa46   : > { %7800 = vmatmul.mubr.msk.bf16.gmra.mrb[76].mxu0 %vm722_vm0, %v8898_v39 }
 0xa47   : > { %7823 = vmatprep.mubr.msk.bf16.mxu0 %vm1120_vm1, %v3048_v61 }
 0xb11   : > { %v7797_v8 = vpop.f32.mrb[72].mxu0 }
 0xb12   : > { %v2927_v53 = vpop.f32.mrb[73].mxu0  ;;  %v2936_v44 = vadd.f32 %v7797_v8, %v6971_v57 }
 0xb13   : > { %v7798_v11 = vpop.f32.mrb[74].mxu0  ;;  %v2928_v38 = vadd.f32 %v6971_v57, %v2927_v53 }
 0xb14   : > { %v2939_v30 = vadd.f32 %v7798_v11, %v6971_v57  ;;  %v2930_v1 = vpop.f32.mrb[75].mxu0 }
 0xb15   : > { %v2931_v35 = vadd.f32 %v6971_v57, %v2930_v1 }
 0xb16   : > { %v3053_v22 = vpack.c.bf16 %v2939_v30, %v2936_v44 }
 0xb17   : > { %v3052_v58 = vpack.c.bf16 %v2931_v35, %v2928_v38 }
 0xb18   : > { %v3072_v48 = vsel %vm1120_vm1, %v3053_v22, 0 }
 0xb19   : > { %v7801_v29 = vpop.f32.mrb[76].mxu0  ;;  %8260 = vmatprep.subr.msk.bf16.mxu0 %vm1120_vm1, %v3052_v58  ;;  %v3069_v39 = vsel %vm1120_vm1, %v3052_v58, 0 }
 0xb1a   : > { %v2943_v47 = vpop.f32.mrb[77].mxu0  ;;  %7816 = vmatpush3.bf16.xpose.msra.mxu0 %v3069_v39  ;;  %v2952_v43 = vadd.f32 %v7801_v29, %v6971_v57 }
 0xb1b   : > { %v7802_v56 = vpop.f32.mrb[78].mxu0  ;;  %8261 = vmatprep.subr.msk.bf16.mxu0 %vm1120_vm1, %v3053_v22  ;;  %v2944_v15 = vadd.f32 %v6971_v57, %v2943_v47 }
 0xb1c   : > { %v2955_v61 = vadd.f32 %v7802_v56, %v6971_v57  ;;  %v2946_v6 = vpop.f32.mrb[79].mxu0 }
 0xb1d   : > { %v2947_v54 = vadd.f32 %v6971_v57, %v2946_v6 }
 0xb1e   : > { %v3055_v46 = vpack.c.bf16 %v2955_v61, %v2952_v43 }
 0xb1f   : > { %v3054_v63 = vpack.c.bf16 %v2947_v54, %v2944_v15 }
 0xb20   : > { %v3078_v21 = vsel %vm1120_vm1, %v3055_v46, 0 }
 0xb21   : > { %v3075_v40 = vsel %vm1120_vm1, %v3054_v63, 0 }
 0xb22   : > { %7818 = vmatpush3.bf16.xpose.msra.mxu0 %v3072_v48 }
 0xb23   : > { %8262 = vmatprep.subr.msk.bf16.mxu0 %vm1120_vm1, %v3054_v63 }
 0xb2a   : > { %7820 = vmatpush3.bf16.xpose.msra.mxu0 %v3075_v40 }
 0xb2b   : > { %8263 = vmatprep.subr.msk.bf16.mxu0 %vm1120_vm1, %v3055_v46 }
 0xb32   : > { %7822 = vmatpush3.bf16.xpose.msra.mxu0 %v3078_v21 }
 0xb39   : > { %7824 = vmatmul.mubr.msk.bf16.vlgmr.msra.gmra.mrb[80].mxu0 %vm1120_vm1, %v3049_v60 }
 0xb3a   : > { %7827 = vmatprep.mubr.msk.bf16.mxu0 %vm1120_vm1, %v3050_v59 }
 0xb41   : > { %7828 = vmatmul.mubr.msk.bf16.gmra.mrb[84].mxu0 %vm1120_vm1, %v10469_v41 }
 0xc0c   : > { %v7825_v16 = vpop.f32.mrb[80].mxu0 }
 0xc0d   : > { %v3114_v13 = vpop.f32.mrb[81].mxu0  ;;  %v3147_v14 = vmul.f32 0.35355338, %v7825_v16 }
 0xc0e   : > { %v3145_v9 = vmul.f32 0.35355338, %v3114_v13  ;;  %v7826_v19 = vpop.f32.mrb[82].mxu0 }
 0xc0f   : > { %v3117_v12 = vpop.f32.mrb[83].mxu0  ;;  %v3148_v0 = vmul.f32 0.35355338, %v7826_v19  ;;  %v3155_v59 = vadd.f32 %v8671_v52, %v3147_v14 }
 0xc10   : > { %v3146_v7 = vmul.f32 0.35355338, %v3117_v12  ;;  %v3153_v60 = vadd.f32 %v8669_v50, %v3145_v9 }
 0xc11   : > { %v3156_v5 = vadd.f32 %v8672_v32, %v3148_v0  ;;  %v3167_v34 = vsel %vm1226_vm2, %v3155_v59, -inf }
 0xc12   : > { %v3161_v10 = vsel %vm1226_vm2, %v3153_v60, -inf  ;;  %v3154_v25 = vadd.f32 %v8670_v4, %v3146_v7 }
 0xc13   : > { %3162 = vmax.xlane.f32.xlu0 %v3161_v10  ;;  %v3170_v23 = vsel %vm1226_vm2, %v3156_v5, -inf }
 0xc14   : > { %v7829_v49 = vpop.f32.mrb[84].mxu0  ;;  %v3164_v27 = vsel %vm1226_vm2, %v3154_v25, -inf }
 0xc15   : > { %3165 = vmax.xlane.f32.xlu1 %v3164_v27  ;;  %v3130_v33 = vpop.f32.mrb[85].mxu0  ;;  %v3151_v26 = vmul.f32 0.35355338, %v7829_v49  ;;  %v6998_v27 = vld [vmem:[%s9331_s17 + $0xc] sm:$0xf] }
 0xc16   : > { %v3149_v2 = vmul.f32 0.35355338, %v3130_v33  ;;  %v7830_v45 = vpop.f32.mrb[86].mxu0  ;;  %8264 = vmatprep.subr.msk.bf16.mxu0 %vm1979_vm3, %v6998_v27  ;;  %v3353_v32 = vsel %vm1979_vm3, %v6998_v27, 0 }
 0xc17   : > { %3168 = vmax.xlane.f32.xlu0 %v3167_v34  ;;  %v3133_v17 = vpop.f32.mrb[87].mxu0  ;;  %v3152_v18 = vmul.f32 0.35355338, %v7830_v45  ;;  %v3159_v31 = vadd.f32 %v8675_v55, %v3151_v26  ;;  %7848 = vmatpush3.bf16.msra.mxu0 %v3353_v32  ;;  %v8682_v32 = vld [vmem:[%s8798_s24 + $0x20] sm:$0xff] }
 0xc18   : > { %v3150_v20 = vmul.f32 0.35355338, %v3133_v17  ;;  %v3157_v24 = vadd.f32 %v8673_v28, %v3149_v2 }
 0xc19   : > { %3171 = vmax.xlane.f32.xlu1 %v3170_v23  ;;  %v3160_v51 = vadd.f32 %v8676_v42, %v3152_v18  ;;  %v3179_v8 = vsel %vm1226_vm2, %v3159_v31, -inf }
 0xc1a   : > { %v3173_v36 = vsel %vm1226_vm2, %v3157_v24, -inf  ;;  %v3158_v3 = vadd.f32 %v8674_v37, %v3150_v20 }
 0xc1b   : > { %3174 = vmax.xlane.f32.xlu0 %v3173_v36  ;;  %v3182_v57 = vsel %vm1226_vm2, %v3160_v51, -inf }
 0xc1c   : > { %v3176_v62 = vsel %vm1226_vm2, %v3158_v3, -inf }
 0xc1d   : > { %3177 = vmax.xlane.f32.xlu1 %v3176_v62 }
 0xc1f   : > { %3180 = vmax.xlane.f32.xlu0 %v3179_v8 }
 0xc21   : > { %3183 = vmax.xlane.f32.xlu1 %v3182_v57 }
 0xca0   : > { %v3163_v53 = vpop.xlane.xlu0 %3162 }
 0xca1   : > { %v3185_v11 = vsub.f32 %v3153_v60, %v3163_v53 }
 0xca2   : > { %v3166_v44 = vpop.xlane.xlu1 %3165 }
 0xca3   : > { %v3193_v30 = vmul.f32 1.442695, %v3185_v11  ;;  %v3186_v1 = vsub.f32 %v3154_v25, %v3166_v44 }
 0xca4   : > { %v3169_v38 = vpop.xlane.xlu0 %3168 }
 0xca5   : > { %8461 = vpow2.f32 %v3193_v30  ;;  %v3195_v35 = vmul.f32 1.442695, %v3186_v1  ;;  %v3187_v22 = vsub.f32 %v3155_v59, %v3169_v38 }
 0xca6   : > { %v3172_v58 = vpop.xlane.xlu1 %3171 }
 0xca7   : > { %8463 = vpow2.f32 %v3195_v35  ;;  %v3197_v29 = vmul.f32 1.442695, %v3187_v22  ;;  %v3188_v39 = vsub.f32 %v3156_v5, %v3172_v58 }
 0xca8   : > { %v3175_v47 = vpop.xlane.xlu0 %3174 }
 0xca9   : > { %8465 = vpow2.f32 %v3197_v29  ;;  %v3199_v56 = vmul.f32 1.442695, %v3188_v39  ;;  %v3189_v43 = vsub.f32 %v3157_v24, %v3175_v47 }
 0xcaa   : > { %v3178_v61 = vpop.xlane.xlu1 %3177 }
 0xcab   : > { %8467 = vpow2.f32 %v3199_v56  ;;  %v3201_v6 = vmul.f32 1.442695, %v3189_v43  ;;  %v3190_v15 = vsub.f32 %v3158_v3, %v3178_v61 }
 0xcac   : > { %v3181_v54 = vpop.xlane.xlu0 %3180 }
 0xcad   : > { %8469 = vpow2.f32 %v3201_v6  ;;  %v3203_v46 = vmul.f32 1.442695, %v3190_v15  ;;  %v3191_v63 = vsub.f32 %v3159_v31, %v3181_v54 }
 0xcae   : > { %v3184_v48 = vpop.xlane.xlu1 %3183 }
 0xcaf   : > { %v8462_v40 = vpop.eup %8461  ;;  %8471 = vpow2.f32 %v3203_v46  ;;  %v3205_v21 = vmul.f32 1.442695, %v3191_v63  ;;  %v3192_v41 = vsub.f32 %v3160_v51, %v3184_v48  ;;  %v7003_v63 = vld [vmem:[%s666_s23] ss:$0 sm:$0xff]  ;;  %s683_s23 = scalar_lea.vmem %s10462_s10, %s10481_s19 }
 0xcb0   : > { %v3209_v16 = vsel %vm1226_vm2, %v8462_v40, 0.0 }
 0xcb1   : > { %v8464_v13 = vpop.eup %8463  ;;  %8473 = vpow2.f32 %v3205_v21  ;;  %v3207_v14 = vmul.f32 1.442695, %v3192_v41  ;;  %3210 = vadd.xlane.f32.xlu0 %v3209_v16  ;;  %v8678_v41 = vld [vmem:[%s8798_s24] sm:$0xff] }
 0xcb2   : > { %v3212_v9 = vsel %vm1226_vm2, %v8464_v13, 0.0 }
 0xcb3   : > { %v8466_v19 = vpop.eup %8465  ;;  %8475 = vpow2.f32 %v3207_v14  ;;  %3213 = vadd.xlane.f32.xlu1 %v3212_v9 }
 0xcb4   : > { %v3215_v12 = vsel %vm1226_vm2, %v8466_v19, 0.0 }
 0xcb5   : > { %v8468_v0 = vpop.eup %8467  ;;  %3216 = vadd.xlane.f32.xlu0 %v3215_v12 }
 0xcb6   : > { %v3218_v7 = vsel %vm1226_vm2, %v8468_v0, 0.0 }
 0xcb7   : > { %v8470_v50 = vpop.eup %8469  ;;  %3219 = vadd.xlane.f32.xlu1 %v3218_v7 }
 0xcb8   : > { %v3221_v60 = vsel %vm1226_vm2, %v8470_v50, 0.0 }
 0xcb9   : > { %v8472_v10 = vpop.eup %8471  ;;  %3222 = vadd.xlane.f32.xlu0 %v3221_v60 }
 0xcba   : > { %v3224_v4 = vsel %vm1226_vm2, %v8472_v10, 0.0 }
 0xcbb   : > { %v8474_v25 = vpop.eup %8473  ;;  %3225 = vadd.xlane.f32.xlu1 %v3224_v4 }
 0xcbc   : > { %v3227_v52 = vsel %vm1226_vm2, %v8474_v25, 0.0 }
 0xcbd   : > { %v8476_v59 = vpop.eup %8475  ;;  %3228 = vadd.xlane.f32.xlu0 %v3227_v52 }
 0xcbe   : > { %v3230_v49 = vsel %vm1226_vm2, %v8476_v59, 0.0 }
 0xcbf   : > { %3231 = vadd.xlane.f32.xlu1 %v3230_v49  ;;  %v8681_v49 = vld [vmem:[%s8798_s24 + $0x30] sm:$0xff] }
 0xd3e   : > { %v3211_v5 = vpop.xlane.xlu0 %3210 }
 0xd3f   : > { %8477 = vrcp.f32 %v3211_v5 }
 0xd40   : > { %v3214_v33 = vpop.xlane.xlu1 %3213 }
 0xd41   : > { %8479 = vrcp.f32 %v3214_v33 }
 0xd42   : > { %v3217_v26 = vpop.xlane.xlu0 %3216 }
 0xd43   : > { %8481 = vrcp.f32 %v3217_v26 }
 0xd44   : > { %v3220_v2 = vpop.xlane.xlu1 %3219 }
 0xd45   : > { %8483 = vrcp.f32 %v3220_v2 }
 0xd46   : > { %v3223_v45 = vpop.xlane.xlu0 %3222 }
 0xd47   : > { %8485 = vrcp.f32 %v3223_v45 }
 0xd48   : > { %v3226_v34 = vpop.xlane.xlu1 %3225 }
 0xd49   : > { %v8478_v17 = vpop.eup %8477  ;;  %8487 = vrcp.f32 %v3226_v34  ;;  %v8683_v34 = vld [vmem:[%s8798_s24 + $0x38] sm:$0xff] }
 0xd4a   : > { %v3229_v18 = vpop.xlane.xlu0 %3228  ;;  %v3241_v28 = vmul.f32 %v8478_v17, %v8462_v40  ;;  %v8677_v40 = vld [vmem:[%s8798_s24 + $0x10] sm:$0xff] }
 0xd4b   : > { %v8480_v20 = vpop.eup %8479  ;;  %8489 = vrcp.f32 %v3229_v18  ;;  %v8684_v18 = vld [vmem:[%s8798_s24 + $0x28] sm:$0xff] }
 0xd4c   : > { %v3232_v23 = vpop.xlane.xlu1 %3231  ;;  %v3242_v24 = vmul.f32 %v8480_v20, %v8464_v13 }
 0xd4d   : > { %v8482_v36 = vpop.eup %8481  ;;  %8491 = vrcp.f32 %v3232_v23 }
 0xd4e   : > { %v3249_v37 = vpack.c.bf16 %v3242_v24, %v3241_v28  ;;  %v3243_v55 = vmul.f32 %v8482_v36, %v8466_v19  ;;  %v8679_v19 = vld [vmem:[%s8798_s24 + $0x18] sm:$0xff] }
 0xd4f   : > { %v8484_v3 = vpop.eup %8483 }
 0xd50   : > { %v3244_v31 = vmul.f32 %v8484_v3, %v8468_v0  ;;  %7839 = vmatprep.mubr.msk.bf16.mxu1 %vm1226_vm2, %v3249_v37  ;;  %v8680_v0 = vld [vmem:[%s8798_s24 + $0x8] sm:$0xff]  ;;  %s699_s24 = scalar_lea.vmem %s10466_s14, %s10481_s19 }
 0xd51   : > { %v8486_v62 = vpop.eup %8485 }
 0xd52   : > { %v3250_v42 = vpack.c.bf16 %v3244_v31, %v3243_v55  ;;  %v3245_v8 = vmul.f32 %v8486_v62, %v8470_v50 }
 0xd53   : > { %v8488_v51 = vpop.eup %8487 }
 0xd54   : > { %7840 = vmatmul.mubr.msk.bf16.vlgmr.msra.gmra.mrb[72].mxu1 %vm1226_vm2, %v3250_v42  ;;  %v3246_v57 = vmul.f32 %v8488_v51, %v8472_v10 }
 0xd55   : > { %v8490_v53 = vpop.eup %8489 }
 0xd56   : > { %v3251_v11 = vpack.c.bf16 %v3246_v57, %v3245_v8  ;;  %v3247_v30 = vmul.f32 %v8490_v53, %v8474_v25 }
 0xd57   : > { %v8492_v44 = vpop.eup %8491 }
 0xd58   : > { %7843 = vmatprep.mubr.msk.bf16.mxu1 %vm1226_vm2, %v3251_v11  ;;  %v3248_v1 = vmul.f32 %v8492_v44, %v8476_v59 }
 0xd5a   : > { %v3252_v38 = vpack.c.bf16 %v3248_v1, %v3247_v30 }
 0xd5c   : > { %7844 = vmatmul.mubr.msk.bf16.gmra.mrb[76].mxu1 %vm1226_vm2, %v3252_v38 }
 0xe27   : > { %v7841_v35 = vpop.f32.mrb[72].mxu1 }
 0xe28   : > { %v3303_v22 = vpop.f32.mrb[73].mxu1 }
 0xe29   : > { %v7842_v58 = vpop.f32.mrb[74].mxu1 }
 0xe2a   : > { %v3335_v29 = vpack.c.bf16 %v7842_v58, %v7841_v35  ;;  %v3306_v39 = vpop.f32.mrb[75].mxu1 }
 0xe2b   : > { %v3334_v47 = vpack.c.bf16 %v3306_v39, %v3303_v22 }
 0xe2d   : > { %7849 = vmatprep.mubr.msk.bf16.mxu0 %vm1120_vm1, %v3334_v47 }
 0xe2e   : > { %7850 = vmatmul.mubr.msk.bf16.vlgmr.msra.gmra.mrb[48].mxu0 %vm1120_vm1, %v3335_v29 }
 0xe2f   : > { %v7845_v56 = vpop.f32.mrb[76].mxu1 }
 0xe30   : > { %v3319_v43 = vpop.f32.mrb[77].mxu1 }
 0xe31   : > { %v7846_v61 = vpop.f32.mrb[78].mxu1 }
 0xe32   : > { %v3337_v6 = vpack.c.bf16 %v7846_v61, %v7845_v56  ;;  %v3322_v15 = vpop.f32.mrb[79].mxu1 }
 0xe33   : > { %v3336_v54 = vpack.c.bf16 %v3322_v15, %v3319_v43 }
 0xe35   : > { %7853 = vmatprep.mubr.msk.bf16.mxu0 %vm1120_vm1, %v3336_v54 }
 0xe36   : > { %7854 = vmatmul.mubr.msk.bf16.gmra.mrb[52].mxu0 %vm1120_vm1, %v3337_v6 }
 0xf01   : > { %v7851_v46 = vpop.f32.mrb[48].mxu0 }
 0xf02   : > { %v3389_v48 = vpop.f32.mrb[49].mxu0  ;;  %v3430_v21 = vadd.f32 %v8677_v40, %v7851_v46 }
 0xf03   : > { %v3428_v16 = vadd.f32 %v8678_v41, %v3389_v48  ;;  %v7852_v13 = vpop.f32.mrb[50].mxu0 }
 0xf04   : > { %v3392_v14 = vpop.f32.mrb[51].mxu0  ;;  %v3431_v12 = vadd.f32 %v8679_v19, %v7852_v13  ;;  %v9530_v50 = vadd.f32 %v7003_v63, %v3430_v21 }
 0xf05   : > { %v9526_v9 = vadd.f32 %v7003_v63, %v3428_v16  ;;  %v3429_v7 = vadd.f32 %v8680_v0, %v3392_v14 }
 0xf06   : > { %v9536_v4 = vadd.f32 %v7003_v63, %v3431_v12  ;;  %v3465_v26 = vsel %vm722_vm0, %v9530_v50, 0.0 }
 0xf07   : > { %v9532_v60 = vadd.f32 %v7003_v63, %v3429_v7  ;;  %v3459_v10 = vsel %vm722_vm0, %v9526_v9, 0.0 }
 0xf08   : > { %3460 = vadd.xlane.f32.xlu0 %v3459_v10  ;;  %v3468_v23 = vsel %vm722_vm0, %v9536_v4, 0.0 }
 0xf09   : > { %v7855_v25 = vpop.f32.mrb[52].mxu0  ;;  %v3462_v52 = vsel %vm722_vm0, %v9532_v60, 0.0 }
 0xf0a   : > { %3463 = vadd.xlane.f32.xlu1 %v3462_v52  ;;  %v3405_v59 = vpop.f32.mrb[53].mxu0  ;;  %v3434_v27 = vadd.f32 %v8681_v49, %v7855_v25  ;;  %v8319_v49 = vld [vmem:[%s8824_s30] sm:$0xff]  }
 0xf0b   : > { %v3432_v5 = vadd.f32 %v8682_v32, %v3405_v59  ;;  %v7856_v33 = vpop.f32.mrb[54].mxu0  ;;  %7857 = vmatprep.subr.bf16.mxu1 %v8319_v49  ;;  %v8320_v32 = vld [vmem:[%s8824_s30 + $0x8] sm:$0xff]  }
 0xf0c   : > { %3466 = vadd.xlane.f32.xlu0 %v3465_v26  ;;  %v3408_v2 = vpop.f32.mrb[55].mxu0  ;;  %v3435_v17 = vadd.f32 %v8683_v34, %v7856_v33  ;;  %v9550_v28 = vadd.f32 %v7003_v63, %v3434_v27  ;;  %v8321_v27 = vld [vmem:[%s8824_s30 + $0x80] sm:$0xff]   ;;  %7858 = vmatpush3.bf16.msra.mxu1 %v8319_v49 }
 0xf0d   : > { %v9544_v45 = vadd.f32 %v7003_v63, %v3432_v5  ;;  %v3433_v20 = vadd.f32 %v8684_v18, %v3408_v2  ;;  %7881 = vmatprep.subr.bf16.mxu0 %v8321_v27  ;;  %v8322_v5 = vld [vmem:[%s8824_s30 + $0x88] sm:$0xff]   ;;  %7859 = vmatprep.subr.bf16.mxu1 %v8320_v32  ;;  %v8323_v33 = vld [vmem:[%s8824_s30 + $0x40] sm:$0xff]  }
 0xf0e   : > { %3469 = vadd.xlane.f32.xlu1 %v3468_v23  ;;  %v9556_v37 = vadd.f32 %v7003_v63, %v3435_v17  ;;  %v3477_v55 = vsel %vm722_vm0, %v9550_v28, 0.0  ;;  %7882 = vmatpush3.bf16.msra.mxu0 %v8321_v27 }
 0xf0f   : > { %v9552_v24 = vadd.f32 %v7003_v63, %v3433_v20  ;;  %v3471_v36 = vsel %vm722_vm0, %v9544_v45, 0.0  ;;  %7883 = vmatprep.subr.bf16.mxu0 %v8322_v5 }
 0xf10   : > { %3472 = vadd.xlane.f32.xlu0 %v3471_v36  ;;  %v3480_v31 = vsel %vm722_vm0, %v9556_v37, 0.0  ;;  %7860 = vmatpush3.bf16.msra.mxu1 %v8320_v32 }
 0xf11   : > { %10470 = vst [vmem:[#allocation2_spill] sm:$0xff] %v9552_v24  ;;  %v3474_v3 = vsel %vm722_vm0, %v9552_v24, 0.0  ;;  %7869 = vmatprep.subr.bf16.mxu1 %v8323_v33 }
 0xf12   : > { %3475 = vadd.xlane.f32.xlu1 %v3474_v3  ;;  %7884 = vmatpush3.bf16.msra.mxu0 %v8322_v5 }
 0xf14   : > { %3478 = vadd.xlane.f32.xlu0 %v3477_v55 }
 0xf16   : > { %3481 = vadd.xlane.f32.xlu1 %v3480_v31 }
 0xf95   : > { %v3461_v62 = vpop.xlane.xlu0 %3460 }
 0xf96   : > { %v3483_v42 = vmul.f32 0.03125, %v3461_v62 }
 0xf97   : > { %v3464_v51 = vpop.xlane.xlu1 %3463 }
 0xf98   : > { %v9565_v8 = vsub.f32 %v9526_v9, %v3483_v42  ;;  %v3484_v57 = vmul.f32 0.03125, %v3464_v51 }
 0xf99   : > { %v3467_v53 = vpop.xlane.xlu0 %3466 }
 0xf9a   : > { %v9568_v11 = vsub.f32 %v9532_v60, %v3484_v57  ;;  %v3485_v44 = vmul.f32 0.03125, %v3467_v53  ;;  %v3499_v30 = vmul.f32 %v9565_v8, %v9565_v8 }
 0xf9b   : > { %v3470_v1 = vpop.xlane.xlu1 %3469 }
 0xf9c   : > { %v9573_v38 = vsub.f32 %v9530_v50, %v3485_v44  ;;  %v3486_v35 = vmul.f32 0.03125, %v3470_v1  ;;  %v3507_v22 = vsel %vm722_vm0, %v3499_v30, 0.0  ;;  %v3500_v58 = vmul.f32 %v9568_v11, %v9568_v11 }
 0xf9d   : > { %3508 = vadd.xlane.f32.xlu0 %v3507_v22  ;;  %v3473_v29 = vpop.xlane.xlu0 %3472 }
 0xf9e   : > { %v9579_v39 = vsub.f32 %v9536_v4, %v3486_v35  ;;  %v3487_v47 = vmul.f32 0.03125, %v3473_v29  ;;  %v3510_v56 = vsel %vm722_vm0, %v3500_v58, 0.0  ;;  %v3501_v43 = vmul.f32 %v9573_v38, %v9573_v38 }
 0xf9f   : > { %3511 = vadd.xlane.f32.xlu1 %v3510_v56  ;;  %v3476_v61 = vpop.xlane.xlu1 %3475 }
 0xfa0   : > { %v9585_v6 = vsub.f32 %v9544_v45, %v3487_v47  ;;  %v3488_v15 = vmul.f32 0.03125, %v3476_v61  ;;  %v3513_v54 = vsel %vm722_vm0, %v3501_v43, 0.0  ;;  %v3502_v46 = vmul.f32 %v9579_v39, %v9579_v39 }
 0xfa1   : > { %3514 = vadd.xlane.f32.xlu0 %v3513_v54  ;;  %v3479_v63 = vpop.xlane.xlu0 %3478 }
 0xfa2   : > { %v9591_v48 = vsub.f32 %v9552_v24, %v3488_v15  ;;  %v3489_v40 = vmul.f32 0.03125, %v3479_v63  ;;  %v3516_v21 = vsel %vm722_vm0, %v3502_v46, 0.0  ;;  %v3503_v41 = vmul.f32 %v9585_v6, %v9585_v6 }
 0xfa3   : > { %3517 = vadd.xlane.f32.xlu1 %v3516_v21  ;;  %v3482_v16 = vpop.xlane.xlu1 %3481 }
 0xfa4   : > { %v9597_v13 = vsub.f32 %v9550_v28, %v3489_v40  ;;  %v3490_v14 = vmul.f32 0.03125, %v3482_v16  ;;  %v3519_v19 = vsel %vm722_vm0, %v3503_v41, 0.0  ;;  %v3504_v12 = vmul.f32 %v9591_v48, %v9591_v48 }
 0xfa5   : > { %3520 = vadd.xlane.f32.xlu0 %v3519_v19 }
 0xfa6   : > { %v9603_v0 = vsub.f32 %v9556_v37, %v3490_v14  ;;  %v3522_v7 = vsel %vm722_vm0, %v3504_v12, 0.0  ;;  %v3505_v10 = vmul.f32 %v9597_v13, %v9597_v13 }
 0xfa7   : > { %3523 = vadd.xlane.f32.xlu1 %v3522_v7 }
 0xfa8   : > { %v3525_v25 = vsel %vm722_vm0, %v3505_v10, 0.0  ;;  %v3506_v52 = vmul.f32 %v9603_v0, %v9603_v0 }
 0xfa9   : > { %3526 = vadd.xlane.f32.xlu0 %v3525_v25  ;;  %v7028_v25 = vld [vmem:[%s9663_s28 + $0x8] ss:$0 sm:$0xff] }
 0xfaa   : > { %v3528_v59 = vsel %vm722_vm0, %v3506_v52, 0.0 }
 0xfab   : > { %3529 = vadd.xlane.f32.xlu1 %v3528_v59 }
0x102a   : > { %v3509_v26 = vpop.xlane.xlu0 %3508 }
0x102b   : > { %v3531_v2 = vmul.f32 0.03125, %v3509_v26 }
0x102c   : > { %v3512_v34 = vpop.xlane.xlu1 %3511 }
0x102d   : > { %v3539_v17 = vadd.f32 1e-05, %v3531_v2  ;;  %v3532_v18 = vmul.f32 0.03125, %v3512_v34 }
0x102e   : > { %v3515_v20 = vpop.xlane.xlu0 %3514 }
0x102f   : > { %8493 = vrsqrt.f32 %v3539_v17  ;;  %v3540_v23 = vadd.f32 1e-05, %v3532_v18  ;;  %v3533_v36 = vmul.f32 0.03125, %v3515_v20 }
0x1030   : > { %v3518_v3 = vpop.xlane.xlu1 %3517 }
0x1031   : > { %8495 = vrsqrt.f32 %v3540_v23  ;;  %v3541_v55 = vadd.f32 1e-05, %v3533_v36  ;;  %v3534_v31 = vmul.f32 0.03125, %v3518_v3 }
0x1032   : > { %v3521_v62 = vpop.xlane.xlu0 %3520 }
0x1033   : > { %8497 = vrsqrt.f32 %v3541_v55  ;;  %v3542_v42 = vadd.f32 1e-05, %v3534_v31  ;;  %v3535_v51 = vmul.f32 0.03125, %v3521_v62 }
0x1034   : > { %v3524_v57 = vpop.xlane.xlu1 %3523 }
0x1035   : > { %8499 = vrsqrt.f32 %v3542_v42  ;;  %v3543_v53 = vadd.f32 1e-05, %v3535_v51  ;;  %v3536_v44 = vmul.f32 0.03125, %v3524_v57 }
0x1036   : > { %v3527_v30 = vpop.xlane.xlu0 %3526 }
0x1037   : > { %8501 = vrsqrt.f32 %v3543_v53  ;;  %v3544_v1 = vadd.f32 1e-05, %v3536_v44  ;;  %v3537_v35 = vmul.f32 0.03125, %v3527_v30 }
0x1038   : > { %v3530_v22 = vpop.xlane.xlu1 %3529 }
0x1039   : > { %v8494_v58 = vpop.eup %8493  ;;  %8503 = vrsqrt.f32 %v3544_v1  ;;  %v3545_v29 = vadd.f32 1e-05, %v3537_v35  ;;  %v3538_v47 = vmul.f32 0.03125, %v3530_v22 }
0x103a   : > { %v3555_v61 = vmul.f32 %v8494_v58, %v9565_v8  ;;  %v8324_v8 = vld [vmem:[%s8824_s30 + $0x48] sm:$0xff]  }
0x103b   : > { %v8496_v56 = vpop.eup %8495  ;;  %8505 = vrsqrt.f32 %v3545_v29  ;;  %v3546_v43 = vadd.f32 1e-05, %v3538_v47 }
0x103c   : > { %v3556_v15 = vmul.f32 %v8496_v56, %v9568_v11 }
0x103d   : > { %v8498_v54 = vpop.eup %8497  ;;  %8507 = vrsqrt.f32 %v3546_v43 }
0x103e   : > { %v9619_v46 = vpack.c.bf16 %v3556_v15, %v3555_v61  ;;  %v3557_v40 = vmul.f32 %v8498_v54, %v9573_v38 }
0x103f   : > { %v8500_v63 = vpop.eup %8499 }
0x1040   : > { %v3558_v21 = vmul.f32 %v8500_v63, %v9579_v39  ;;  %7861 = vmatprep.mubr.msk.bf16.mxu1 %vm722_vm0, %v9619_v46  ;;  %7885 = vmatprep.mubr.msk.bf16.mxu0 %vm722_vm0, %v9619_v46 }
0x1041   : > { %v8502_v41 = vpop.eup %8501 }
0x1042   : > { %v9627_v16 = vpack.c.bf16 %v3558_v21, %v3557_v40  ;;  %v3559_v14 = vmul.f32 %v8502_v41, %v9585_v6  ;;  %v7016_v41 = vld [vmem:[%s9663_s28 + $0x4] ss:$0 sm:$0xff] }
0x1043   : > { %v8504_v11 = vpop.eup %8503 }
0x1044   : > { %v3560_v19 = vmul.f32 %v8504_v11, %v9591_v48  ;;  %7862 = vmatmul.mubr.msk.bf16.vlgmr.msra.gmra.mrb[80].mxu1 %vm722_vm0, %v9627_v16  ;;  %7886 = vmatmul.mubr.msk.bf16.vlgmr.msra.gmra.mrb[88].mxu0 %vm722_vm0, %v9627_v16 }
0x1045   : > { %v8506_v38 = vpop.eup %8505  ;;  %7870 = vmatpush3.bf16.msra.mxu1 %v8323_v33 }
0x1046   : > { %v9636_v39 = vpack.c.bf16 %v3560_v19, %v3559_v14  ;;  %7871 = vmatprep.subr.bf16.mxu1 %v8324_v8  ;;  %v3561_v7 = vmul.f32 %v8506_v38, %v9597_v13  ;;  %v7004_v13 = vld [vmem:[%s9663_s28] ss:$0 sm:$0xff] }
0x1047   : > { %v8508_v12 = vpop.eup %8507 }
0x1048   : > { %v3562_v10 = vmul.f32 %v8508_v12, %v9603_v0  ;;  %7865 = vmatprep.mubr.msk.bf16.mxu1 %vm722_vm0, %v9636_v39  ;;  %7889 = vmatprep.mubr.msk.bf16.mxu0 %vm722_vm0, %v9636_v39 }
0x1049   : > { %7872 = vmatpush3.bf16.msra.mxu1 %v8324_v8 }
0x104a   : > { %v9644_v6 = vpack.c.bf16 %v3562_v10, %v3561_v7 }
0x104c   : > { %7866 = vmatmul.mubr.msk.bf16.gmra.mrb[84].mxu1 %vm722_vm0, %v9644_v6  ;;  %7890 = vmatmul.mubr.msk.bf16.gmra.mrb[92].mxu0 %vm722_vm0, %v9644_v6 }
0x104d   : > { %7873 = vmatprep.mubr.msk.bf16.mxu1 %vm722_vm0, %v9619_v46 }
0x1054   : > { %7874 = vmatmul.mubr.msk.bf16.vlgmr.msra.gmra.mrb[88].mxu1 %vm722_vm0, %v9627_v16 }
0x1055   : > { %7877 = vmatprep.mubr.msk.bf16.mxu1 %vm722_vm0, %v9636_v39 }
0x105c   : > { %7878 = vmatmul.mubr.msk.bf16.gmra.mrb[92].mxu1 %vm722_vm0, %v9644_v6 }
0x1117   : > { %v7863_v48 = vpop.f32.mrb[80].mxu1  ;;  %v7887_v0 = vpop.f32.mrb[88].mxu0 }
0x1118   : > { %v3636_v52 = vpop.f32.mrb[81].mxu1  ;;  %v3816_v59 = vpop.f32.mrb[89].mxu0  ;;  %v9667_v32 = vadd.f32 %v7863_v48, %v7004_v13  ;;  %v3825_v5 = vadd.f32 %v7887_v0, %v7028_v25 }
0x1119   : > { %v7864_v49 = vpop.f32.mrb[82].mxu1  ;;  %v7888_v27 = vpop.f32.mrb[90].mxu0  ;;  %v3637_v17 = vadd.f32 %v7004_v13, %v3636_v52  ;;  %v3817_v18 = vadd.f32 %v7028_v25, %v3816_v59 }
0x111a   : > { %v9669_v33 = vadd.f32 %v7864_v49, %v7004_v13  ;;  %v3828_v26 = vadd.f32 %v7888_v27, %v7028_v25  ;;  %v3639_v2 = vpop.f32.mrb[83].mxu1  ;;  %v3819_v34 = vpop.f32.mrb[91].mxu0 }
0x111b   : > { %v3640_v20 = vadd.f32 %v7004_v13, %v3639_v2  ;;  %v3820_v23 = vadd.f32 %v7028_v25, %v3819_v34 }
0x111c   : > { %v3848_v36 = vpack.c.bf16 %v9669_v33, %v9667_v32  ;;  %v4053_v3 = vpack.c.bf16 %v3828_v26, %v3825_v5 }
0x111d   : > { %v3847_v55 = vpack.c.bf16 %v3640_v20, %v3637_v17  ;;  %v4052_v31 = vpack.c.bf16 %v3820_v23, %v3817_v18  ;;  %v8325_v20 = vld [vmem:[%s8824_s30 + $0x50] sm:$0xff]  }
0x111f   : > { %v7867_v62 = vpop.f32.mrb[84].mxu1  ;;  %v7891_v42 = vpop.f32.mrb[92].mxu0  ;;  %7901 = vmatprep.mubr.msk.bf16.mxu1 %vm1120_vm1, %v3847_v55  ;;  %7909 = vmatprep.subr.bf16.mxu0 %v4052_v31 }
0x1120   : > { %v3652_v51 = vpop.f32.mrb[85].mxu1  ;;  %v3832_v57 = vpop.f32.mrb[93].mxu0  ;;  %7910 = vmatpush3.bf16.msra.mxu0 %v4052_v31  ;;  %v3661_v30 = vadd.f32 %v7867_v62, %v7004_v13  ;;  %v3841_v1 = vadd.f32 %v7891_v42, %v7028_v25  ;;  %v9707_v42 = vld [vmem:[%s10454_s2 + $0x10] sm:$0xff] }
0x1121   : > { %v7868_v53 = vpop.f32.mrb[86].mxu1  ;;  %v7892_v44 = vpop.f32.mrb[94].mxu0  ;;  %7911 = vmatprep.subr.bf16.mxu0 %v4053_v3  ;;  %v3653_v47 = vadd.f32 %v7004_v13, %v3652_v51  ;;  %v3833_v56 = vadd.f32 %v7028_v25, %v3832_v57  ;;  %v9712_v57 = vld [vmem:[%s10454_s2 + $0x8] sm:$0xff] }
0x1122   : > { %v3664_v35 = vadd.f32 %v7868_v53, %v7004_v13  ;;  %v3844_v22 = vadd.f32 %v7892_v44, %v7028_v25  ;;  %v3655_v58 = vpop.f32.mrb[87].mxu1  ;;  %v3835_v29 = vpop.f32.mrb[95].mxu0 }
0x1123   : > { %v3656_v43 = vadd.f32 %v7004_v13, %v3655_v58  ;;  %v3836_v61 = vadd.f32 %v7028_v25, %v3835_v29 }
0x1124   : > { %v3850_v15 = vpack.c.bf16 %v3664_v35, %v3661_v30  ;;  %v4055_v54 = vpack.c.bf16 %v3844_v22, %v3841_v1  ;;  %7912 = vmatpush3.bf16.msra.mxu0 %v4053_v3  ;;  %v8326_v3 = vld [vmem:[%s8824_s30 + $0x58] sm:$0xff]  }
0x1125   : > { %v3849_v63 = vpack.c.bf16 %v3656_v43, %v3653_v47  ;;  %v4054_v40 = vpack.c.bf16 %v3836_v61, %v3833_v56  ;;  %v9720_v1 = vld [vmem:[%s10454_s2 + $0x18] sm:$0xff]  ;;  %v9738_v43 = vld [vmem:[%s10454_s2 + $0x20] sm:$0xff] }
0x1127   : > { %v7875_v21 = vpop.f32.mrb[88].mxu1  ;;  %7913 = vmatprep.subr.bf16.mxu0 %v4054_v40 }
0x1128   : > { %v3726_v8 = vpop.f32.mrb[89].mxu1  ;;  %7914 = vmatpush3.bf16.msra.mxu0 %v4054_v40  ;;  %v3735_v14 = vadd.f32 %v7875_v21, %v7016_v41  ;;  %v9745_v21 = vld [vmem:[%s10454_s2 + $0x30] sm:$0xff] }
0x1129   : > { %v7876_v11 = vpop.f32.mrb[90].mxu1  ;;  %7915 = vmatprep.subr.bf16.mxu0 %v4055_v54  ;;  %v3727_v12 = vadd.f32 %v7016_v41, %v3726_v8 }
0x112a   : > { %v3738_v19 = vadd.f32 %v7876_v11, %v7016_v41  ;;  %v3729_v38 = vpop.f32.mrb[91].mxu1 }
0x112b   : > { %v3730_v7 = vadd.f32 %v7016_v41, %v3729_v38 }
0x112c   : > { %v3852_v10 = vpack.c.bf16 %v3738_v19, %v3735_v14  ;;  %7916 = vmatpush3.bf16.msra.mxu0 %v4055_v54 }
0x112d   : > { %v3851_v48 = vpack.c.bf16 %v3730_v7, %v3727_v12  ;;  %v9760_v12 = vld [vmem:[%s10454_s2 + $0x38] sm:$0xff] }
0x112e   : > { %v3871_v17 = vsel %vm1120_vm1, %v3852_v10, 0 }
0x112f   : > { %v7879_v13 = vpop.f32.mrb[92].mxu1  ;;  %8265 = vmatprep.subr.msk.bf16.mxu1 %vm1120_vm1, %v3851_v48  ;;  %v3868_v0 = vsel %vm1120_vm1, %v3851_v48, 0 }
0x1130   : > { %v3742_v25 = vpop.f32.mrb[93].mxu1  ;;  %7894 = vmatpush3.bf16.xpose.msra.mxu1 %v3868_v0  ;;  %v3751_v59 = vadd.f32 %v7879_v13, %v7016_v41 }
0x1131   : > { %v7880_v52 = vpop.f32.mrb[94].mxu1  ;;  %8266 = vmatprep.subr.msk.bf16.mxu1 %vm1120_vm1, %v3852_v10  ;;  %v3743_v5 = vadd.f32 %v7016_v41, %v3742_v25  ;;  %v7060_v25 = vld [vmem:[%s9663_s28 + $0x5] ss:$0 sm:$0xff] }
0x1132   : > { %v3754_v49 = vadd.f32 %v7880_v52, %v7016_v41  ;;  %v3745_v27 = vpop.f32.mrb[95].mxu1 }
0x1133   : > { %v3746_v26 = vadd.f32 %v7016_v41, %v3745_v27  ;;  %v9750_v41 = vld [vmem:[%s10454_s2 + $0x28] sm:$0xff] }
0x1134   : > { %v3854_v2 = vpack.c.bf16 %v3754_v49, %v3751_v59 }
0x1135   : > { %v3853_v34 = vpack.c.bf16 %v3746_v26, %v3743_v5 }
0x1136   : > { %v3877_v23 = vsel %vm1120_vm1, %v3854_v2, 0 }
0x1137   : > { %v3874_v18 = vsel %vm1120_vm1, %v3853_v34, 0 }
0x1138   : > { %7896 = vmatpush3.bf16.xpose.msra.mxu1 %v3871_v17 }
0x1139   : > { %8267 = vmatprep.subr.msk.bf16.mxu1 %vm1120_vm1, %v3853_v34 }
0x1140   : > { %7898 = vmatpush3.bf16.xpose.msra.mxu1 %v3874_v18 }
0x1141   : > { %8268 = vmatprep.subr.msk.bf16.mxu1 %vm1120_vm1, %v3854_v2 }
0x1148   : > { %7900 = vmatpush3.bf16.xpose.msra.mxu1 %v3877_v23 }
0x1149   : > { %7937 = vmatprep.subr.bf16.mxu1 %v8325_v20 }
0x114f   : > { %7902 = vmatmul.mubr.msk.bf16.vlgmr.msra.gmra.mrb[96].mxu1 %vm1120_vm1, %v3848_v36  ;;  %v9702_v36 = vld [vmem:[%s10454_s2] sm:$0xff] }
0x1150   : > { %7905 = vmatprep.mubr.msk.bf16.mxu1 %vm1120_vm1, %v3849_v63  ;;  %7938 = vmatpush3.bf16.msra.mxu1 %v8325_v20 }
0x1151   : > { %7939 = vmatprep.subr.bf16.mxu1 %v8326_v3 }
0x1154   : > { %7940 = vmatpush3.bf16.msra.mxu1 %v8326_v3 }
0x1157   : > { %7906 = vmatmul.mubr.msk.bf16.gmra.mrb[100].mxu1 %vm1120_vm1, %v3850_v15 }
0x1158   : > { %7941 = vmatprep.mubr.msk.bf16.mxu1 %vm722_vm0, %v9619_v46 }
0x115f   : > { %7942 = vmatmul.mubr.msk.bf16.vlgmr.msra.gmra.mrb[104].mxu1 %vm722_vm0, %v9627_v16 }
0x1160   : > { %7945 = vmatprep.mubr.msk.bf16.mxu1 %vm722_vm0, %v9636_v39 }
0x1167   : > { %7946 = vmatmul.mubr.msk.bf16.gmra.mrb[108].mxu1 %vm722_vm0, %v9644_v6 }
0x1222   : > { %v7903_v32 = vpop.f32.mrb[96].mxu1 }
0x1223   : > { %v3913_v33 = vpop.f32.mrb[97].mxu1  ;;  %v3946_v55 = vmul.f32 0.35355338, %v7903_v32 }
0x1224   : > { %v3944_v31 = vmul.f32 0.35355338, %v3913_v33  ;;  %v7904_v62 = vpop.f32.mrb[98].mxu1 }
0x1225   : > { %v3916_v51 = vpop.f32.mrb[99].mxu1  ;;  %v3947_v53 = vmul.f32 0.35355338, %v7904_v62  ;;  %v9723_v35 = vadd.f32 %v3946_v55, %v9707_v42 }
0x1226   : > { %v3945_v44 = vmul.f32 0.35355338, %v3916_v51  ;;  %v9715_v30 = vadd.f32 %v3944_v31, %v9702_v36 }
0x1227   : > { %v9731_v29 = vadd.f32 %v3947_v53, %v9720_v1  ;;  %v3966_v40 = vsel %vm1226_vm2, %v9723_v35, -inf }
0x1228   : > { %v3960_v22 = vsel %vm1226_vm2, %v9715_v30, -inf  ;;  %v9728_v58 = vadd.f32 %v3945_v44, %v9712_v57 }
0x1229   : > { %3961 = vmax.xlane.f32.xlu0 %v3960_v22  ;;  %v3969_v38 = vsel %vm1226_vm2, %v9731_v29, -inf }
0x122a   : > { %v7907_v47 = vpop.f32.mrb[100].mxu1  ;;  %v3963_v56 = vsel %vm1226_vm2, %v9728_v58, -inf }
0x122b   : > { %3964 = vmax.xlane.f32.xlu1 %v3963_v56  ;;  %v3929_v61 = vpop.f32.mrb[101].mxu1  ;;  %v3950_v15 = vmul.f32 0.35355338, %v7907_v47 }
0x122c   : > { %v3948_v54 = vmul.f32 0.35355338, %v3929_v61  ;;  %v7908_v63 = vpop.f32.mrb[102].mxu1 }
0x122d   : > { %3967 = vmax.xlane.f32.xlu0 %v3966_v40  ;;  %v3932_v8 = vpop.f32.mrb[103].mxu1  ;;  %v3951_v14 = vmul.f32 0.35355338, %v7908_v63  ;;  %v9763_v7 = vadd.f32 %v3950_v15, %v9745_v21 }
0x122e   : > { %v9753_v11 = vadd.f32 %v3948_v54, %v9738_v43  ;;  %v3949_v19 = vmul.f32 0.35355338, %v3932_v8 }
0x122f   : > { %3970 = vmax.xlane.f32.xlu1 %v3969_v38  ;;  %v9771_v13 = vadd.f32 %v3951_v14, %v9760_v12  ;;  %v3978_v27 = vsel %vm1226_vm2, %v9763_v7, -inf }
0x1230   : > { %v9766_v10 = vadd.f32 %v3949_v19, %v9750_v41  ;;  %v3972_v48 = vsel %vm1226_vm2, %v9753_v11, -inf }
0x1231   : > { %3973 = vmax.xlane.f32.xlu0 %v3972_v48  ;;  %v3981_v18 = vsel %vm1226_vm2, %v9771_v13, -inf }
0x1232   : > { %v7943_v0 = vpop.f32.mrb[104].mxu1  ;;  %v3975_v52 = vsel %vm1226_vm2, %v9766_v10, -inf }
0x1233   : > { %v4287_v59 = vpop.f32.mrb[105].mxu1  ;;  %3976 = vmax.xlane.f32.xlu1 %v3975_v52  ;;  %v4296_v5 = vadd.f32 %v7943_v0, %v7060_v25 }
0x1234   : > { %v7944_v49 = vpop.f32.mrb[106].mxu1  ;;  %v4288_v34 = vadd.f32 %v7060_v25, %v4287_v59 }
0x1235   : > { %v4299_v26 = vadd.f32 %v7944_v49, %v7060_v25  ;;  %3979 = vmax.xlane.f32.xlu0 %v3978_v27  ;;  %v4290_v2 = vpop.f32.mrb[107].mxu1 }
0x1236   : > { %v4291_v17 = vadd.f32 %v7060_v25, %v4290_v2 }
0x1237   : > { %v4413_v20 = vpack.c.bf16 %v4299_v26, %v4296_v5  ;;  %3982 = vmax.xlane.f32.xlu1 %v3981_v18 }
0x1238   : > { %v4412_v23 = vpack.c.bf16 %v4291_v17, %v4288_v34 }
0x1239   : > { %v4432_v56 = vsel %vm1120_vm1, %v4413_v20, 0 }
0x123a   : > { %v7947_v3 = vpop.f32.mrb[108].mxu1  ;;  %8269 = vmatprep.subr.msk.bf16.mxu1 %vm1120_vm1, %v4412_v23  ;;  %v4429_v32 = vsel %vm1120_vm1, %v4412_v23, 0 }
0x123b   : > { %v4303_v33 = vpop.f32.mrb[109].mxu1  ;;  %7962 = vmatpush3.bf16.xpose.msra.mxu1 %v4429_v32  ;;  %v4312_v31 = vadd.f32 %v7947_v3, %v7060_v25 }
0x123c   : > { %v7948_v55 = vpop.f32.mrb[110].mxu1  ;;  %8270 = vmatprep.subr.msk.bf16.mxu1 %vm1120_vm1, %v4413_v20  ;;  %v4304_v53 = vadd.f32 %v7060_v25, %v4303_v33 }
0x123d   : > { %v4315_v62 = vadd.f32 %v7948_v55, %v7060_v25  ;;  %v4306_v51 = vpop.f32.mrb[111].mxu1 }
0x123e   : > { %v4307_v44 = vadd.f32 %v7060_v25, %v4306_v51 }
0x123f   : > { %v4415_v22 = vpack.c.bf16 %v4315_v62, %v4312_v31 }
0x1240   : > { %v4414_v47 = vpack.c.bf16 %v4307_v44, %v4304_v53 }
0x1241   : > { %v4438_v15 = vsel %vm1120_vm1, %v4415_v22, 0 }
0x1242   : > { %v4435_v61 = vsel %vm1120_vm1, %v4414_v47, 0 }
0x1243   : > { %7964 = vmatpush3.bf16.xpose.msra.mxu1 %v4432_v56 }
0x1244   : > { %8271 = vmatprep.subr.msk.bf16.mxu1 %vm1120_vm1, %v4414_v47  ;;  %v8327_v47 = vld [vmem:[%s8824_s30 + $0x10] sm:$0xff]  }
0x1245   : > { %7925 = vmatprep.subr.bf16.mxu0 %v8327_v47 }
0x124b   : > { %7966 = vmatpush3.bf16.xpose.msra.mxu1 %v4435_v61 }
0x124c   : > { %8272 = vmatprep.subr.msk.bf16.mxu1 %vm1120_vm1, %v4415_v22 }
0x1253   : > { %7968 = vmatpush3.bf16.xpose.msra.mxu1 %v4438_v15 }
0x12b6   : > { %v3962_v54 = vpop.xlane.xlu0 %3961 }
0x12b7   : > { %v3984_v63 = vsub.f32 %v9715_v30, %v3962_v54 }
0x12b8   : > { %v3965_v40 = vpop.xlane.xlu1 %3964 }
0x12b9   : > { %v3992_v8 = vmul.f32 1.442695, %v3984_v63  ;;  %v3985_v14 = vsub.f32 %v9728_v58, %v3965_v40 }
0x12ba   : > { %v3968_v19 = vpop.xlane.xlu0 %3967 }
0x12bb   : > { %8509 = vpow2.f32 %v3992_v8  ;;  %v3994_v38 = vmul.f32 1.442695, %v3985_v14  ;;  %v3986_v48 = vsub.f32 %v9723_v35, %v3968_v19 }
0x12bc   : > { %v3971_v0 = vpop.xlane.xlu1 %3970 }
0x12bd   : > { %8511 = vpow2.f32 %v3994_v38  ;;  %v3996_v25 = vmul.f32 1.442695, %v3986_v48  ;;  %v3987_v52 = vsub.f32 %v9731_v29, %v3971_v0 }
0x12be   : > { %v3974_v59 = vpop.xlane.xlu0 %3973 }
0x12bf   : > { %8513 = vpow2.f32 %v3996_v25  ;;  %v3998_v49 = vmul.f32 1.442695, %v3987_v52  ;;  %v3988_v27 = vsub.f32 %v9753_v11, %v3974_v59 }
0x12c0   : > { %v3977_v30 = vpop.xlane.xlu1 %3976 }
0x12c1   : > { %8515 = vpow2.f32 %v3998_v49  ;;  %v4000_v5 = vmul.f32 1.442695, %v3988_v27  ;;  %v3989_v58 = vsub.f32 %v9766_v10, %v3977_v30 }
0x12c2   : > { %v3980_v26 = vpop.xlane.xlu0 %3979 }
0x12c3   : > { %8517 = vpow2.f32 %v4000_v5  ;;  %v4002_v2 = vmul.f32 1.442695, %v3989_v58  ;;  %v3990_v35 = vsub.f32 %v9763_v7, %v3980_v26  ;;  %v8328_v58 = vld [vmem:[%s8824_s30 + $0x18] sm:$0xff]  }
0x12c4   : > { %v3983_v34 = vpop.xlane.xlu1 %3982 }
0x12c5   : > { %v8510_v17 = vpop.eup %8509  ;;  %8519 = vpow2.f32 %v4002_v2  ;;  %v4004_v18 = vmul.f32 1.442695, %v3990_v35  ;;  %v3991_v29 = vsub.f32 %v9771_v13, %v3983_v34 }
0x12c6   : > { %v4008_v20 = vsel %vm1226_vm2, %v8510_v17, 0.0 }
0x12c7   : > { %v8512_v23 = vpop.eup %8511  ;;  %8521 = vpow2.f32 %v4004_v18  ;;  %v4006_v11 = vmul.f32 1.442695, %v3991_v29  ;;  %4009 = vadd.xlane.f32.xlu0 %v4008_v20  ;;  %v8329_v18 = vld [vmem:[%s8824_s30 + $0x90] sm:$0xff]  }
0x12c8   : > { %v4011_v3 = vsel %vm1226_vm2, %v8512_v23, 0.0 }
0x12c9   : > { %v8514_v10 = vpop.eup %8513  ;;  %8523 = vpow2.f32 %v4006_v11  ;;  %4012 = vadd.xlane.f32.xlu1 %v4011_v3  ;;  %v8330_v3 = vld [vmem:[%s8824_s30 + $0x98] sm:$0xff]  }
0x12ca   : > { %v4014_v32 = vsel %vm1226_vm2, %v8514_v10, 0.0 }
0x12cb   : > { %v8516_v7 = vpop.eup %8515  ;;  %4015 = vadd.xlane.f32.xlu0 %v4014_v32 }
0x12cc   : > { %v4017_v33 = vsel %vm1226_vm2, %v8516_v7, 0.0 }
0x12cd   : > { %v8518_v55 = vpop.eup %8517  ;;  %4018 = vadd.xlane.f32.xlu1 %v4017_v33 }
0x12ce   : > { %v4020_v13 = vsel %vm1226_vm2, %v8518_v55, 0.0 }
0x12cf   : > { %v8520_v31 = vpop.eup %8519  ;;  %4021 = vadd.xlane.f32.xlu0 %v4020_v13 }
0x12d0   : > { %v4023_v62 = vsel %vm1226_vm2, %v8520_v31, 0.0 }
0x12d1   : > { %v8522_v51 = vpop.eup %8521  ;;  %4024 = vadd.xlane.f32.xlu1 %v4023_v62 }
0x12d2   : > { %v4026_v53 = vsel %vm1226_vm2, %v8522_v51, 0.0 }
0x12d3   : > { %v8524_v44 = vpop.eup %8523  ;;  %4027 = vadd.xlane.f32.xlu0 %v4026_v53 }
0x12d4   : > { %v4029_v22 = vsel %vm1226_vm2, %v8524_v44, 0.0 }
0x12d5   : > { %4030 = vadd.xlane.f32.xlu1 %v4029_v22 }
0x1354   : > { %v4010_v56 = vpop.xlane.xlu0 %4009 }
0x1355   : > { %8525 = vrcp.f32 %v4010_v56 }
0x1356   : > { %v4013_v61 = vpop.xlane.xlu1 %4012 }
0x1357   : > { %8527 = vrcp.f32 %v4013_v61  ;;  %v7048_v61 = vld [vmem:[%s9663_s28 + $0x1] ss:$0 sm:$0xff] }
0x1358   : > { %v4016_v15 = vpop.xlane.xlu0 %4015 }
0x1359   : > { %8529 = vrcp.f32 %v4016_v15 }
0x135a   : > { %v4019_v54 = vpop.xlane.xlu1 %4018 }
0x135b   : > { %8531 = vrcp.f32 %v4019_v54 }
0x135c   : > { %v4022_v63 = vpop.xlane.xlu0 %4021 }
0x135d   : > { %8533 = vrcp.f32 %v4022_v63 }
0x135e   : > { %v4025_v40 = vpop.xlane.xlu1 %4024 }
0x135f   : > { %v8526_v8 = vpop.eup %8525  ;;  %8535 = vrcp.f32 %v4025_v40 }
0x1360   : > { %v4028_v14 = vpop.xlane.xlu0 %4027  ;;  %v4040_v48 = vmul.f32 %v8526_v8, %v8510_v17 }
0x1361   : > { %v8528_v19 = vpop.eup %8527  ;;  %8537 = vrcp.f32 %v4028_v14 }
0x1362   : > { %v4031_v38 = vpop.xlane.xlu1 %4030  ;;  %v4041_v0 = vmul.f32 %v8528_v19, %v8512_v23 }
0x1363   : > { %v8530_v25 = vpop.eup %8529  ;;  %8539 = vrcp.f32 %v4031_v38 }
0x1364   : > { %v4048_v52 = vpack.c.bf16 %v4041_v0, %v4040_v48  ;;  %v4042_v49 = vmul.f32 %v8530_v25, %v8514_v10  ;;  %v8331_v10 = vld [vmem:[%s8824_s30 + $0x20] sm:$0xff]   ;;  %v8332_v0 = vld [vmem:[%s8824_s30 + $0x28] sm:$0xff]  }
0x1365   : > { %v8532_v59 = vpop.eup %8531  ;;  %8013 = vmatprep.subr.bf16.mxu1 %v8331_v10 }
0x1366   : > { %v4043_v27 = vmul.f32 %v8532_v59, %v8516_v7  ;;  %7917 = vmatprep.mubr.msk.bf16.mxu0 %vm1226_vm2, %v4048_v52 }
0x1367   : > { %v8534_v30 = vpop.eup %8533 }
0x1368   : > { %v4049_v5 = vpack.c.bf16 %v4043_v27, %v4042_v49  ;;  %v4044_v2 = vmul.f32 %v8534_v30, %v8518_v55 }
0x1369   : > { %v8536_v26 = vpop.eup %8535 }
0x136a   : > { %7918 = vmatmul.mubr.msk.bf16.vlgmr.msra.gmra.mrb[96].mxu0 %vm1226_vm2, %v4049_v5  ;;  %v4045_v35 = vmul.f32 %v8536_v26, %v8520_v31  ;;  %v8333_v5 = vld [vmem:[%s8824_s30 + $0x60] sm:$0xff]  }
0x136b   : > { %v8538_v34 = vpop.eup %8537  ;;  %7926 = vmatpush3.bf16.msra.mxu0 %v8327_v47 }
0x136c   : > { %v4050_v17 = vpack.c.bf16 %v4045_v35, %v4044_v2  ;;  %7927 = vmatprep.subr.bf16.mxu0 %v8328_v58  ;;  %v4046_v20 = vmul.f32 %v8538_v34, %v8522_v51 }
0x136d   : > { %v8540_v29 = vpop.eup %8539 }
0x136e   : > { %7921 = vmatprep.mubr.msk.bf16.mxu0 %vm1226_vm2, %v4050_v17  ;;  %v4047_v23 = vmul.f32 %v8540_v29, %v8524_v44  ;;  %v7072_v17 = vld [vmem:[%s9663_s28 + $0x9] ss:$0 sm:$0xff] }
0x136f   : > { %7928 = vmatpush3.bf16.msra.mxu0 %v8328_v58 }
0x1370   : > { %v4051_v11 = vpack.c.bf16 %v4047_v23, %v4046_v20  ;;  %7949 = vmatprep.subr.bf16.mxu0 %v8329_v18 }
0x1372   : > { %7922 = vmatmul.mubr.msk.bf16.gmra.mrb[100].mxu0 %vm1226_vm2, %v4051_v11 }
0x1373   : > { %7929 = vmatprep.mubr.msk.bf16.mxu0 %vm722_vm0, %v9619_v46 }
0x137a   : > { %7930 = vmatmul.mubr.msk.bf16.vlgmr.msra.gmra.mrb[104].mxu0 %vm722_vm0, %v9627_v16 }
0x137b   : > { %7933 = vmatprep.mubr.msk.bf16.mxu0 %vm722_vm0, %v9636_v39  ;;  %7950 = vmatpush3.bf16.msra.mxu0 %v8329_v18 }
0x137c   : > { %7951 = vmatprep.subr.bf16.mxu0 %v8330_v3 }
0x137f   : > { %7952 = vmatpush3.bf16.msra.mxu0 %v8330_v3 }
0x1382   : > { %7934 = vmatmul.mubr.msk.bf16.gmra.mrb[108].mxu0 %vm722_vm0, %v9644_v6 }
0x1383   : > { %7953 = vmatprep.mubr.msk.bf16.mxu0 %vm722_vm0, %v9619_v46 }
0x138a   : > { %7954 = vmatmul.mubr.msk.bf16.vlgmr.msra.gmra.mrb[112].mxu0 %vm722_vm0, %v9627_v16 }
0x138b   : > { %7957 = vmatprep.mubr.msk.bf16.mxu0 %vm722_vm0, %v9636_v39 }
0x1392   : > { %7958 = vmatmul.mubr.msk.bf16.gmra.mrb[116].mxu0 %vm722_vm0, %v9644_v6 }
0x143d   : > { %v9829_v32 = vpop.f32.mrb[96].mxu0 }
0x143e   : > { %v9831_v7 = vpop.f32.mrb[97].mxu0 }
0x143f   : > { %v9833_v33 = vpop.f32.mrb[98].mxu0 }
0x1440   : > { %v9837_v13 = vpop.f32.mrb[99].mxu0 }
0x1445   : > { %v9841_v62 = vpop.f32.mrb[100].mxu0 }
0x1446   : > { %v9843_v51 = vpop.f32.mrb[101].mxu0 }
0x1447   : > { %v9845_v53 = vpop.f32.mrb[102].mxu0 }
0x1448   : > { %v9849_v22 = vpop.f32.mrb[103].mxu0 }
0x144d   : > { %v7931_v56 = vpop.f32.mrb[104].mxu0 }
0x144e   : > { %v4197_v15 = vpop.f32.mrb[105].mxu0  ;;  %v4206_v63 = vadd.f32 %v7931_v56, %v7048_v61 }
0x144f   : > { %v7932_v54 = vpop.f32.mrb[106].mxu0  ;;  %v4198_v14 = vadd.f32 %v7048_v61, %v4197_v15 }
0x1450   : > { %v4209_v40 = vadd.f32 %v7932_v54, %v7048_v61  ;;  %v4200_v8 = vpop.f32.mrb[107].mxu0  ;;  %v8334_v54 = vld [vmem:[%s8824_s30 + $0x68] sm:$0xff]  }
0x1451   : > { %v4201_v19 = vadd.f32 %v7048_v61, %v4200_v8 }
0x1452   : > { %v4409_v38 = vpack.c.bf16 %v4209_v40, %v4206_v63 }
0x1453   : > { %v4408_v48 = vpack.c.bf16 %v4201_v19, %v4198_v14 }
0x1455   : > { %v7935_v25 = vpop.f32.mrb[108].mxu0  ;;  %7969 = vmatprep.mubr.msk.bf16.mxu1 %vm1120_vm1, %v4408_v48 }
0x1456   : > { %v4213_v52 = vpop.f32.mrb[109].mxu0  ;;  %7970 = vmatmul.mubr.msk.bf16.vlgmr.msra.gmra.mrb[112].mxu1 %vm1120_vm1, %v4409_v38  ;;  %v4222_v49 = vadd.f32 %v7935_v25, %v7048_v61 }
0x1457   : > { %v7936_v59 = vpop.f32.mrb[110].mxu0  ;;  %8014 = vmatpush3.bf16.msra.mxu1 %v8331_v10  ;;  %v4214_v58 = vadd.f32 %v7048_v61, %v4213_v52 }
0x1458   : > { %v4225_v27 = vadd.f32 %v7936_v59, %v7048_v61  ;;  %v4216_v30 = vpop.f32.mrb[111].mxu0  ;;  %8015 = vmatprep.subr.bf16.mxu1 %v8332_v0 }
0x1459   : > { %v4217_v26 = vadd.f32 %v7048_v61, %v4216_v30 }
0x145a   : > { %v4411_v2 = vpack.c.bf16 %v4225_v27, %v4222_v49 }
0x145b   : > { %v4410_v35 = vpack.c.bf16 %v4217_v26, %v4214_v58  ;;  %8016 = vmatpush3.bf16.msra.mxu1 %v8332_v0 }
0x145c   : > { %8025 = vmatprep.subr.bf16.mxu1 %v8333_v5 }
0x145d   : > { %v7955_v34 = vpop.f32.mrb[112].mxu0  ;;  %7973 = vmatprep.mubr.msk.bf16.mxu1 %vm1120_vm1, %v4410_v35 }
0x145e   : > { %v4377_v18 = vpop.f32.mrb[113].mxu0  ;;  %7974 = vmatmul.mubr.msk.bf16.gmra.mrb[116].mxu1 %vm1120_vm1, %v4411_v2  ;;  %v4386_v20 = vadd.f32 %v7955_v34, %v7072_v17 }
0x145f   : > { %v7956_v29 = vpop.f32.mrb[114].mxu0  ;;  %8017 = vmatprep.mubr.msk.bf16.mxu1 %vm722_vm0, %v9619_v46  ;;  %v4378_v3 = vadd.f32 %v7072_v17, %v4377_v18 }
0x1460   : > { %v4389_v23 = vadd.f32 %v7956_v29, %v7072_v17  ;;  %v4380_v11 = vpop.f32.mrb[115].mxu0 }
0x1461   : > { %v4381_v10 = vadd.f32 %v7072_v17, %v4380_v11 }
0x1462   : > { %v4614_v56 = vpack.c.bf16 %v4389_v23, %v4386_v20 }
0x1463   : > { %v4613_v61 = vpack.c.bf16 %v4381_v10, %v4378_v3 }
0x1465   : > { %v7959_v15 = vpop.f32.mrb[116].mxu0  ;;  %7977 = vmatprep.subr.bf16.mxu0 %v4613_v61 }
0x1466   : > { %v4393_v63 = vpop.f32.mrb[117].mxu0  ;;  %7978 = vmatpush3.bf16.msra.mxu0 %v4613_v61  ;;  %8018 = vmatmul.mubr.msk.bf16.vlgmr.msra.gmra.mrb[120].mxu1 %vm722_vm0, %v9627_v16  ;;  %v4402_v8 = vadd.f32 %v7959_v15, %v7072_v17 }
0x1467   : > { %v7960_v40 = vpop.f32.mrb[118].mxu0  ;;  %7979 = vmatprep.subr.bf16.mxu0 %v4614_v56  ;;  %8021 = vmatprep.mubr.msk.bf16.mxu1 %vm722_vm0, %v9636_v39  ;;  %v4394_v38 = vadd.f32 %v7072_v17, %v4393_v63 }
0x1468   : > { %v4405_v14 = vadd.f32 %v7960_v40, %v7072_v17  ;;  %v4396_v19 = vpop.f32.mrb[119].mxu0  ;;  %8026 = vmatpush3.bf16.msra.mxu1 %v8333_v5 }
0x1469   : > { %v4397_v48 = vadd.f32 %v7072_v17, %v4396_v19  ;;  %8027 = vmatprep.subr.bf16.mxu1 %v8334_v54 }
0x146a   : > { %v4616_v0 = vpack.c.bf16 %v4405_v14, %v4402_v8  ;;  %7980 = vmatpush3.bf16.msra.mxu0 %v4614_v56 }
0x146b   : > { %v4615_v25 = vpack.c.bf16 %v4397_v48, %v4394_v38 }
0x146c   : > { %8028 = vmatpush3.bf16.msra.mxu1 %v8334_v54 }
0x146d   : > { %7981 = vmatprep.subr.bf16.mxu0 %v4615_v25 }
0x146e   : > { %7982 = vmatpush3.bf16.msra.mxu0 %v4615_v25  ;;  %8022 = vmatmul.mubr.msk.bf16.gmra.mrb[124].mxu1 %vm722_vm0, %v9644_v6 }
0x146f   : > { %7983 = vmatprep.subr.bf16.mxu0 %v4616_v0  ;;  %8029 = vmatprep.mubr.msk.bf16.mxu1 %vm722_vm0, %v9619_v46 }
0x1472   : > { %7984 = vmatpush3.bf16.msra.mxu0 %v4616_v0  ;;  %v7101_v0 = vld [vmem:[%s9663_s28 + $0x2] ss:$0 sm:$0xff] }
0x1476   : > { %8030 = vmatmul.mubr.msk.bf16.vlgmr.msra.gmra.mrb[128].mxu1 %vm722_vm0, %v9627_v16 }
0x1477   : > { %8033 = vmatprep.mubr.msk.bf16.mxu1 %vm722_vm0, %v9636_v39 }
0x147e   : > { %8034 = vmatmul.mubr.msk.bf16.gmra.mrb[132].mxu1 %vm722_vm0, %v9644_v6 }
0x1529   : > { %v7971_v52 = vpop.f32.mrb[112].mxu1 }
0x152a   : > { %v4474_v59 = vpop.f32.mrb[113].mxu1  ;;  %v4507_v49 = vmul.f32 0.35355338, %v7971_v52 }
0x152b   : > { %v4505_v27 = vmul.f32 0.35355338, %v4474_v59  ;;  %v7972_v30 = vpop.f32.mrb[114].mxu1 }
0x152c   : > { %v4477_v5 = vpop.f32.mrb[115].mxu1  ;;  %v4508_v26 = vmul.f32 0.35355338, %v7972_v30  ;;  %v9882_v35 = vadd.f32 %v4507_v49, %v9707_v42 }
0x152d   : > { %v9879_v58 = vadd.f32 %v4505_v27, %v9702_v36  ;;  %v4506_v2 = vmul.f32 0.35355338, %v4477_v5 }
0x152e   : > { %v9890_v18 = vadd.f32 %v4508_v26, %v9720_v1  ;;  %v4527_v56 = vsel %vm1226_vm2, %v9882_v35, -inf }
0x152f   : > { %v9885_v34 = vadd.f32 %v4506_v2, %v9712_v57  ;;  %v4521_v17 = vsel %vm1226_vm2, %v9879_v58, -inf }
0x1530   : > { %4522 = vmax.xlane.f32.xlu0 %v4521_v17  ;;  %v4530_v40 = vsel %vm1226_vm2, %v9890_v18, -inf }
0x1531   : > { %v7975_v29 = vpop.f32.mrb[116].mxu1  ;;  %v4524_v20 = vsel %vm1226_vm2, %v9885_v34, -inf }
0x1532   : > { %4525 = vmax.xlane.f32.xlu1 %v4524_v20  ;;  %v4490_v23 = vpop.f32.mrb[117].mxu1  ;;  %v4511_v11 = vmul.f32 0.35355338, %v7975_v29 }
0x1533   : > { %v4509_v3 = vmul.f32 0.35355338, %v4490_v23  ;;  %v7976_v10 = vpop.f32.mrb[118].mxu1 }
0x1534   : > { %4528 = vmax.xlane.f32.xlu0 %v4527_v56  ;;  %v4493_v61 = vpop.f32.mrb[119].mxu1  ;;  %v4512_v54 = vmul.f32 0.35355338, %v7976_v10  ;;  %v9902_v8 = vadd.f32 %v4511_v11, %v9745_v21 }
0x1535   : > { %v9897_v15 = vadd.f32 %v4509_v3, %v9738_v43  ;;  %v4510_v63 = vmul.f32 0.35355338, %v4493_v61 }
0x1536   : > { %4531 = vmax.xlane.f32.xlu1 %v4530_v40  ;;  %v9910_v38 = vadd.f32 %v4512_v54, %v9760_v12  ;;  %v4539_v49 = vsel %vm1226_vm2, %v9902_v8, -inf }
0x1537   : > { %v9905_v14 = vadd.f32 %v4510_v63, %v9750_v41  ;;  %v4533_v19 = vsel %vm1226_vm2, %v9897_v15, -inf }
0x1538   : > { %4534 = vmax.xlane.f32.xlu0 %v4533_v19  ;;  %v4542_v17 = vsel %vm1226_vm2, %v9910_v38, -inf }
0x1539   : > { %v8019_v48 = vpop.f32.mrb[120].mxu1  ;;  %v4536_v25 = vsel %vm1226_vm2, %v9905_v14, -inf }
0x153a   : > { %v4919_v52 = vpop.f32.mrb[121].mxu1  ;;  %4537 = vmax.xlane.f32.xlu1 %v4536_v25  ;;  %v4928_v27 = vadd.f32 %v8019_v48, %v7101_v0  ;;  %v7113_v25 = vld [vmem:[%s9663_s28 + $0x6] ss:$0 sm:$0xff] }
0x153b   : > { %v8020_v59 = vpop.f32.mrb[122].mxu1  ;;  %v4920_v26 = vadd.f32 %v7101_v0, %v4919_v52 }
0x153c   : > { %v4931_v30 = vadd.f32 %v8020_v59, %v7101_v0  ;;  %4540 = vmax.xlane.f32.xlu0 %v4539_v49  ;;  %v4922_v5 = vpop.f32.mrb[123].mxu1 }
0x153d   : > { %v4923_v2 = vadd.f32 %v7101_v0, %v4922_v5 }
0x153e   : > { %v5131_v29 = vpack.c.bf16 %v4931_v30, %v4928_v27  ;;  %4543 = vmax.xlane.f32.xlu1 %v4542_v17 }
0x153f   : > { %v5130_v20 = vpack.c.bf16 %v4923_v2, %v4920_v26 }
0x1541   : > { %v8023_v23 = vpop.f32.mrb[124].mxu1  ;;  %8057 = vmatprep.mubr.msk.bf16.mxu1 %vm1120_vm1, %v5130_v20 }
0x1542   : > { %v4935_v11 = vpop.f32.mrb[125].mxu1  ;;  %v4944_v10 = vadd.f32 %v8023_v23, %v7101_v0 }
0x1543   : > { %v8024_v3 = vpop.f32.mrb[126].mxu1  ;;  %v4936_v54 = vadd.f32 %v7101_v0, %v4935_v11 }
0x1544   : > { %v4947_v56 = vadd.f32 %v8024_v3, %v7101_v0  ;;  %v4938_v61 = vpop.f32.mrb[127].mxu1 }
0x1545   : > { %v4939_v63 = vadd.f32 %v7101_v0, %v4938_v61 }
0x1546   : > { %v5133_v40 = vpack.c.bf16 %v4947_v56, %v4944_v10 }
0x1547   : > { %v5132_v19 = vpack.c.bf16 %v4939_v63, %v4936_v54 }
0x1549   : > { %v8031_v48 = vpop.f32.mrb[128].mxu1 }
0x154a   : > { %v5009_v52 = vpop.f32.mrb[129].mxu1  ;;  %v5018_v49 = vadd.f32 %v8031_v48, %v7113_v25 }
0x154b   : > { %v8032_v59 = vpop.f32.mrb[130].mxu1  ;;  %v5010_v5 = vadd.f32 %v7113_v25, %v5009_v52 }
0x154c   : > { %v5021_v27 = vadd.f32 %v8032_v59, %v7113_v25  ;;  %v5012_v30 = vpop.f32.mrb[131].mxu1 }
0x154d   : > { %v5013_v26 = vadd.f32 %v7113_v25, %v5012_v30  ;;  %v8337_v30 = vld [vmem:[%s8824_s30 + $0xb0] sm:$0xff]  }
0x154e   : > { %v5135_v2 = vpack.c.bf16 %v5021_v27, %v5018_v49  ;;  %v8335_v49 = vld [vmem:[%s8824_s30 + $0x30] sm:$0xff]  }
0x154f   : > { %v5134_v17 = vpack.c.bf16 %v5013_v26, %v5010_v5  ;;  %v8338_v5 = vld [vmem:[%s8824_s30 + $0xb8] sm:$0xff]  }
0x1550   : > { %v5154_v52 = vsel %vm1120_vm1, %v5135_v2, 0 }
0x1551   : > { %v8035_v20 = vpop.f32.mrb[132].mxu1  ;;  %8275 = vmatprep.subr.msk.bf16.mxu1 %vm1120_vm1, %v5134_v17  ;;  %v5151_v23 = vsel %vm1120_vm1, %v5134_v17, 0 }
0x1552   : > { %v5025_v11 = vpop.f32.mrb[133].mxu1  ;;  %8050 = vmatpush3.bf16.xpose.msra.mxu1 %v5151_v23  ;;  %v5034_v3 = vadd.f32 %v8035_v20, %v7113_v25 }
0x1553   : > { %v8036_v0 = vpop.f32.mrb[134].mxu1  ;;  %8276 = vmatprep.subr.msk.bf16.mxu1 %vm1120_vm1, %v5135_v2  ;;  %v5026_v61 = vadd.f32 %v7113_v25, %v5025_v11 }
0x1554   : > { %v5037_v10 = vadd.f32 %v8036_v0, %v7113_v25  ;;  %v5028_v56 = vpop.f32.mrb[135].mxu1 }
0x1555   : > { %v5029_v54 = vadd.f32 %v7113_v25, %v5028_v56  ;;  %v8336_v25 = vld [vmem:[%s8824_s30 + $0x38] sm:$0xff]  }
0x1556   : > { %v5137_v63 = vpack.c.bf16 %v5037_v10, %v5034_v3 }
0x1557   : > { %v5136_v48 = vpack.c.bf16 %v5029_v54, %v5026_v61 }
0x1558   : > { %v5160_v27 = vsel %vm1120_vm1, %v5137_v63, 0 }
0x1559   : > { %v5157_v59 = vsel %vm1120_vm1, %v5136_v48, 0 }
0x155a   : > { %8052 = vmatpush3.bf16.xpose.msra.mxu1 %v5154_v52 }
0x155b   : > { %8277 = vmatprep.subr.msk.bf16.mxu1 %vm1120_vm1, %v5136_v48 }
0x1562   : > { %8054 = vmatpush3.bf16.xpose.msra.mxu1 %v5157_v59 }
0x1563   : > { %8278 = vmatprep.subr.msk.bf16.mxu1 %vm1120_vm1, %v5137_v63 }
0x156a   : > { %8056 = vmatpush3.bf16.xpose.msra.mxu1 %v5160_v27 }
0x156b   : > { %8091 = vmatprep.subr.bf16.mxu1 %v8335_v49 }
0x1571   : > { %8058 = vmatmul.mubr.msk.bf16.vlgmr.msra.gmra.mrb[136].mxu1 %vm1120_vm1, %v5131_v29 }
0x1572   : > { %8061 = vmatprep.mubr.msk.bf16.mxu1 %vm1120_vm1, %v5132_v19  ;;  %8092 = vmatpush3.bf16.msra.mxu1 %v8335_v49 }
0x1573   : > { %8093 = vmatprep.subr.bf16.mxu1 %v8336_v25 }
0x1576   : > { %8094 = vmatpush3.bf16.msra.mxu1 %v8336_v25 }
0x1577   : > { %8115 = vmatprep.subr.bf16.mxu1 %v8337_v30 }
0x1579   : > { %8062 = vmatmul.mubr.msk.bf16.gmra.mrb[140].mxu1 %vm1120_vm1, %v5133_v40 }
0x157a   : > { %8095 = vmatprep.mubr.msk.bf16.mxu1 %vm722_vm0, %v9619_v46 }
0x1581   : > { %8096 = vmatmul.mubr.msk.bf16.vlgmr.msra.gmra.mrb[144].mxu1 %vm722_vm0, %v9627_v16 }
0x1582   : > { %8099 = vmatprep.mubr.msk.bf16.mxu1 %vm722_vm0, %v9636_v39  ;;  %8116 = vmatpush3.bf16.msra.mxu1 %v8337_v30 }
0x1583   : > { %8117 = vmatprep.subr.bf16.mxu1 %v8338_v5 }
0x1586   : > { %8118 = vmatpush3.bf16.msra.mxu1 %v8338_v5 }
0x1589   : > { %8100 = vmatmul.mubr.msk.bf16.gmra.mrb[148].mxu1 %vm722_vm0, %v9644_v6 }
0x158a   : > { %8119 = vmatprep.mubr.msk.bf16.mxu1 %vm722_vm0, %v9619_v46 }
0x1591   : > { %8120 = vmatmul.mubr.msk.bf16.vlgmr.msra.gmra.mrb[152].mxu1 %vm722_vm0, %v9627_v16 }
0x1592   : > { %8123 = vmatprep.mubr.msk.bf16.mxu1 %vm722_vm0, %v9636_v39 }
0x1599   : > { %8124 = vmatmul.mubr.msk.bf16.gmra.mrb[156].mxu1 %vm722_vm0, %v9644_v6 }
0x15bd   : > { %v4523_v29 = vpop.xlane.xlu0 %4522 }
0x15be   : > { %v4545_v40 = vsub.f32 %v9879_v58, %v4523_v29 }
0x15bf   : > { %v4526_v19 = vpop.xlane.xlu1 %4525 }
0x15c0   : > { %v4553_v26 = vmul.f32 1.442695, %v4545_v40  ;;  %v4546_v2 = vsub.f32 %v9885_v34, %v4526_v19 }
0x15c1   : > { %v4529_v17 = vpop.xlane.xlu0 %4528 }
0x15c2   : > { %8541 = vpow2.f32 %v4553_v26  ;;  %v4555_v20 = vmul.f32 1.442695, %v4546_v2  ;;  %v4547_v23 = vsub.f32 %v9882_v35, %v4529_v17 }
0x15c3   : > { %v4532_v11 = vpop.xlane.xlu1 %4531 }
0x15c4   : > { %8543 = vpow2.f32 %v4555_v20  ;;  %v4557_v0 = vmul.f32 1.442695, %v4547_v23  ;;  %v4548_v3 = vsub.f32 %v9890_v18, %v4532_v11 }
0x15c5   : > { %v4535_v10 = vpop.xlane.xlu0 %4534 }
0x15c6   : > { %8545 = vpow2.f32 %v4557_v0  ;;  %v4559_v56 = vmul.f32 1.442695, %v4548_v3  ;;  %v4549_v61 = vsub.f32 %v9897_v15, %v4535_v10 }
0x15c7   : > { %v4538_v58 = vpop.xlane.xlu1 %4537 }
0x15c8   : > { %8547 = vpow2.f32 %v4559_v56  ;;  %v4561_v54 = vmul.f32 1.442695, %v4549_v61  ;;  %v4550_v34 = vsub.f32 %v9905_v14, %v4538_v58 }
0x15c9   : > { %v4541_v63 = vpop.xlane.xlu0 %4540 }
0x15ca   : > { %8549 = vpow2.f32 %v4561_v54  ;;  %v4563_v48 = vmul.f32 1.442695, %v4550_v34  ;;  %v4551_v35 = vsub.f32 %v9902_v8, %v4541_v63 }
0x15cb   : > { %v4544_v52 = vpop.xlane.xlu1 %4543 }
0x15cc   : > { %v9959_v59 = vpop.eup %8541  ;;  %8551 = vpow2.f32 %v4563_v48  ;;  %v4565_v18 = vmul.f32 1.442695, %v4551_v35  ;;  %v4552_v49 = vsub.f32 %v9910_v38, %v4544_v52 }
0x15cd   : > { %v4569_v15 = vsel %vm1226_vm2, %v9959_v59, 0.0 }
0x15ce   : > { %v9964_v27 = vpop.eup %8543  ;;  %8553 = vpow2.f32 %v4565_v18  ;;  %v4567_v25 = vmul.f32 1.442695, %v4552_v49  ;;  %4570 = vadd.xlane.f32.xlu0 %v4569_v15 }
0x15cf   : > { %v4572_v14 = vsel %vm1226_vm2, %v9964_v27, 0.0 }
0x15d0   : > { %v9968_v30 = vpop.eup %8545  ;;  %8555 = vpow2.f32 %v4567_v25  ;;  %4573 = vadd.xlane.f32.xlu1 %v4572_v14 }
0x15d1   : > { %v4575_v8 = vsel %vm1226_vm2, %v9968_v30, 0.0 }
0x15d2   : > { %v9972_v5 = vpop.eup %8547  ;;  %4576 = vadd.xlane.f32.xlu0 %v4575_v8 }
0x15d3   : > { %v4578_v38 = vsel %vm1226_vm2, %v9972_v5, 0.0 }
0x15d4   : > { %v9976_v29 = vpop.eup %8549  ;;  %4579 = vadd.xlane.f32.xlu1 %v4578_v38 }
0x15d5   : > { %v4581_v40 = vsel %vm1226_vm2, %v9976_v29, 0.0 }
0x15d6   : > { %v9980_v19 = vpop.eup %8551  ;;  %4582 = vadd.xlane.f32.xlu0 %v4581_v40 }
0x15d7   : > { %v4584_v26 = vsel %vm1226_vm2, %v9980_v19, 0.0 }
0x15d8   : > { %v9984_v2 = vpop.eup %8553  ;;  %4585 = vadd.xlane.f32.xlu1 %v4584_v26 }
0x15d9   : > { %v4587_v17 = vsel %vm1226_vm2, %v9984_v2, 0.0 }
0x15da   : > { %v9988_v20 = vpop.eup %8555  ;;  %4588 = vadd.xlane.f32.xlu0 %v4587_v17 }
0x15db   : > { %v4590_v23 = vsel %vm1226_vm2, %v9988_v20, 0.0 }
0x15dc   : > { %4591 = vadd.xlane.f32.xlu1 %v4590_v23 }
0x1644   : > { %v8059_v11 = vpop.f32.mrb[136].mxu1 }
0x1645   : > { %v5196_v0 = vpop.f32.mrb[137].mxu1  ;;  %v5229_v3 = vmul.f32 0.35355338, %v8059_v11  ;;  %v7150_v11 = vld [vmem:[%s9663_s28 + $0x3] ss:$0 sm:$0xff] }
0x1646   : > { %v5227_v10 = vmul.f32 0.35355338, %v5196_v0  ;;  %v8060_v56 = vpop.f32.mrb[138].mxu1 }
0x1647   : > { %v5199_v61 = vpop.f32.mrb[139].mxu1  ;;  %v5230_v54 = vmul.f32 0.35355338, %v8060_v56  ;;  %v9996_v63 = vadd.f32 %v5229_v3, %v9707_v42 }
0x1648   : > { %v9993_v58 = vadd.f32 %v5227_v10, %v9702_v36  ;;  %v5228_v34 = vmul.f32 0.35355338, %v5199_v61 }
0x1649   : > { %v10004_v52 = vadd.f32 %v5230_v54, %v9720_v1 }
0x164a   : > { %v9999_v48 = vadd.f32 %v5228_v34, %v9712_v57  ;;  %v5243_v35 = vsel %vm1226_vm2, %v9993_v58, -inf  ;;  %v5249_v57 = vsel %vm1226_vm2, %v9996_v63, -inf }
0x164b   : > { %5244 = vmax.xlane.f32.xlu0 %v5243_v35  ;;  %v5252_v40 = vsel %vm1226_vm2, %v10004_v52, -inf }
0x164c   : > { %v8063_v18 = vpop.f32.mrb[140].mxu1  ;;  %v5246_v36 = vsel %vm1226_vm2, %v9999_v48, -inf }
0x164d   : > { %v5212_v49 = vpop.f32.mrb[141].mxu1  ;;  %5247 = vmax.xlane.f32.xlu1 %v5246_v36  ;;  %v5233_v15 = vmul.f32 0.35355338, %v8063_v18 }
0x164e   : > { %v5231_v42 = vmul.f32 0.35355338, %v5212_v49  ;;  %v8064_v25 = vpop.f32.mrb[142].mxu1 }
0x164f   : > { %5250 = vmax.xlane.f32.xlu0 %v5249_v57  ;;  %v5215_v14 = vpop.f32.mrb[143].mxu1  ;;  %v5234_v1 = vmul.f32 0.35355338, %v8064_v25  ;;  %v10016_v26 = vadd.f32 %v5233_v15, %v9745_v21 }
0x1650   : > { %v10011_v8 = vadd.f32 %v5231_v42, %v9738_v43  ;;  %v5232_v38 = vmul.f32 0.35355338, %v5215_v14 }
0x1651   : > { %5253 = vmax.xlane.f32.xlu1 %v5252_v40  ;;  %v10025_v43 = vadd.f32 %v5234_v1, %v9760_v12 }
0x1652   : > { %v10019_v17 = vadd.f32 %v5232_v38, %v9750_v41  ;;  %v5255_v23 = vsel %vm1226_vm2, %v10011_v8, -inf  ;;  %v5261_v41 = vsel %vm1226_vm2, %v10016_v26, -inf }
0x1653   : > { %5256 = vmax.xlane.f32.xlu0 %v5255_v23  ;;  %v5264_v35 = vsel %vm1226_vm2, %v10025_v43, -inf }
0x1654   : > { %v8097_v0 = vpop.f32.mrb[144].mxu1  ;;  %v5258_v3 = vsel %vm1226_vm2, %v10019_v17, -inf }
0x1655   : > { %v10029_v10 = vadd.f32 %v8097_v0, %v7150_v11  ;;  %v5569_v56 = vpop.f32.mrb[145].mxu1  ;;  %5259 = vmax.xlane.f32.xlu1 %v5258_v3 }
0x1656   : > { %v8098_v21 = vpop.f32.mrb[146].mxu1  ;;  %v10035_v34 = vadd.f32 %v7150_v11, %v5569_v56 }
0x1657   : > { %v10033_v61 = vadd.f32 %v8098_v21, %v7150_v11  ;;  %5262 = vmax.xlane.f32.xlu0 %v5261_v41  ;;  %v5572_v54 = vpop.f32.mrb[147].mxu1 }
0x1658   : > { %v10037_v12 = vadd.f32 %v7150_v11, %v5572_v54 }
0x1659   : > { %5265 = vmax.xlane.f32.xlu1 %v5264_v35  ;;  %v7174_v35 = vld [vmem:[%s9663_s28 + $0xb] ss:$0 sm:$0xff] }
0x165b   : > { %v4571_v49 = vpop.xlane.xlu0 %4570 }
0x165c   : > { %8557 = vrcp.f32 %v4571_v49  ;;  %v8101_v15 = vpop.f32.mrb[148].mxu1 }
0x165d   : > { %v10045_v42 = vadd.f32 %v8101_v15, %v7150_v11  ;;  %v5585_v25 = vpop.f32.mrb[149].mxu1  ;;  %v4574_v57 = vpop.xlane.xlu1 %4573 }
0x165e   : > { %v10047_v14 = vadd.f32 %v7150_v11, %v5585_v25  ;;  %8559 = vrcp.f32 %v4574_v57  ;;  %v8102_v1 = vpop.f32.mrb[150].mxu1 }
0x165f   : > { %v10049_v38 = vadd.f32 %v8102_v1, %v7150_v11  ;;  %v4577_v40 = vpop.xlane.xlu0 %4576  ;;  %v5588_v23 = vpop.f32.mrb[151].mxu1 }
0x1660   : > { %8561 = vrcp.f32 %v4577_v40  ;;  %v10051_v0 = vadd.f32 %v7150_v11, %v5588_v23 }
0x1661   : > { %v4580_v56 = vpop.xlane.xlu1 %4579 }
0x1662   : > { %8563 = vrcp.f32 %v4580_v56 }
0x1663   : > { %v4583_v41 = vpop.xlane.xlu0 %4582 }
0x1664   : > { %8565 = vrcp.f32 %v4583_v41  ;;  %v8121_v54 = vpop.f32.mrb[152].mxu1 }
0x1665   : > { %v5749_v49 = vpop.f32.mrb[153].mxu1  ;;  %v4586_v15 = vpop.xlane.xlu1 %4585  ;;  %v5758_v1 = vadd.f32 %v8121_v54, %v7174_v35 }
0x1666   : > { %v8558_v25 = vpop.eup %8557  ;;  %8567 = vrcp.f32 %v4586_v15  ;;  %v8122_v57 = vpop.f32.mrb[154].mxu1  ;;  %v5750_v3 = vadd.f32 %v7174_v35, %v5749_v49 }
0x1667   : > { %v5761_v11 = vadd.f32 %v8122_v57, %v7174_v35  ;;  %v4589_v40 = vpop.xlane.xlu0 %4588  ;;  %v5752_v23 = vpop.f32.mrb[155].mxu1  ;;  %v4601_v56 = vmul.f32 %v8558_v25, %v9959_v59 }
0x1668   : > { %v8560_v18 = vpop.eup %8559  ;;  %8569 = vrcp.f32 %v4589_v40  ;;  %v5753_v36 = vadd.f32 %v7174_v35, %v5752_v23 }
0x1669   : > { %v5986_v44 = vpack.c.bf16 %v5761_v11, %v5758_v1  ;;  %v4592_v21 = vpop.xlane.xlu1 %4591  ;;  %v4602_v41 = vmul.f32 %v8560_v18, %v9964_v27 }
0x166a   : > { %v8562_v47 = vpop.eup %8561  ;;  %v5985_v55 = vpack.c.bf16 %v5753_v36, %v5750_v3  ;;  %8571 = vrcp.f32 %v4592_v21 }
0x166b   : > { %v4609_v31 = vpack.c.bf16 %v4602_v41, %v4601_v56  ;;  %v4603_v54 = vmul.f32 %v8562_v47, %v9968_v30 }
0x166c   : > { %v8564_v15 = vpop.eup %8563  ;;  %v8125_v24 = vpop.f32.mrb[156].mxu1  ;;  %8143 = vmatprep.subr.bf16.mxu1 %v5985_v55 }
0x166d   : > { %v4604_v57 = vmul.f32 %v8564_v15, %v9972_v5  ;;  %7985 = vmatprep.mubr.msk.bf16.mxu0 %vm1226_vm2, %v4609_v31  ;;  %v5765_v49 = vpop.f32.mrb[157].mxu1  ;;  %8144 = vmatpush3.bf16.msra.mxu1 %v5985_v55  ;;  %v5774_v27 = vadd.f32 %v8125_v24, %v7174_v35 }
0x166e   : > { %v8566_v1 = vpop.eup %8565  ;;  %v8126_v11 = vpop.f32.mrb[158].mxu1  ;;  %8145 = vmatprep.subr.bf16.mxu1 %v5986_v44  ;;  %v5766_v21 = vadd.f32 %v7174_v35, %v5765_v49 }
0x166f   : > { %v4610_v59 = vpack.c.bf16 %v4604_v57, %v4603_v54  ;;  %v5777_v18 = vadd.f32 %v8126_v11, %v7174_v35  ;;  %v5768_v36 = vpop.f32.mrb[159].mxu1  ;;  %v4605_v47 = vmul.f32 %v8566_v1, %v9976_v29 }
0x1670   : > { %v8568_v3 = vpop.eup %8567  ;;  %v5769_v25 = vadd.f32 %v7174_v35, %v5768_v36 }
0x1671   : > { %v5988_v40 = vpack.c.bf16 %v5777_v18, %v5774_v27  ;;  %7986 = vmatmul.mubr.msk.bf16.vlgmr.msra.gmra.mrb[120].mxu0 %vm1226_vm2, %v4610_v59  ;;  %8146 = vmatpush3.bf16.msra.mxu1 %v5986_v44  ;;  %v4606_v31 = vmul.f32 %v8568_v3, %v9980_v19  ;;  %v7087_v44 = vld [vmem:[%s10073_s16 + $0x4] sm:$0xf]  ;;  %v10080_v19 = vld [vmem:[%s10073_s16] sm:$0xf] }
0x1672   : > { %v8570_v55 = vpop.eup %8569  ;;  %v5987_v30 = vpack.c.bf16 %v5769_v25, %v5766_v21  ;;  %v4713_v29 = vsel %vm1979_vm3, %v7087_v44, 0  ;;  %8273 = vmatprep.subr.msk.bf16.mxu0 %vm1979_vm3, %v7087_v44 }
0x1673   : > { %v4611_v5 = vpack.c.bf16 %v4606_v31, %v4605_v47  ;;  %v4607_v24 = vmul.f32 %v8570_v55, %v9984_v2  ;;  %7994 = vmatpush3.bf16.msra.mxu0 %v4713_v29 }
0x1674   : > { %v8572_v23 = vpop.eup %8571  ;;  %8147 = vmatprep.subr.bf16.mxu1 %v5987_v30  ;;  %8274 = vmatprep.subr.msk.bf16.mxu0 %vm1979_vm3, %v10080_v19 }
0x1675   : > { %7989 = vmatprep.mubr.msk.bf16.mxu0 %vm1226_vm2, %v4611_v5  ;;  %8148 = vmatpush3.bf16.msra.mxu1 %v5987_v30  ;;  %v4608_v35 = vmul.f32 %v8572_v23, %v9988_v20 }
0x1676   : > { %8149 = vmatprep.subr.bf16.mxu1 %v5988_v40 }
0x1677   : > { %v4612_v56 = vpack.c.bf16 %v4608_v35, %v4607_v24 }
0x1679   : > { %7990 = vmatmul.mubr.msk.bf16.gmra.mrb[124].mxu0 %vm1226_vm2, %v4612_v56  ;;  %8150 = vmatpush3.bf16.msra.mxu1 %v5988_v40 }
0x16d8   : > { %v5245_v2 = vpop.xlane.xlu0 %5244 }
0x16d9   : > { %v5267_v20 = vsub.f32 %v9993_v58, %v5245_v2 }
0x16da   : > { %v5248_v41 = vpop.xlane.xlu1 %5247 }
0x16db   : > { %v5275_v15 = vmul.f32 1.442695, %v5267_v20  ;;  %v5268_v54 = vsub.f32 %v9999_v48, %v5248_v41 }
0x16dc   : > { %v5251_v57 = vpop.xlane.xlu0 %5250 }
0x16dd   : > { %8573 = vpow2.f32 %v5275_v15  ;;  %v5277_v49 = vmul.f32 1.442695, %v5268_v54  ;;  %v5269_v1 = vsub.f32 %v9996_v63, %v5251_v57 }
0x16de   : > { %v5254_v11 = vpop.xlane.xlu1 %5253 }
0x16df   : > { %8575 = vpow2.f32 %v5277_v49  ;;  %v5279_v59 = vmul.f32 1.442695, %v5269_v1  ;;  %v5270_v27 = vsub.f32 %v10004_v52, %v5254_v11 }
0x16e0   : > { %v5257_v18 = vpop.xlane.xlu0 %5256 }
0x16e1   : > { %8577 = vpow2.f32 %v5279_v59  ;;  %v5281_v36 = vmul.f32 1.442695, %v5270_v27  ;;  %v5271_v3 = vsub.f32 %v10011_v8, %v5257_v18  ;;  %v4793_v27 = vsel %vm1979_vm3, %v10080_v19, 0  ;;  %v8339_v18 = vld [vmem:[%s8824_s30 + $0xa0] sm:$0xff]  }
0x16e2   : > { %v5260_v58 = vpop.xlane.xlu1 %5259  ;;  %v10471_v19 = vpack.c.bf16 %v9837_v13, %v9831_v7 }
0x16e3   : > { %8579 = vpow2.f32 %v5281_v36  ;;  %v5283_v21 = vmul.f32 1.442695, %v5271_v3  ;;  %v5272_v48 = vsub.f32 %v10019_v17, %v5260_v58 }
0x16e4   : > { %v5263_v25 = vpop.xlane.xlu0 %5262 }
0x16e5   : > { %8581 = vpow2.f32 %v5283_v21  ;;  %v5285_v40 = vmul.f32 1.442695, %v5272_v48  ;;  %v5273_v63 = vsub.f32 %v10016_v26, %v5263_v25 }
0x16e6   : > { %v5266_v47 = vpop.xlane.xlu1 %5265 }
0x16e7   : > { %v10091_v31 = vpop.eup %8573  ;;  %8583 = vpow2.f32 %v5285_v40  ;;  %v5287_v52 = vmul.f32 1.442695, %v5273_v63  ;;  %v5274_v55 = vsub.f32 %v10025_v43, %v5266_v47  ;;  %v8340_v40 = vld [vmem:[%s8824_s30 + $0xa8] sm:$0xff]   ;;  %v10472_v63 = vpack.c.bf16 %v9833_v33, %v9829_v32 }
0x16e8   : > { %v5291_v8 = vsel %vm1226_vm2, %v10091_v31, 0.0  ;;  %v10473_v47 = vpack.c.bf16 %v9849_v22, %v9843_v51 }
0x16e9   : > { %v10096_v30 = vpop.eup %8575  ;;  %8585 = vpow2.f32 %v5287_v52  ;;  %v5289_v5 = vmul.f32 1.442695, %v5274_v55  ;;  %5292 = vadd.xlane.f32.xlu0 %v5291_v8  ;;  %v10474_v52 = vpack.c.bf16 %v9845_v53, %v9841_v62 }
0x16ea   : > { %v5294_v17 = vsel %vm1226_vm2, %v10096_v30, 0.0 }
0x16eb   : > { %v10100_v23 = vpop.eup %8577  ;;  %8587 = vpow2.f32 %v5289_v5  ;;  %5295 = vadd.xlane.f32.xlu1 %v5294_v17  ;;  %v7125_v5 = vld [vmem:[%s9663_s28 + $0xa] ss:$0 sm:$0xff] }
0x16ec   : > { %v5297_v26 = vsel %vm1226_vm2, %v10100_v23, 0.0 }
0x16ed   : > { %v10104_v24 = vpop.eup %8579  ;;  %5298 = vadd.xlane.f32.xlu0 %v5297_v26 }
0x16ee   : > { %v5300_v43 = vsel %vm1226_vm2, %v10104_v24, 0.0 }
0x16ef   : > { %v10108_v35 = vpop.eup %8581  ;;  %5301 = vadd.xlane.f32.xlu1 %v5300_v43 }
0x16f0   : > { %v5303_v56 = vsel %vm1226_vm2, %v10108_v35, 0.0 }
0x16f1   : > { %v10112_v44 = vpop.eup %8583  ;;  %5304 = vadd.xlane.f32.xlu0 %v5303_v56 }
0x16f2   : > { %v5306_v29 = vsel %vm1226_vm2, %v10112_v44, 0.0 }
0x16f3   : > { %v10116_v2 = vpop.eup %8585  ;;  %5307 = vadd.xlane.f32.xlu1 %v5306_v29 }
0x16f4   : > { %v5309_v20 = vsel %vm1226_vm2, %v10116_v2, 0.0 }
0x16f5   : > { %v10120_v41 = vpop.eup %8587  ;;  %5310 = vadd.xlane.f32.xlu0 %v5309_v20 }
0x16f6   : > { %v5312_v15 = vsel %vm1226_vm2, %v10120_v41, 0.0 }
0x16f7   : > { %5313 = vadd.xlane.f32.xlu1 %v5312_v15 }
0x1744   : > { %v7987_v54 = vpop.f32.mrb[120].mxu0 }
0x1745   : > { %v4663_v57 = vpop.f32.mrb[121].mxu0 }
0x1746   : > { %v7988_v49 = vpop.f32.mrb[122].mxu0 }
0x1747   : > { %v4695_v1 = vpack.c.bf16 %v7988_v49, %v7987_v54  ;;  %v4666_v11 = vpop.f32.mrb[123].mxu0 }
0x1748   : > { %v4694_v59 = vpack.c.bf16 %v4666_v11, %v4663_v57 }
0x174a   : > { %7995 = vmatprep.mubr.msk.bf16.mxu0 %vm1120_vm1, %v4694_v59 }
0x174b   : > { %7996 = vmatmul.mubr.msk.bf16.vlgmr.msra.gmra.mrb[128].mxu0 %vm1120_vm1, %v4695_v1 }
0x174c   : > { %v7991_v36 = vpop.f32.mrb[124].mxu0  ;;  %8004 = vmatpush3.bf16.msra.mxu0 %v4793_v27 }
0x174d   : > { %v4679_v3 = vpop.f32.mrb[125].mxu0  ;;  %8037 = vmatprep.subr.bf16.mxu0 %v8339_v18 }
0x174e   : > { %v7992_v58 = vpop.f32.mrb[126].mxu0 }
0x174f   : > { %v4697_v21 = vpack.c.bf16 %v7992_v58, %v7991_v36  ;;  %v4682_v48 = vpop.f32.mrb[127].mxu0 }
0x1750   : > { %v4696_v25 = vpack.c.bf16 %v4682_v48, %v4679_v3 }
0x1752   : > { %7999 = vmatprep.mubr.msk.bf16.mxu0 %vm1120_vm1, %v4696_v25 }
0x1753   : > { %8000 = vmatmul.mubr.msk.bf16.gmra.mrb[132].mxu0 %vm1120_vm1, %v4697_v21 }
0x1754   : > { %8005 = vmatprep.mubr.msk.bf16.mxu0 %vm1120_vm1, %v10471_v19 }
0x175b   : > { %8006 = vmatmul.mubr.msk.bf16.vlgmr.msra.gmra.mrb[128].mxu0 %vm1120_vm1, %v10472_v63 }
0x175c   : > { %8009 = vmatprep.mubr.msk.bf16.mxu0 %vm1120_vm1, %v10473_v47  ;;  %8038 = vmatpush3.bf16.msra.mxu0 %v8339_v18 }
0x175d   : > { %8039 = vmatprep.subr.bf16.mxu0 %v8340_v40 }
0x1760   : > { %8040 = vmatpush3.bf16.msra.mxu0 %v8340_v40 }
0x1763   : > { %8010 = vmatmul.mubr.msk.bf16.gmra.mrb[132].mxu0 %vm1120_vm1, %v10474_v52 }
0x1764   : > { %8041 = vmatprep.mubr.msk.bf16.mxu0 %vm722_vm0, %v9619_v46 }
0x176b   : > { %8042 = vmatmul.mubr.msk.bf16.vlgmr.msra.gmra.mrb[136].mxu0 %vm722_vm0, %v9627_v16 }
0x176c   : > { %8045 = vmatprep.mubr.msk.bf16.mxu0 %vm722_vm0, %v9636_v39 }
0x1773   : > { %8046 = vmatmul.mubr.msk.bf16.gmra.mrb[140].mxu0 %vm722_vm0, %v9644_v6 }
0x1776   : > { %v5293_v32 = vpop.xlane.xlu0 %5292 }
0x1777   : > { %8589 = vrcp.f32 %v5293_v32 }
0x1778   : > { %v5296_v7 = vpop.xlane.xlu1 %5295 }
0x1779   : > { %8591 = vrcp.f32 %v5296_v7  ;;  %v7140_v7 = vld [vmem:[%s10073_s16 + $0x8] sm:$0xf] }
0x177a   : > { %v5299_v55 = vpop.xlane.xlu0 %5298 }
0x177c   : > { %v5302_v22 = vpop.xlane.xlu1 %5301 }
0x177d   : > { %8593 = vrcp.f32 %v5302_v22 }
0x177e   : > { %v5305_v57 = vpop.xlane.xlu0 %5304 }
0x1780   : > { %v5308_v43 = vpop.xlane.xlu1 %5307 }
0x1781   : > { %v8590_v33 = vpop.eup %8589  ;;  %8595 = vrcp.f32 %v5308_v43 }
0x1782   : > { %v5323_v62 = vmul.f32 %v8590_v33, %v10091_v31  ;;  %8597 = vrcp.f32 %v5299_v55  ;;  %v5311_v3 = vpop.xlane.xlu0 %5310 }
0x1783   : > { %v8592_v13 = vpop.eup %8591  ;;  %8599 = vrcp.f32 %v5305_v57 }
0x1784   : > { %v5324_v51 = vmul.f32 %v8592_v13, %v10096_v30  ;;  %v5314_v11 = vpop.xlane.xlu1 %5313 }
0x1785   : > { %8601 = vrcp.f32 %v5314_v11 }
0x1786   : > { %v5331_v53 = vpack.c.bf16 %v5324_v51, %v5323_v62  ;;  %8603 = vrcp.f32 %v5311_v3  ;;  %v5435_v51 = vsel %vm1979_vm3, %v7140_v7, 0 }
0x1787   : > { %v8594_v19 = vpop.eup %8593 }
0x1788   : > { %8073 = vmatprep.mubr.msk.bf16.mxu0 %vm1226_vm2, %v5331_v53  ;;  %v5326_v52 = vmul.f32 %v8594_v19, %v10104_v24 }
0x178b   : > { %v8596_v40 = vpop.eup %8595 }
0x178c   : > { %v8598_v63 = vpop.eup %8597  ;;  %v5328_v32 = vmul.f32 %v8596_v40, %v10112_v44 }
0x178d   : > { %v8600_v47 = vpop.eup %8599  ;;  %v5325_v33 = vmul.f32 %v8598_v63, %v10100_v23 }
0x178e   : > { %v5327_v13 = vmul.f32 %v8600_v47, %v10108_v35  ;;  %v8341_v35 = vld [vmem:[%s8824_s30 + $0x70] sm:$0xff]  }
0x178f   : > { %v5332_v62 = vpack.c.bf16 %v5326_v52, %v5325_v33  ;;  %v8602_v53 = vpop.eup %8601  ;;  %v10477_v33 = vpack.c.bf16 %v10051_v0, %v10047_v14  ;;  %v8686_v0 = vld [vmem:[%s10454_s2 + $0x10] sm:$0xff] }
0x1790   : > { %v5333_v22 = vpack.c.bf16 %v5328_v32, %v5327_v13  ;;  %v8604_v24 = vpop.eup %8603  ;;  %v5330_v23 = vmul.f32 %v8602_v53, %v10120_v41  ;;  %v10478_v13 = vpack.c.bf16 %v10049_v38, %v10045_v42  ;;  %v8687_v38 = vld [vmem:[%s10454_s2 + $0x8] sm:$0xff] }
0x1791   : > { %v5329_v44 = vmul.f32 %v8604_v24, %v10116_v2 }
0x1793   : > { %v5334_v55 = vpack.c.bf16 %v5330_v23, %v5329_v44 }
0x183e   : > { %v8043_v8 = vpop.f32.mrb[136].mxu0 }
0x183f   : > { %v5099_v17 = vpop.f32.mrb[137].mxu0  ;;  %v5108_v56 = vadd.f32 %v8043_v8, %v7125_v5 }
0x1840   : > { %v8044_v26 = vpop.f32.mrb[138].mxu0  ;;  %v5100_v15 = vadd.f32 %v7125_v5, %v5099_v17 }
0x1841   : > { %v5111_v29 = vadd.f32 %v8044_v26, %v7125_v5  ;;  %v5102_v20 = vpop.f32.mrb[139].mxu0 }
0x1842   : > { %v5103_v54 = vadd.f32 %v7125_v5, %v5102_v20 }
0x1843   : > { %v5336_v31 = vpack.c.bf16 %v5111_v29, %v5108_v56  ;;  %v8342_v29 = vld [vmem:[%s8824_s30 + $0x78] sm:$0xff]   ;;  %s688_s30 = scalar_lea.vmem %s10463_s11, %s9325_s26  ;;  %s7217_s26 = sshll.u32 %s10481_s19, 5 }
0x1844   : > { %v5335_v30 = vpack.c.bf16 %v5103_v54, %v5100_v15  ;;  %s696_s27 = scalar_lea.vmem %s10465_s13, %s7217_s26  ;;  %s704_s26 = scalar_lea.vmem %s10467_s15, %s7213_s20 }
0x1846   : > { %v8047_v49 = vpop.f32.mrb[140].mxu0  ;;  %8065 = vmatprep.subr.bf16.mxu0 %v5335_v30 }
0x1847   : > { %v5115_v1 = vpop.f32.mrb[141].mxu0  ;;  %8066 = vmatpush3.bf16.msra.mxu0 %v5335_v30  ;;  %v5124_v27 = vadd.f32 %v8047_v49, %v7125_v5  ;;  %v7162_v49 = vld [vmem:[%s9663_s28 + $0x7] ss:$0 sm:$0xff] }
0x1848   : > { %v8048_v59 = vpop.f32.mrb[142].mxu0  ;;  %8067 = vmatprep.subr.bf16.mxu0 %v5336_v31  ;;  %v5116_v58 = vadd.f32 %v7125_v5, %v5115_v1 }
0x1849   : > { %v5127_v18 = vadd.f32 %v8048_v59, %v7125_v5  ;;  %v5118_v36 = vpop.f32.mrb[143].mxu0 }
0x184a   : > { %v5119_v21 = vadd.f32 %v7125_v5, %v5118_v36 }
0x184b   : > { %v5338_v48 = vpack.c.bf16 %v5127_v18, %v5124_v27  ;;  %8068 = vmatpush3.bf16.msra.mxu0 %v5336_v31  ;;  %v10475_v31 = vpack.c.bf16 %v10037_v12, %v10035_v34 }
0x184c   : > { %v5337_v25 = vpack.c.bf16 %v5119_v21, %v5116_v58 }
0x184e   : > { %8069 = vmatprep.subr.bf16.mxu0 %v5337_v25 }
0x184f   : > { %8070 = vmatpush3.bf16.msra.mxu0 %v5337_v25 }
0x1850   : > { %8071 = vmatprep.subr.bf16.mxu0 %v5338_v48 }
0x1853   : > { %8072 = vmatpush3.bf16.msra.mxu0 %v5338_v48 }
0x1854   : > { %8279 = vmatprep.subr.msk.bf16.mxu0 %vm1979_vm3, %v7140_v7  ;;  %v10476_v7 = vpack.c.bf16 %v10033_v61, %v10029_v10  ;;  %v8685_v10 = vld [vmem:[%s10454_s2] sm:$0xff] }
0x1856   : > { %8074 = vmatmul.mubr.msk.bf16.vlgmr.msra.gmra.mrb[144].mxu0 %vm1226_vm2, %v5332_v62 }
0x1857   : > { %8077 = vmatprep.mubr.msk.bf16.mxu0 %vm1226_vm2, %v5333_v22  ;;  %8082 = vmatpush3.bf16.msra.mxu0 %v5435_v51 }
0x1858   : > { %8103 = vmatprep.subr.bf16.mxu0 %v8341_v35 }
0x185e   : > { %8078 = vmatmul.mubr.msk.bf16.gmra.mrb[148].mxu0 %vm1226_vm2, %v5334_v55 }
0x1929   : > { %v8075_v8 = vpop.f32.mrb[144].mxu0 }
0x192a   : > { %v5385_v5 = vpop.f32.mrb[145].mxu0 }
0x192b   : > { %v8076_v17 = vpop.f32.mrb[146].mxu0 }
0x192c   : > { %v5417_v26 = vpack.c.bf16 %v8076_v17, %v8075_v8  ;;  %v5388_v43 = vpop.f32.mrb[147].mxu0  ;;  %v8688_v8 = vld [vmem:[%s10454_s2 + $0x18] sm:$0xff] }
0x192d   : > { %v5416_v56 = vpack.c.bf16 %v5388_v43, %v5385_v5 }
0x192f   : > { %8083 = vmatprep.mubr.msk.bf16.mxu0 %vm1120_vm1, %v5416_v56 }
0x1930   : > { %8084 = vmatmul.mubr.msk.bf16.vlgmr.msra.gmra.mrb[128].mxu0 %vm1120_vm1, %v5417_v26 }
0x1931   : > { %v8079_v20 = vpop.f32.mrb[148].mxu0  ;;  %8104 = vmatpush3.bf16.msra.mxu0 %v8341_v35 }
0x1932   : > { %v5401_v2 = vpop.f32.mrb[149].mxu0  ;;  %8105 = vmatprep.subr.bf16.mxu0 %v8342_v29 }
0x1933   : > { %v8080_v41 = vpop.f32.mrb[150].mxu0 }
0x1934   : > { %v5419_v15 = vpack.c.bf16 %v8080_v41, %v8079_v20  ;;  %v5404_v54 = vpop.f32.mrb[151].mxu0 }
0x1935   : > { %v5418_v57 = vpack.c.bf16 %v5404_v54, %v5401_v2  ;;  %8106 = vmatpush3.bf16.msra.mxu0 %v8342_v29 }
0x1937   : > { %8087 = vmatprep.mubr.msk.bf16.mxu0 %vm1120_vm1, %v5418_v57 }
0x1938   : > { %8088 = vmatmul.mubr.msk.bf16.gmra.mrb[132].mxu0 %vm1120_vm1, %v5419_v15  ;;  %v8689_v15 = vld [vmem:[%s10454_s2 + $0x20] sm:$0xff] }
0x1939   : > { %8107 = vmatprep.mubr.msk.bf16.mxu0 %vm722_vm0, %v9619_v46 }
0x1940   : > { %8108 = vmatmul.mubr.msk.bf16.vlgmr.msra.gmra.mrb[152].mxu0 %vm722_vm0, %v9627_v16 }
0x1941   : > { %8111 = vmatprep.mubr.msk.bf16.mxu0 %vm722_vm0, %v9636_v39 }
0x1948   : > { %8112 = vmatmul.mubr.msk.bf16.gmra.mrb[156].mxu0 %vm722_vm0, %v9644_v6 }
0x1949   : > { %8135 = vmatprep.mubr.msk.bf16.mxu0 %vm1120_vm1, %v10475_v31 }
0x1a13   : > { %v8109_v30 = vpop.f32.mrb[152].mxu0 }
0x1a14   : > { %v5659_v1 = vpop.f32.mrb[153].mxu0  ;;  %v5668_v59 = vadd.f32 %v8109_v30, %v7162_v49 }
0x1a15   : > { %v8110_v11 = vpop.f32.mrb[154].mxu0  ;;  %v5660_v18 = vadd.f32 %v7162_v49, %v5659_v1 }
0x1a16   : > { %v5671_v46 = vadd.f32 %v8110_v11, %v7162_v49  ;;  %v5662_v27 = vpop.f32.mrb[155].mxu0  ;;  %v8691_v11 = vld [vmem:[%s10454_s2 + $0x28] sm:$0xff] }
0x1a17   : > { %v5663_v16 = vadd.f32 %v7162_v49, %v5662_v27  ;;  %v8692_v27 = vld [vmem:[%s10454_s2 + $0x38] sm:$0xff] }
0x1a18   : > { %v5785_v36 = vpack.c.bf16 %v5671_v46, %v5668_v59 }
0x1a19   : > { %v5784_v3 = vpack.c.bf16 %v5663_v16, %v5660_v18 }
0x1a1a   : > { %v5804_v47 = vsel %vm1120_vm1, %v5785_v36, 0 }
0x1a1b   : > { %v8113_v39 = vpop.f32.mrb[156].mxu0  ;;  %8280 = vmatprep.subr.msk.bf16.mxu0 %vm1120_vm1, %v5784_v3  ;;  %v5801_v6 = vsel %vm1120_vm1, %v5784_v3, 0 }
0x1a1c   : > { %v5675_v58 = vpop.f32.mrb[157].mxu0  ;;  %8128 = vmatpush3.bf16.xpose.msra.mxu0 %v5801_v6  ;;  %v5684_v12 = vadd.f32 %v8113_v39, %v7162_v49 }
0x1a1d   : > { %v8114_v34 = vpop.f32.mrb[158].mxu0  ;;  %8281 = vmatprep.subr.msk.bf16.mxu0 %vm1120_vm1, %v5785_v36  ;;  %v5676_v25 = vadd.f32 %v7162_v49, %v5675_v58 }
0x1a1e   : > { %v5687_v21 = vadd.f32 %v8114_v34, %v7162_v49  ;;  %v5678_v48 = vpop.f32.mrb[159].mxu0 }
0x1a1f   : > { %v5679_v19 = vadd.f32 %v7162_v49, %v5678_v48  ;;  %v8690_v49 = vld [vmem:[%s10454_s2 + $0x30] sm:$0xff] }
0x1a20   : > { %v5787_v40 = vpack.c.bf16 %v5687_v21, %v5684_v12 }
0x1a21   : > { %v5786_v63 = vpack.c.bf16 %v5679_v19, %v5676_v25 }
0x1a22   : > { %v5810_v32 = vsel %vm1120_vm1, %v5787_v40, 0 }
0x1a23   : > { %v5807_v52 = vsel %vm1120_vm1, %v5786_v63, 0 }
0x1a24   : > { %8130 = vmatpush3.bf16.xpose.msra.mxu0 %v5804_v47 }
0x1a25   : > { %8282 = vmatprep.subr.msk.bf16.mxu0 %vm1120_vm1, %v5786_v63 }
0x1a2c   : > { %8132 = vmatpush3.bf16.xpose.msra.mxu0 %v5807_v52 }
0x1a2d   : > { %8283 = vmatprep.subr.msk.bf16.mxu0 %vm1120_vm1, %v5787_v40 }
0x1a34   : > { %8134 = vmatpush3.bf16.xpose.msra.mxu0 %v5810_v32 }
0x1a3b   : > { %8136 = vmatmul.mubr.msk.bf16.vlgmr.msra.gmra.mrb[160].mxu0 %vm1120_vm1, %v10476_v7 }
0x1a3c   : > { %8139 = vmatprep.mubr.msk.bf16.mxu0 %vm1120_vm1, %v10477_v33 }
0x1a43   : > { %8140 = vmatmul.mubr.msk.bf16.gmra.mrb[164].mxu0 %vm1120_vm1, %v10478_v13 }
0x1b0e   : > { %v8137_v62 = vpop.f32.mrb[160].mxu0 }
0x1b0f   : > { %v5846_v51 = vpop.f32.mrb[161].mxu0  ;;  %v5879_v53 = vmul.f32 0.35355338, %v8137_v62 }
0x1b10   : > { %v5877_v22 = vmul.f32 0.35355338, %v5846_v51  ;;  %v8138_v24 = vpop.f32.mrb[162].mxu0 }
0x1b11   : > { %v5849_v23 = vpop.f32.mrb[163].mxu0  ;;  %v5880_v44 = vmul.f32 0.35355338, %v8138_v24  ;;  %v5887_v42 = vadd.f32 %v8686_v0, %v5879_v53 }
0x1b12   : > { %v5885_v61 = vadd.f32 %v8685_v10, %v5877_v22  ;;  %v5878_v14 = vmul.f32 0.35355338, %v5849_v23 }
0x1b13   : > { %v5888_v5 = vadd.f32 %v8688_v8, %v5880_v44  ;;  %v5899_v2 = vsel %vm1226_vm2, %v5887_v42, -inf }
0x1b14   : > { %v5886_v55 = vadd.f32 %v8687_v38, %v5878_v14  ;;  %v5893_v35 = vsel %vm1226_vm2, %v5885_v61, -inf }
0x1b15   : > { %5894 = vmax.xlane.f32.xlu0 %v5893_v35  ;;  %v5902_v30 = vsel %vm1226_vm2, %v5888_v5, -inf }
0x1b16   : > { %v8141_v17 = vpop.f32.mrb[164].mxu0  ;;  %v5896_v26 = vsel %vm1226_vm2, %v5886_v55, -inf }
0x1b17   : > { %5897 = vmax.xlane.f32.xlu1 %v5896_v26  ;;  %v5862_v43 = vpop.f32.mrb[165].mxu0  ;;  %v5883_v56 = vmul.f32 0.35355338, %v8141_v17 }
0x1b18   : > { %v5881_v29 = vmul.f32 0.35355338, %v5862_v43  ;;  %v8142_v20 = vpop.f32.mrb[166].mxu0 }
0x1b19   : > { %5900 = vmax.xlane.f32.xlu0 %v5899_v2  ;;  %v5865_v41 = vpop.f32.mrb[167].mxu0  ;;  %v5884_v57 = vmul.f32 0.35355338, %v8142_v20  ;;  %v5891_v1 = vadd.f32 %v8690_v49, %v5883_v56  ;;  %v7189_v2 = vld [vmem:[%s10073_s16 + $0xc] sm:$0xf]  ;;  %s691_s16 = scalar_lea.vmem %s10464_s12, %s10481_s19 }
0x1b1a   : > { %v5889_v54 = vadd.f32 %v8689_v15, %v5881_v29  ;;  %v5882_v31 = vmul.f32 0.35355338, %v5865_v41  ;;  %8284 = vmatprep.subr.msk.bf16.mxu0 %vm1979_vm3, %v7189_v2  ;;  %v6085_v41 = vsel %vm1979_vm3, %v7189_v2, 0 }
0x1b1b   : > { %5903 = vmax.xlane.f32.xlu1 %v5902_v30  ;;  %v5892_v18 = vadd.f32 %v8692_v27, %v5884_v57  ;;  %v5911_v36 = vsel %vm1226_vm2, %v5891_v1, -inf  ;;  %8160 = vmatpush3.bf16.msra.mxu0 %v6085_v41 }
0x1b1c   : > { %v5890_v59 = vadd.f32 %v8691_v11, %v5882_v31  ;;  %v5905_v46 = vsel %vm1226_vm2, %v5889_v54, -inf }
0x1b1d   : > { %5906 = vmax.xlane.f32.xlu0 %v5905_v46  ;;  %v5914_v3 = vsel %vm1226_vm2, %v5892_v18, -inf }
0x1b1e   : > { %v5908_v16 = vsel %vm1226_vm2, %v5890_v59, -inf }
0x1b1f   : > { %5909 = vmax.xlane.f32.xlu1 %v5908_v16 }
0x1b21   : > { %5912 = vmax.xlane.f32.xlu0 %v5911_v36 }
0x1b23   : > { %5915 = vmax.xlane.f32.xlu1 %v5914_v3 }
0x1ba2   : > { %v5895_v39 = vpop.xlane.xlu0 %5894 }
0x1ba3   : > { %v5917_v6 = vsub.f32 %v5885_v61, %v5895_v39 }
0x1ba4   : > { %v5898_v58 = vpop.xlane.xlu1 %5897 }
0x1ba5   : > { %v5925_v34 = vmul.f32 1.442695, %v5917_v6  ;;  %v5918_v12 = vsub.f32 %v5886_v55, %v5898_v58 }
0x1ba6   : > { %v5901_v21 = vpop.xlane.xlu0 %5900 }
0x1ba7   : > { %8605 = vpow2.f32 %v5925_v34  ;;  %v5927_v48 = vmul.f32 1.442695, %v5918_v12  ;;  %v5919_v25 = vsub.f32 %v5887_v42, %v5901_v21 }
0x1ba8   : > { %v5904_v19 = vpop.xlane.xlu1 %5903 }
0x1ba9   : > { %8607 = vpow2.f32 %v5927_v48  ;;  %v5929_v40 = vmul.f32 1.442695, %v5919_v25  ;;  %v5920_v63 = vsub.f32 %v5888_v5, %v5904_v19 }
0x1baa   : > { %v5907_v47 = vpop.xlane.xlu0 %5906 }
0x1bab   : > { %8609 = vpow2.f32 %v5929_v40  ;;  %v5931_v52 = vmul.f32 1.442695, %v5920_v63  ;;  %v5921_v32 = vsub.f32 %v5889_v54, %v5907_v47 }
0x1bac   : > { %v5910_v7 = vpop.xlane.xlu1 %5909 }
0x1bad   : > { %8611 = vpow2.f32 %v5931_v52  ;;  %v5933_v33 = vmul.f32 1.442695, %v5921_v32  ;;  %v5922_v13 = vsub.f32 %v5890_v59, %v5910_v7 }
0x1bae   : > { %v5913_v62 = vpop.xlane.xlu0 %5912 }
0x1baf   : > { %8613 = vpow2.f32 %v5933_v33  ;;  %v5935_v51 = vmul.f32 1.442695, %v5922_v13  ;;  %v5923_v53 = vsub.f32 %v5891_v1, %v5913_v62 }
0x1bb0   : > { %v5916_v22 = vpop.xlane.xlu1 %5915 }
0x1bb1   : > { %v8606_v24 = vpop.eup %8605  ;;  %8615 = vpow2.f32 %v5935_v51  ;;  %v5937_v23 = vmul.f32 1.442695, %v5923_v53  ;;  %v5924_v10 = vsub.f32 %v5892_v18, %v5916_v22 }
0x1bb2   : > { %v5941_v61 = vsel %vm1226_vm2, %v8606_v24, 0.0 }
0x1bb3   : > { %v8608_v44 = vpop.eup %8607  ;;  %8617 = vpow2.f32 %v5937_v23  ;;  %v5939_v14 = vmul.f32 1.442695, %v5924_v10  ;;  %5942 = vadd.xlane.f32.xlu0 %v5941_v61 }
0x1bb4   : > { %v5944_v0 = vsel %vm1226_vm2, %v8608_v44, 0.0 }
0x1bb5   : > { %v8610_v42 = vpop.eup %8609  ;;  %8619 = vpow2.f32 %v5939_v14  ;;  %5945 = vadd.xlane.f32.xlu1 %v5944_v0  ;;  %v7194_v14 = vld [vmem:[%s683_s23] ss:$0 sm:$0xff] }
0x1bb6   : > { %v5947_v38 = vsel %vm1226_vm2, %v8610_v42, 0.0 }
0x1bb7   : > { %v8612_v55 = vpop.eup %8611  ;;  %5948 = vadd.xlane.f32.xlu0 %v5947_v38 }
0x1bb8   : > { %v5950_v35 = vsel %vm1226_vm2, %v8612_v55, 0.0 }
0x1bb9   : > { %v8614_v8 = vpop.eup %8613  ;;  %5951 = vadd.xlane.f32.xlu1 %v5950_v35 }
0x1bba   : > { %v5953_v5 = vsel %vm1226_vm2, %v8614_v8, 0.0 }
0x1bbb   : > { %v8616_v17 = vpop.eup %8615  ;;  %5954 = vadd.xlane.f32.xlu0 %v5953_v5 }
0x1bbc   : > { %v5956_v26 = vsel %vm1226_vm2, %v8616_v17, 0.0 }
0x1bbd   : > { %v8618_v43 = vpop.eup %8617  ;;  %5957 = vadd.xlane.f32.xlu1 %v5956_v26 }
0x1bbe   : > { %v5959_v56 = vsel %vm1226_vm2, %v8618_v43, 0.0 }
0x1bbf   : > { %v8620_v29 = vpop.eup %8619  ;;  %5960 = vadd.xlane.f32.xlu0 %v5959_v56 }
0x1bc0   : > { %v5962_v20 = vsel %vm1226_vm2, %v8620_v29, 0.0 }
0x1bc1   : > { %5963 = vadd.xlane.f32.xlu1 %v5962_v20 }
0x1c40   : > { %v5943_v15 = vpop.xlane.xlu0 %5942 }
0x1c41   : > { %8621 = vrcp.f32 %v5943_v15 }
0x1c42   : > { %v5946_v54 = vpop.xlane.xlu1 %5945 }
0x1c43   : > { %8623 = vrcp.f32 %v5946_v54 }
0x1c44   : > { %v5949_v57 = vpop.xlane.xlu0 %5948 }
0x1c45   : > { %8625 = vrcp.f32 %v5949_v57 }
0x1c46   : > { %v5952_v31 = vpop.xlane.xlu1 %5951 }
0x1c47   : > { %8627 = vrcp.f32 %v5952_v31  ;;  %v10479_v31 = vld [vmem:[#allocation2_spill] sm:$0xff] }
0x1c48   : > { %v5955_v30 = vpop.xlane.xlu0 %5954 }
0x1c49   : > { %8629 = vrcp.f32 %v5955_v30 }
0x1c4a   : > { %v5958_v49 = vpop.xlane.xlu1 %5957 }
0x1c4b   : > { %v8622_v1 = vpop.eup %8621  ;;  %8631 = vrcp.f32 %v5958_v49 }
0x1c4c   : > { %v5961_v11 = vpop.xlane.xlu0 %5960  ;;  %v5973_v27 = vmul.f32 %v8622_v1, %v8606_v24 }
0x1c4d   : > { %v8624_v59 = vpop.eup %8623  ;;  %8633 = vrcp.f32 %v5961_v11 }
0x1c4e   : > { %v5964_v46 = vpop.xlane.xlu1 %5963  ;;  %v5974_v18 = vmul.f32 %v8624_v59, %v8608_v44 }
0x1c4f   : > { %v8626_v16 = vpop.eup %8625  ;;  %8635 = vrcp.f32 %v5964_v46 }
0x1c50   : > { %v5981_v36 = vpack.c.bf16 %v5974_v18, %v5973_v27  ;;  %v5975_v39 = vmul.f32 %v8626_v16, %v8610_v42 }
0x1c51   : > { %v8628_v3 = vpop.eup %8627 }
0x1c52   : > { %v5976_v6 = vmul.f32 %v8628_v3, %v8612_v55  ;;  %8151 = vmatprep.mubr.msk.bf16.mxu1 %vm1226_vm2, %v5981_v36 }
0x1c53   : > { %v8630_v58 = vpop.eup %8629 }
0x1c54   : > { %v5982_v34 = vpack.c.bf16 %v5976_v6, %v5975_v39  ;;  %v5977_v21 = vmul.f32 %v8630_v58, %v8614_v8 }
0x1c55   : > { %v8632_v12 = vpop.eup %8631 }
0x1c56   : > { %8152 = vmatmul.mubr.msk.bf16.vlgmr.msra.gmra.mrb[160].mxu1 %vm1226_vm2, %v5982_v34  ;;  %v5978_v48 = vmul.f32 %v8632_v12, %v8616_v17 }
0x1c57   : > { %v8634_v25 = vpop.eup %8633 }
0x1c58   : > { %v5983_v19 = vpack.c.bf16 %v5978_v48, %v5977_v21  ;;  %v5979_v63 = vmul.f32 %v8634_v25, %v8618_v43 }
0x1c59   : > { %v8636_v40 = vpop.eup %8635 }
0x1c5a   : > { %8155 = vmatprep.mubr.msk.bf16.mxu1 %vm1226_vm2, %v5983_v19  ;;  %v5980_v47 = vmul.f32 %v8636_v40, %v8620_v29 }
0x1c5c   : > { %v5984_v52 = vpack.c.bf16 %v5980_v47, %v5979_v63 }
0x1c5e   : > { %8156 = vmatmul.mubr.msk.bf16.gmra.mrb[164].mxu1 %vm1226_vm2, %v5984_v52 }
0x1d29   : > { %v8153_v32 = vpop.f32.mrb[160].mxu1 }
0x1d2a   : > { %v6035_v7 = vpop.f32.mrb[161].mxu1 }
0x1d2b   : > { %v8154_v33 = vpop.f32.mrb[162].mxu1 }
0x1d2c   : > { %v6067_v13 = vpack.c.bf16 %v8154_v33, %v8153_v32  ;;  %v6038_v62 = vpop.f32.mrb[163].mxu1 }
0x1d2d   : > { %v6066_v51 = vpack.c.bf16 %v6038_v62, %v6035_v7 }
0x1d2f   : > { %8161 = vmatprep.mubr.msk.bf16.mxu0 %vm1120_vm1, %v6066_v51 }
0x1d30   : > { %8162 = vmatmul.mubr.msk.bf16.vlgmr.msra.gmra.mrb[128].mxu0 %vm1120_vm1, %v6067_v13 }
0x1d31   : > { %v8157_v53 = vpop.f32.mrb[164].mxu1 }
0x1d32   : > { %v6051_v22 = vpop.f32.mrb[165].mxu1 }
0x1d33   : > { %v8158_v24 = vpop.f32.mrb[166].mxu1 }
0x1d34   : > { %v6069_v23 = vpack.c.bf16 %v8158_v24, %v8157_v53  ;;  %v6054_v10 = vpop.f32.mrb[167].mxu1 }
0x1d35   : > { %v6068_v61 = vpack.c.bf16 %v6054_v10, %v6051_v22 }
0x1d37   : > { %8165 = vmatprep.mubr.msk.bf16.mxu0 %vm1120_vm1, %v6068_v61 }
0x1d38   : > { %8166 = vmatmul.mubr.msk.bf16.gmra.mrb[132].mxu0 %vm1120_vm1, %v6069_v23 }
0x1e03   : > { %v8163_v44 = vpop.f32.mrb[128].mxu0 }
0x1e04   : > { %v6121_v0 = vpop.f32.mrb[129].mxu0  ;;  %v6162_v42 = vadd.f32 %v8163_v44, %v9530_v50 }
0x1e05   : > { %v6160_v38 = vadd.f32 %v6121_v0, %v9526_v9  ;;  %v8164_v55 = vpop.f32.mrb[130].mxu0 }
0x1e06   : > { %v6124_v35 = vpop.f32.mrb[131].mxu0  ;;  %v6163_v5 = vadd.f32 %v8164_v55, %v9536_v4  ;;  %v10272_v26 = vadd.f32 %v7194_v14, %v6162_v42 }
0x1e07   : > { %v10268_v8 = vadd.f32 %v7194_v14, %v6160_v38  ;;  %v6161_v17 = vadd.f32 %v6124_v35, %v9532_v60 }
0x1e08   : > { %v10278_v29 = vadd.f32 %v7194_v14, %v6163_v5  ;;  %v6189_v41 = vsel %vm722_vm0, %v10272_v26, 0.0 }
0x1e09   : > { %v10274_v43 = vadd.f32 %v7194_v14, %v6161_v17  ;;  %v6183_v56 = vsel %vm722_vm0, %v10268_v8, 0.0 }
0x1e0a   : > { %6184 = vadd.xlane.f32.xlu0 %v6183_v56  ;;  %v6192_v49 = vsel %vm722_vm0, %v10278_v29, 0.0 }
0x1e0b   : > { %v8167_v50 = vpop.f32.mrb[132].mxu0  ;;  %v6186_v9 = vsel %vm722_vm0, %v10274_v43, 0.0 }
0x1e0c   : > { %6187 = vadd.xlane.f32.xlu1 %v6186_v9  ;;  %v6137_v20 = vpop.f32.mrb[133].mxu0  ;;  %v6166_v4 = vadd.f32 %v8167_v50, %v9550_v28  ;;  %v8343_v50 = vld [vmem:[%s688_s30] sm:$0xff]   ;;  %v8344_v9 = vld [vmem:[%s688_s30 + $0x8] sm:$0xff]  }
0x1e0d   : > { %v6164_v60 = vadd.f32 %v6137_v20, %v9544_v45  ;;  %v8168_v2 = vpop.f32.mrb[134].mxu0  ;;  %8169 = vmatprep.subr.bf16.mxu1 %v8343_v50 }
0x1e0e   : > { %6190 = vadd.xlane.f32.xlu0 %v6189_v41  ;;  %v6140_v15 = vpop.f32.mrb[135].mxu0  ;;  %v6167_v57 = vadd.f32 %v8168_v2, %v9556_v37  ;;  %v10292_v1 = vadd.f32 %v7194_v14, %v6166_v4  ;;  %8170 = vmatpush3.bf16.msra.mxu1 %v8343_v50 }
0x1e0f   : > { %v10286_v54 = vadd.f32 %v7194_v14, %v6164_v60  ;;  %v6165_v30 = vadd.f32 %v6140_v15, %v10479_v31  ;;  %8171 = vmatprep.subr.bf16.mxu1 %v8344_v9 }
0x1e10   : > { %6193 = vadd.xlane.f32.xlu1 %v6192_v49  ;;  %v10298_v11 = vadd.f32 %v7194_v14, %v6167_v57  ;;  %v6201_v37 = vsel %vm722_vm0, %v10292_v1, 0.0 }
0x1e11   : > { %v10294_v28 = vadd.f32 %v7194_v14, %v6165_v30  ;;  %v6195_v45 = vsel %vm722_vm0, %v10286_v54, 0.0 }
0x1e12   : > { %6196 = vadd.xlane.f32.xlu0 %v6195_v45  ;;  %v6204_v46 = vsel %vm722_vm0, %v10298_v11, 0.0  ;;  %8172 = vmatpush3.bf16.msra.mxu1 %v8344_v9 }
0x1e13   : > { %v6198_v59 = vsel %vm722_vm0, %v10294_v28, 0.0 }
0x1e14   : > { %6199 = vadd.xlane.f32.xlu1 %v6198_v59 }
0x1e16   : > { %6202 = vadd.xlane.f32.xlu0 %v6201_v37 }
0x1e18   : > { %6205 = vadd.xlane.f32.xlu1 %v6204_v46 }
0x1e97   : > { %v6185_v27 = vpop.xlane.xlu0 %6184 }
0x1e98   : > { %v6207_v18 = vmul.f32 0.03125, %v6185_v27 }
0x1e99   : > { %v6188_v16 = vpop.xlane.xlu1 %6187 }
0x1e9a   : > { %v10307_v36 = vsub.f32 %v10268_v8, %v6207_v18  ;;  %v6208_v3 = vmul.f32 0.03125, %v6188_v16 }
0x1e9b   : > { %v6191_v39 = vpop.xlane.xlu0 %6190 }
0x1e9c   : > { %v10310_v6 = vsub.f32 %v10274_v43, %v6208_v3  ;;  %v6209_v58 = vmul.f32 0.03125, %v6191_v39  ;;  %v6223_v34 = vmul.f32 %v10307_v36, %v10307_v36 }
0x1e9d   : > { %v6194_v12 = vpop.xlane.xlu1 %6193 }
0x1e9e   : > { %v10315_v21 = vsub.f32 %v10272_v26, %v6209_v58  ;;  %v6210_v48 = vmul.f32 0.03125, %v6194_v12  ;;  %v6231_v25 = vsel %vm722_vm0, %v6223_v34, 0.0  ;;  %v6224_v19 = vmul.f32 %v10310_v6, %v10310_v6 }
0x1e9f   : > { %6232 = vadd.xlane.f32.xlu0 %v6231_v25  ;;  %v6197_v40 = vpop.xlane.xlu0 %6196 }
0x1ea0   : > { %v10321_v63 = vsub.f32 %v10278_v29, %v6210_v48  ;;  %v6211_v47 = vmul.f32 0.03125, %v6197_v40  ;;  %v6234_v52 = vsel %vm722_vm0, %v6224_v19, 0.0  ;;  %v6225_v32 = vmul.f32 %v10315_v21, %v10315_v21 }
0x1ea1   : > { %6235 = vadd.xlane.f32.xlu1 %v6234_v52  ;;  %v6200_v7 = vpop.xlane.xlu1 %6199 }
0x1ea2   : > { %v10327_v33 = vsub.f32 %v10286_v54, %v6211_v47  ;;  %v6212_v13 = vmul.f32 0.03125, %v6200_v7  ;;  %v6237_v62 = vsel %vm722_vm0, %v6225_v32, 0.0  ;;  %v6226_v51 = vmul.f32 %v10321_v63, %v10321_v63 }
0x1ea3   : > { %6238 = vadd.xlane.f32.xlu0 %v6237_v62  ;;  %v6203_v53 = vpop.xlane.xlu0 %6202 }
0x1ea4   : > { %v10333_v22 = vsub.f32 %v10294_v28, %v6212_v13  ;;  %v6213_v24 = vmul.f32 0.03125, %v6203_v53  ;;  %v6240_v23 = vsel %vm722_vm0, %v6226_v51, 0.0  ;;  %v6227_v10 = vmul.f32 %v10327_v33, %v10327_v33 }
0x1ea5   : > { %6241 = vadd.xlane.f32.xlu1 %v6240_v23  ;;  %v6206_v61 = vpop.xlane.xlu1 %6205 }
0x1ea6   : > { %v10339_v44 = vsub.f32 %v10292_v1, %v6213_v24  ;;  %v6214_v14 = vmul.f32 0.03125, %v6206_v61  ;;  %v6243_v0 = vsel %vm722_vm0, %v6227_v10, 0.0  ;;  %v6228_v42 = vmul.f32 %v10333_v22, %v10333_v22 }
0x1ea7   : > { %6244 = vadd.xlane.f32.xlu0 %v6243_v0 }
0x1ea8   : > { %v10345_v38 = vsub.f32 %v10298_v11, %v6214_v14  ;;  %v6246_v55 = vsel %vm722_vm0, %v6228_v42, 0.0  ;;  %v6229_v35 = vmul.f32 %v10339_v44, %v10339_v44  ;;  %v8347_v42 = vld [vmem:[%s696_s27 + $0x10] sm:$0xff]  }
0x1ea9   : > { %6247 = vadd.xlane.f32.xlu1 %v6246_v55 }
0x1eaa   : > { %v6249_v5 = vsel %vm722_vm0, %v6229_v35, 0.0  ;;  %v6230_v17 = vmul.f32 %v10345_v38, %v10345_v38 }
0x1eab   : > { %6250 = vadd.xlane.f32.xlu0 %v6249_v5 }
0x1eac   : > { %v6252_v56 = vsel %vm722_vm0, %v6230_v17, 0.0 }
0x1ead   : > { %6253 = vadd.xlane.f32.xlu1 %v6252_v56 }
0x1f2c   : > { %v6233_v20 = vpop.xlane.xlu0 %6232 }
0x1f2d   : > { %v6255_v4 = vmul.f32 0.03125, %v6233_v20 }
0x1f2e   : > { %v6236_v60 = vpop.xlane.xlu1 %6235 }
0x1f2f   : > { %v6263_v2 = vadd.f32 1e-05, %v6255_v4  ;;  %v6256_v41 = vmul.f32 0.03125, %v6236_v60 }
0x1f30   : > { %v6239_v15 = vpop.xlane.xlu0 %6238 }
0x1f31   : > { %8637 = vrsqrt.f32 %v6263_v2  ;;  %v6264_v57 = vadd.f32 1e-05, %v6256_v41  ;;  %v6257_v31 = vmul.f32 0.03125, %v6239_v15 }
0x1f32   : > { %v6242_v30 = vpop.xlane.xlu1 %6241 }
0x1f33   : > { %8639 = vrsqrt.f32 %v6264_v57  ;;  %v6265_v49 = vadd.f32 1e-05, %v6257_v31  ;;  %v6258_v45 = vmul.f32 0.03125, %v6242_v30 }
0x1f34   : > { %v6245_v59 = vpop.xlane.xlu0 %6244 }
0x1f35   : > { %8641 = vrsqrt.f32 %v6265_v49  ;;  %v6266_v37 = vadd.f32 1e-05, %v6258_v45  ;;  %v6259_v46 = vmul.f32 0.03125, %v6245_v59 }
0x1f36   : > { %v6248_v27 = vpop.xlane.xlu1 %6247 }
0x1f37   : > { %8643 = vrsqrt.f32 %v6266_v37  ;;  %v6267_v18 = vadd.f32 1e-05, %v6259_v46  ;;  %v6260_v16 = vmul.f32 0.03125, %v6248_v27 }
0x1f38   : > { %v6251_v3 = vpop.xlane.xlu0 %6250 }
0x1f39   : > { %8645 = vrsqrt.f32 %v6267_v18  ;;  %v6268_v39 = vadd.f32 1e-05, %v6260_v16  ;;  %v6261_v58 = vmul.f32 0.03125, %v6251_v3 }
0x1f3a   : > { %v6254_v34 = vpop.xlane.xlu1 %6253 }
0x1f3b   : > { %v8638_v12 = vpop.eup %8637  ;;  %8647 = vrsqrt.f32 %v6268_v39  ;;  %v6269_v48 = vadd.f32 1e-05, %v6261_v58  ;;  %v6262_v25 = vmul.f32 0.03125, %v6254_v34 }
0x1f3c   : > { %v6279_v47 = vmul.f32 %v8638_v12, %v10307_v36 }
0x1f3d   : > { %v8640_v19 = vpop.eup %8639  ;;  %8649 = vrsqrt.f32 %v6269_v48  ;;  %v6270_v40 = vadd.f32 1e-05, %v6262_v25 }
0x1f3e   : > { %v6280_v52 = vmul.f32 %v8640_v19, %v10310_v6 }
0x1f3f   : > { %v8642_v32 = vpop.eup %8641  ;;  %8651 = vrsqrt.f32 %v6270_v40 }
0x1f40   : > { %v6287_v7 = vpack.c.bf16 %v6280_v52, %v6279_v47  ;;  %v6281_v62 = vmul.f32 %v8642_v32, %v10315_v21 }
0x1f41   : > { %v8644_v13 = vpop.eup %8643 }
0x1f42   : > { %v6282_v51 = vmul.f32 %v8644_v13, %v10321_v63  ;;  %8173 = vmatprep.mubr.msk.bf16.mxu1 %vm722_vm0, %v6287_v7 }
0x1f43   : > { %v8646_v53 = vpop.eup %8645 }
0x1f44   : > { %v6288_v24 = vpack.c.bf16 %v6282_v51, %v6281_v62  ;;  %v6283_v36 = vmul.f32 %v8646_v53, %v10327_v33  ;;  %v8345_v33 = vld [vmem:[%s696_s27] sm:$0xff]  }
0x1f45   : > { %v8648_v23 = vpop.eup %8647  ;;  %8181 = vmatprep.subr.bf16.mxu1 %v8345_v33 }
0x1f46   : > { %8174 = vmatmul.mubr.msk.bf16.vlgmr.msra.gmra.mrb[168].mxu1 %vm722_vm0, %v6288_v24  ;;  %v6284_v6 = vmul.f32 %v8648_v23, %v10333_v22  ;;  %v8346_v22 = vld [vmem:[%s696_s27 + $0x8] sm:$0xff]  }
0x1f47   : > { %v8650_v10 = vpop.eup %8649  ;;  %8182 = vmatpush3.bf16.msra.mxu1 %v8345_v33 }
0x1f48   : > { %v6289_v61 = vpack.c.bf16 %v6284_v6, %v6283_v36  ;;  %v6285_v21 = vmul.f32 %v8650_v10, %v10339_v44  ;;  %8183 = vmatprep.subr.bf16.mxu1 %v8346_v22  ;;  %v8348_v44 = vld [vmem:[%s696_s27 + $0x18] sm:$0xff]  }
0x1f49   : > { %v8652_v14 = vpop.eup %8651 }
0x1f4a   : > { %8177 = vmatprep.mubr.msk.bf16.mxu1 %vm722_vm0, %v6289_v61  ;;  %v6286_v63 = vmul.f32 %v8652_v14, %v10345_v38  ;;  %v7195_v38 = vld [vmem:[%s691_s16] ss:$0 sm:$0xff] }
0x1f4b   : > { %8184 = vmatpush3.bf16.msra.mxu1 %v8346_v22 }
0x1f4c   : > { %v6290_v0 = vpack.c.bf16 %v6286_v63, %v6285_v21  ;;  %8185 = vmatprep.subr.bf16.mxu1 %v8347_v42 }
0x1f4e   : > { %8178 = vmatmul.mubr.msk.bf16.gmra.mrb[172].mxu1 %vm722_vm0, %v6290_v0 }
0x1f4f   : > { %8186 = vmatpush3.bf16.msra.mxu1 %v8347_v42 }
0x1f50   : > { %8187 = vmatprep.subr.bf16.mxu1 %v8348_v44 }
0x1f53   : > { %8188 = vmatpush3.bf16.msra.mxu1 %v8348_v44 }
0x2019   : > { %v8175_v55 = vpop.f32.mrb[168].mxu1 }
0x201a   : > { %v10378_v35 = vadd.f32 %v8175_v55, %v7195_v38  ;;  %v6360_v5 = vpop.f32.mrb[169].mxu1 }
0x201b   : > { %v10380_v17 = vadd.f32 %v7195_v38, %v6360_v5  ;;  %v8176_v56 = vpop.f32.mrb[170].mxu1 }
0x201c   : > { %v6401_v50 = vmul.f32 0.044715, %v10378_v35  ;;  %v10383_v9 = vadd.f32 %v8176_v56, %v7195_v38  ;;  %v6363_v20 = vpop.f32.mrb[171].mxu1 }
0x201d   : > { %v6399_v4 = vmul.f32 0.044715, %v10380_v17  ;;  %v10386_v60 = vadd.f32 %v7195_v38, %v6363_v20 }
0x201e   : > { %v6409_v2 = vmul.f32 %v6401_v50, %v10378_v35  ;;  %v6402_v41 = vmul.f32 0.044715, %v10383_v9 }
0x201f   : > { %v6407_v15 = vmul.f32 %v6399_v4, %v10380_v17  ;;  %v6400_v57 = vmul.f32 0.044715, %v10386_v60 }
0x2020   : > { %v6417_v31 = vmul.f32 %v6409_v2, %v10378_v35  ;;  %v6410_v30 = vmul.f32 %v6402_v41, %v10383_v9  ;;  %v6393_v2 = vmul.f32 0.5, %v10378_v35  ;;  %v6394_v41 = vmul.f32 0.5, %v10383_v9 }
0x2021   : > { %v6415_v49 = vmul.f32 %v6407_v15, %v10380_v17  ;;  %v6408_v45 = vmul.f32 %v6400_v57, %v10386_v60  ;;  %v8179_v59 = vpop.f32.mrb[172].mxu1  ;;  %v6391_v57 = vmul.f32 0.5, %v10380_v17 }
0x2022   : > { %v6425_v37 = vadd.f32 %v6417_v31, %v10378_v35  ;;  %v6418_v46 = vmul.f32 %v6410_v30, %v10383_v9  ;;  %v10398_v27 = vadd.f32 %v8179_v59, %v7195_v38  ;;  %v6376_v18 = vpop.f32.mrb[173].mxu1  ;;  %v6392_v31 = vmul.f32 0.5, %v10386_v60 }
0x2023   : > { %v6423_v16 = vadd.f32 %v6415_v49, %v10380_v17  ;;  %v6416_v3 = vmul.f32 %v6408_v45, %v10386_v60  ;;  %v10402_v39 = vadd.f32 %v7195_v38, %v6376_v18  ;;  %v8180_v58 = vpop.f32.mrb[174].mxu1 }
0x2024   : > { %v6433_v34 = vmul.f32 0.7978846, %v6425_v37  ;;  %v6426_v12 = vadd.f32 %v6418_v46, %v10383_v9  ;;  %v6405_v48 = vmul.f32 0.044715, %v10398_v27  ;;  %v6388_v25 = vadd.f32 %v8180_v58, %v7195_v38  ;;  %v6379_v19 = vpop.f32.mrb[175].mxu1 }
0x2025   : > { %v6431_v40 = vmul.f32 0.7978846, %v6423_v16  ;;  %v6424_v47 = vadd.f32 %v6416_v3, %v10386_v60  ;;  %v6403_v52 = vmul.f32 0.044715, %v10402_v39  ;;  %v6380_v32 = vadd.f32 %v7195_v38, %v6379_v19 }
0x2026   : > { %8653 = vtanh.f32 %v6433_v34  ;;  %v6434_v7 = vmul.f32 0.7978846, %v6426_v12  ;;  %v6413_v13 = vmul.f32 %v6405_v48, %v10398_v27  ;;  %v6406_v62 = vmul.f32 0.044715, %v6388_v25 }
0x2027   : > { %8655 = vtanh.f32 %v6431_v40  ;;  %v6432_v51 = vmul.f32 0.7978846, %v6424_v47  ;;  %v6411_v53 = vmul.f32 %v6403_v52, %v10402_v39  ;;  %v6404_v24 = vmul.f32 0.044715, %v6380_v32 }
0x2028   : > { %8657 = vtanh.f32 %v6434_v7  ;;  %v6421_v23 = vmul.f32 %v6413_v13, %v10398_v27  ;;  %v6414_v36 = vmul.f32 %v6406_v62, %v6388_v25  ;;  %v6397_v17 = vmul.f32 0.5, %v10398_v27 }
0x2029   : > { %8659 = vtanh.f32 %v6432_v51  ;;  %v6419_v6 = vmul.f32 %v6411_v53, %v10402_v39  ;;  %v6412_v10 = vmul.f32 %v6404_v24, %v6380_v32  ;;  %v6398_v60 = vmul.f32 0.5, %v6388_v25 }
0x202a   : > { %v6429_v61 = vadd.f32 %v6421_v23, %v10398_v27  ;;  %v6422_v14 = vmul.f32 %v6414_v36, %v6388_v25  ;;  %v6395_v48 = vmul.f32 0.5, %v10402_v39  ;;  %v6396_v19 = vmul.f32 0.5, %v6380_v32 }
0x202b   : > { %v6427_v21 = vadd.f32 %v6419_v6, %v10402_v39  ;;  %v6420_v63 = vmul.f32 %v6412_v10, %v6380_v32 }
0x202c   : > { %v6437_v0 = vmul.f32 0.7978846, %v6429_v61  ;;  %v6430_v33 = vadd.f32 %v6422_v14, %v6388_v25  ;;  %v7210_v25 = vld [vmem:[%s699_s24] ss:$0 sm:$0xff] }
0x202d   : > { %v6435_v22 = vmul.f32 0.7978846, %v6427_v21  ;;  %v6428_v42 = vadd.f32 %v6420_v63, %v6380_v32 }
0x202e   : > { %8661 = vtanh.f32 %v6437_v0  ;;  %v6438_v44 = vmul.f32 0.7978846, %v6430_v33 }
0x202f   : > { %8663 = vtanh.f32 %v6435_v22  ;;  %v6436_v38 = vmul.f32 0.7978846, %v6428_v42 }
0x2030   : > { %v8654_v55 = vpop.eup %8653  ;;  %8665 = vtanh.f32 %v6438_v44 }
0x2031   : > { %v8656_v5 = vpop.eup %8655  ;;  %v6449_v56 = vadd.f32 1.0, %v8654_v55  ;;  %8667 = vtanh.f32 %v6436_v38 }
0x2032   : > { %v8658_v50 = vpop.eup %8657  ;;  %v6447_v20 = vadd.f32 1.0, %v8656_v5 }
0x2033   : > { %v8660_v4 = vpop.eup %8659  ;;  %v6450_v15 = vadd.f32 1.0, %v8658_v50  ;;  %v6457_v49 = vmul.f32 %v6449_v56, %v6393_v2 }
0x2034   : > { %v6448_v30 = vadd.f32 1.0, %v8660_v4  ;;  %v6455_v59 = vmul.f32 %v6447_v20, %v6391_v57 }
0x2035   : > { %v6458_v45 = vmul.f32 %v6450_v15, %v6394_v41 }
0x2036   : > { %v6456_v37 = vmul.f32 %v6448_v30, %v6392_v31 }
0x2037   : > { %v6464_v46 = vpack.c.bf16 %v6458_v45, %v6457_v49 }
0x2038   : > { %v8662_v18 = vpop.eup %8661  ;;  %v6463_v16 = vpack.c.bf16 %v6456_v37, %v6455_v59 }
0x2039   : > { %v8664_v3 = vpop.eup %8663  ;;  %v6453_v58 = vadd.f32 1.0, %v8662_v18 }
0x203a   : > { %v8666_v34 = vpop.eup %8665  ;;  %8189 = vmatprep.mubr.msk.bf16.mxu1 %vm1226_vm2, %v6463_v16  ;;  %v6451_v35 = vadd.f32 1.0, %v8664_v3 }
0x203b   : > { %v8668_v9 = vpop.eup %8667  ;;  %8190 = vmatmul.mubr.msk.bf16.vlgmr.msra.gmra.mrb[176].mxu1 %vm1226_vm2, %v6464_v46  ;;  %v6454_v12 = vadd.f32 1.0, %v8666_v34  ;;  %v6461_v47 = vmul.f32 %v6453_v58, %v6397_v17 }
0x203c   : > { %v6452_v40 = vadd.f32 1.0, %v8668_v9  ;;  %v6459_v7 = vmul.f32 %v6451_v35, %v6395_v48 }
0x203d   : > { %v6462_v52 = vmul.f32 %v6454_v12, %v6398_v60 }
0x203e   : > { %v6460_v13 = vmul.f32 %v6452_v40, %v6396_v19 }
0x203f   : > { %v6466_v62 = vpack.c.bf16 %v6462_v52, %v6461_v47 }
0x2040   : > { %v6465_v51 = vpack.c.bf16 %v6460_v13, %v6459_v7 }
0x2042   : > { %8193 = vmatprep.mubr.msk.bf16.mxu1 %vm1226_vm2, %v6465_v51 }
0x2043   : > { %8194 = vmatmul.mubr.msk.bf16.gmra.mrb[180].mxu1 %vm1226_vm2, %v6466_v62 }
0x210e   : > { %v8191_v27 = vpop.f32.mrb[176].mxu1 }
0x210f   : > { %v6578_v39 = vadd.f32 %v8191_v27, %v10272_v26  ;;  %v6545_v32 = vpop.f32.mrb[177].mxu1 }
0x2110   : > { %v6576_v53 = vadd.f32 %v6545_v32, %v10268_v8  ;;  %v8192_v24 = vpop.f32.mrb[178].mxu1 }
0x2111   : > { %v6593_v23 = vadd.f32 %v7210_v25, %v6578_v39  ;;  %v6579_v36 = vadd.f32 %v8192_v24, %v10278_v29  ;;  %v6548_v6 = vpop.f32.mrb[179].mxu1 }
0x2112   : > { %v6591_v10 = vadd.f32 %v7210_v25, %v6576_v53  ;;  %v6577_v61 = vadd.f32 %v6548_v6, %v10274_v43 }
0x2113   : > { %6601 = vst.msk [vmem:[%s704_s26 + $0x10] sm:$0xff] %vm722_vm0, %v6593_v23  ;;  %v6594_v14 = vadd.f32 %v7210_v25, %v6579_v36 }
0x2114   : > { %6599 = vst.msk [vmem:[%s704_s26] sm:$0xff] %vm722_vm0, %v6591_v10  ;;  %v6592_v26 = vadd.f32 %v7210_v25, %v6577_v61 }
0x2115   : > { %6602 = vst.msk [vmem:[%s704_s26 + $0x18] sm:$0xff] %vm722_vm0, %v6594_v14 }
0x2116   : > { %6600 = vst.msk [vmem:[%s704_s26 + $0x8] sm:$0xff] %vm722_vm0, %v6592_v26  ;;  %v8195_v21 = vpop.f32.mrb[180].mxu1 }
0x2117   : > { %v6582_v8 = vadd.f32 %v8195_v21, %v10292_v1  ;;  %v6561_v63 = vpop.f32.mrb[181].mxu1 }
0x2118   : > { %v6580_v29 = vadd.f32 %v6561_v63, %v10286_v54  ;;  %v8196_v0 = vpop.f32.mrb[182].mxu1 }
0x2119   : > { %v6597_v33 = vadd.f32 %v7210_v25, %v6582_v8  ;;  %v6583_v43 = vadd.f32 %v8196_v0, %v10298_v11  ;;  %v6564_v22 = vpop.f32.mrb[183].mxu1 }
0x211a   : > { %v6595_v42 = vadd.f32 %v7210_v25, %v6580_v29  ;;  %v6581_v44 = vadd.f32 %v6564_v22, %v10294_v28 }
0x211b   : > { %6605 = vst.msk [vmem:[%s704_s26 + $0x30] sm:$0xff] %vm722_vm0, %v6597_v33  ;;  %v6598_v38 = vadd.f32 %v7210_v25, %v6583_v43 }
0x211c   : > { %6603 = vst.msk [vmem:[%s704_s26 + $0x20] sm:$0xff] %vm722_vm0, %v6595_v42  ;;  %v6596_v55 = vadd.f32 %v7210_v25, %v6581_v44 }
0x211d   : > { %6606 = vst.msk [vmem:[%s704_s26 + $0x38] sm:$0xff] %vm722_vm0, %v6598_v38 }
0x211e   : > { %6604 = vst.msk [vmem:[%s704_s26 + $0x28] sm:$0xff] %vm722_vm0, %v6596_v55 }
0x211f PF: > { %s25_s18 = sadd.s32 1, %s8699_s18  }
0x2120   : > { %p22_p4 = scmp.ge.s32.totalorder %s25_s18, 4  }
0x2122   :  { %24 = sbr.rel (!%p22_p4) target bundleno = 1 (0x1), region = 196 }

</bundles_post_ra>
